<compile_context>
chip_gen: v6e
topology: v6e:2x2x1
jax: 0.10.0
libtpu: 0.0.40
codegen_flags: <defaults>
</compile_context>

<pallas_src>
import functools

import jax
import jax.numpy as jnp
from jax.experimental import pallas as pl
from jax.experimental.pallas import tpu as pltpu


def _pair(v):
    if isinstance(v, (tuple, list)):
        return (int(v[0]), int(v[1]))
    return (int(v), int(v))


def _drn_conv_kernel(x_ref, w_ref, scale_ref, bias_ref, o_ref, *,
                     kh, kw, stride, dilation, hout, wout, th, activate, fold_kw):
    """One grid step: the full (Hout*Wout, TN) output tile of one batch element.

    M sub-tiles of TH output rows; taps accumulate into a traced f32 value
    (register / MRB resident), one fused BN(+ReLU) epilogue and one store per
    sub-tile.  No accumulator scratch, no per-tap VMEM traffic."""
    sh, sw = stride
    dh, dw = dilation
    scale = scale_ref[...]          # (1, TN) float32
    bias = bias_ref[...]            # (1, TN) float32

    n_ht = (hout + th - 1) // th
    for t in range(n_ht):
        oh0 = t * th
        rows = min(th, hout - oh0)
        acc = None
        for ki in range(kh):
            r0 = oh0 * sh + ki * dh
            if sh == 1:
                row_sl = pl.ds(r0, rows)
            else:
                row_sl = pl.ds(r0, rows, stride=sh)
            if fold_kw:
                # KW folded into the matmul K dimension: operand (rows*wout, kw*cin).
                pieces = [x_ref[row_sl, pl.ds(kj * dw, wout), :] for kj in range(kw)]
                xs = pieces[0] if kw == 1 else jnp.concatenate(pieces, axis=-1)
                xs = xs.reshape(rows * wout, -1)
                part = jnp.dot(xs, w_ref[ki], preferred_element_type=jnp.float32)
                acc = part if acc is None else acc + part
            else:
                for kj in range(kw):
                    if sw == 1:
                        col_sl = pl.ds(kj * dw, wout)
                    else:
                        col_sl = pl.ds(kj * dw, wout, stride=sw)
                    xs = x_ref[row_sl, col_sl, :].reshape(rows * wout, -1)
                    part = jnp.dot(xs, w_ref[ki, kj],
                                   preferred_element_type=jnp.float32)
                    acc = part if acc is None else acc + part
        out = acc * scale + bias
        if activate:
            out = jnp.maximum(out, 0.0)
        o_ref[pl.ds(oh0 * wout, rows * wout), :] = out.astype(o_ref.dtype)


def drn_conv_nhwc(x, w, gamma, beta, running_mean, running_var, *,
                  stride=1, padding=0, dilation=1, activate=True,
                  eps=1e-5, compute_dtype=jnp.bfloat16, out_dtype=jnp.bfloat16):
    """Fused Conv2d(no bias) + BatchNorm2d(inference) + optional ReLU (NHWC layout).

    x: (N, H, W, Cin), w: (KH, KW, Cin, Cout), BN params: (Cout,).
    out_dtype defaults to bfloat16 (recommended intra-network); pass float32 for parity.
    """
    sh, sw = _pair(stride)
    ph, pw = _pair(padding)
    dh, dw = _pair(dilation)

    n, h, win, cin = x.shape
    kh, kw, cin_w, cout = w.shape
    assert cin_w == cin, "weight Cin mismatch"

    hout = (h + 2 * ph - dh * (kh - 1) - 1) // sh + 1
    wout = (win + 2 * pw - dw * (kw - 1) - 1) // sw + 1

    # TODO(synk): move the spatial zero-padding into the kernel (extra HBM pass today).
    if ph or pw:
        x = jnp.pad(x, ((0, 0), (ph, ph), (pw, pw), (0, 0)))
    hp, wp = x.shape[1], x.shape[2]

    xc = x.astype(compute_dtype)
    wc = w.astype(compute_dtype)

    # Fold BN in float32; applied to the f32 accumulator in-kernel (not baked into bf16 weights).
    scale = gamma.astype(jnp.float32) * jax.lax.rsqrt(
        running_var.astype(jnp.float32) + jnp.float32(eps))
    bias = beta.astype(jnp.float32) - running_mean.astype(jnp.float32) * scale

    # Lane-dense Cout: pad to a multiple of 128 (zero weights -> dead padded channels).
    cout_p = max(128, ((cout + 127) // 128) * 128)
    if cout_p != cout:
        pad_c = cout_p - cout
        wc = jnp.pad(wc, ((0, 0), (0, 0), (0, 0), (0, pad_c)))
        scale = jnp.pad(scale, (0, pad_c), constant_values=1.0)
        bias = jnp.pad(bias, (0, pad_c))
    scale = scale.reshape(1, cout_p)
    bias = bias.reshape(1, cout_p)

    # Cout tile: biggest lane-dense tile, but prefer >=2 parallel grid points (v7x: 2 TCs).
    tn = 256 if cout_p % 256 == 0 else 128
    n_ct = cout_p // tn
    if n * n_ct < 2 and cout_p // 128 >= 2:
        tn, n_ct = 128, cout_p // 128

    m = hout * wout

    # Fold KW into K when not W-strided and the in-kernel concat is lane-aligned.
    fold_kw = (sw == 1) and (kw == 1 or cin % 128 == 0)
    if fold_kw:
        w_arr = wc.reshape(kh, kw * cin, cout_p)
        w_block = (kh, kw * cin, tn)
        w_idx_bj = lambda b, j: (0, 0, j)
        w_idx_jb = lambda j, b: (0, 0, j)
    else:
        w_arr = wc
        w_block = (kh, kw, cin, tn)
        w_idx_bj = lambda b, j: (0, 0, 0, j)
        w_idx_jb = lambda j, b: (0, 0, 0, j)

    # M sub-tile height: keep the (TH*Wout, TN) f32 accumulator around ~16 vregs.
    acc_budget_rows = max(1, (64 * 1024) // (tn * 4))
    th_cap = max(1, min(hout, acc_budget_rows // max(1, wout)))
    th = 1
    for cand in range(th_cap, 0, -1):
        if hout % cand == 0:
            th = cand
            break

    # Grid-axis order: keep the larger of {input plane, weight tile} constant over
    # the inner (fastest) axis so it is not redundantly re-fetched from HBM.
    csize = jnp.dtype(compute_dtype).itemsize
    osize = jnp.dtype(out_dtype).itemsize
    plane_b = hp * wp * cin * csize
    wtile_b = kh * kw * cin * tn * csize
    redundant_w = (n - 1) * n_ct * wtile_b      # grid (n, n_ct): weights refetched per batch
    redundant_x = (n_ct - 1) * n * plane_b      # grid (n_ct, n): plane refetched per Cout tile
    batch_inner = redundant_x <= redundant_w

    if batch_inner:
        grid = (n_ct, n)
        x_idx = lambda j, b: (b, 0, 0, 0)
        w_idx = w_idx_jb
        v_idx = lambda j, b: (0, j)
        o_idx = lambda j, b: (b, 0, j)
    else:
        grid = (n, n_ct)
        x_idx = lambda b, j: (b, 0, 0, 0)
        w_idx = w_idx_bj
        v_idx = lambda b, j: (0, j)
        o_idx = lambda b, j: (b, 0, j)

    # Explicit VMEM budget: double-buffered plane + weight tile + output block (+BN).
    out_blk_b = m * tn * osize
    budget = 2 * plane_b + 2 * wtile_b + 2 * out_blk_b + 4 * cout_p * 4 + (2 << 20)
    vmem_limit = int(min(max(budget, 32 << 20), 96 << 20))

    flops = 2 * n * m * cout * cin * kh * kw
    bytes_accessed = int(xc.size * csize + w_arr.size * csize
                         + n * m * cout_p * osize + 2 * cout_p * 4)

    kernel = functools.partial(
        _drn_conv_kernel,
        kh=kh, kw=kw, stride=(sh, sw), dilation=(dh, dw),
        hout=hout, wout=wout, th=th, activate=bool(activate), fold_kw=fold_kw)

    out_flat = pl.pallas_call(
        kernel,
        out_shape=jax.ShapeDtypeStruct((n, m, cout_p), out_dtype),
        grid_spec=pltpu.PrefetchScalarGridSpec(
            num_scalar_prefetch=0,
            grid=grid,
            in_specs=[
                # Input plane for batch b (whole padded plane, resident per grid step).
                pl.BlockSpec((None, hp, wp, cin), x_idx),
                # Weights + BN constants (per Cout tile).
                pl.BlockSpec(w_block, w_idx),
                pl.BlockSpec((1, tn), v_idx),
                pl.BlockSpec((1, tn), v_idx),
            ],
            out_specs=pl.BlockSpec((None, m, tn), o_idx),
        ),
        compiler_params=pltpu.CompilerParams(
            dimension_semantics=("parallel", "parallel"),
            vmem_limit_bytes=vmem_limit),
        cost_estimate=pl.CostEstimate(
            flops=flops, transcendentals=0, bytes_accessed=bytes_accessed),
    )(xc, w_arr, scale, bias)

    if cout_p != cout:
        out_flat = out_flat[:, :, :cout]
    return out_flat.reshape(n, hout, wout, cout)


def drn_conv_nchw(x_nchw, w_oihw, gamma, beta, running_mean, running_var, **kw):
    """PyTorch-layout adapter (NCHW input, OIHW weight).

    For best performance keep the whole network in NHWC and call drn_conv_nhwc
    directly; these boundary transposes exist only for PyTorch layout parity.
    """
    x = jnp.transpose(x_nchw, (0, 2, 3, 1))          # NCHW -> NHWC
    w = jnp.transpose(w_oihw, (2, 3, 1, 0))          # OIHW -> HWIO
    y = drn_conv_nhwc(x, w, gamma, beta, running_mean, running_var, **kw)
    return jnp.transpose(y, (0, 3, 1, 2))            # NHWC -> NCHW


def _reference_nhwc(x, w, gamma, beta, running_mean, running_var, *,
                    stride, padding, dilation, activate, eps=1e-5,
                    compute_dtype=jnp.bfloat16):
    sh, sw = _pair(stride)
    ph, pw = _pair(padding)
    dh, dw = _pair(dilation)
    y = jax.lax.conv_general_dilated(
        x.astype(compute_dtype), w.astype(compute_dtype),
        window_strides=(sh, sw),
        padding=((ph, ph), (pw, pw)),
        rhs_dilation=(dh, dw),
        dimension_numbers=("NHWC", "HWIO", "NHWC"),
        preferred_element_type=jnp.float32)
    scale = gamma / jnp.sqrt(running_var + eps)
    bias = beta - running_mean * scale
    y = y * scale + bias
    if activate:
        y = jnp.maximum(y, 0.0)
    return y


if __name__ == "__main__":
    key = jax.random.PRNGKey(0)
    N, H, W = 2, 16, 16

    def make_inputs(cin, cout, ksize, case_idx):
        ks = jax.random.split(jax.random.fold_in(key, 100 + case_idx), 6)
        x = jax.random.normal(ks[5], (N, H, W, cin), jnp.float32)
        w = jax.random.normal(ks[0], (ksize, ksize, cin, cout), jnp.float32) * 0.1
        gamma = jax.random.uniform(ks[1], (cout,), jnp.float32, minval=0.5, maxval=1.5)
        beta = jax.random.normal(ks[2], (cout,), jnp.float32) * 0.2
        mean = jax.random.normal(ks[3], (cout,), jnp.float32) * 0.5
        var = jax.random.uniform(ks[4], (cout,), jnp.float32, minval=0.5, maxval=1.5)
        return x, w, gamma, beta, mean, var

    cases = [
        # standard DRN conv (per-tap path, register accumulation)
        dict(cin=16, cout=128, kernel_size=3, stride=1, padding=1, dilation=1, activate=True),
        # 1x1 bottleneck conv (single-dot path, no ReLU)
        dict(cin=16, cout=128, kernel_size=1, stride=1, padding=0, dilation=1, activate=False),
        # dilated DRN conv
        dict(cin=16, cout=128, kernel_size=3, stride=1, padding=2, dilation=2, activate=True),
        # stride-2 downsampling conv (strided pl.ds path)
        dict(cin=16, cout=128, kernel_size=3, stride=2, padding=1, dilation=1, activate=True),
        # lane-aligned Cin -> KW folded into the MXU K dimension
        dict(cin=128, cout=128, kernel_size=3, stride=1, padding=1, dilation=1, activate=True),
        # small Cout -> lane-dense padding path (Cout padded to 128, sliced back)
        dict(cin=16, cout=64, kernel_size=3, stride=1, padding=1, dilation=1, activate=True),
    ]

    for idx, cfg in enumerate(cases):
        x, w, gamma, beta, mean, var = make_inputs(
            cfg["cin"], cfg["cout"], cfg["kernel_size"], idx)
        y = drn_conv_nhwc(
            x, w, gamma, beta, mean, var,
            stride=cfg["stride"], padding=cfg["padding"],
            dilation=cfg["dilation"], activate=cfg["activate"],
            out_dtype=jnp.float32)
        y = jax.block_until_ready(y)
        y_ref = _reference_nhwc(
            x, w, gamma, beta, mean, var,
            stride=cfg["stride"], padding=cfg["padding"],
            dilation=cfg["dilation"], activate=cfg["activate"])
        err = float(jnp.max(jnp.abs(y - y_ref)))
        assert err < 6e-2, f"case {idx}: max abs err {err}"

    # bfloat16-output path (default): compare against the float32-output kernel result.
    cfg = cases[0]
    x, w, gamma, beta, mean, var = make_inputs(cfg["cin"], cfg["cout"], cfg["kernel_size"], 0)
    y32 = drn_conv_nhwc(x, w, gamma, beta, mean, var,
                        stride=1, padding=1, dilation=1, activate=True,
                        out_dtype=jnp.float32)
    ybf = jax.block_until_ready(
        drn_conv_nhwc(x, w, gamma, beta, mean, var,
                      stride=1, padding=1, dilation=1, activate=True))  # default bf16
    err_bf = float(jnp.max(jnp.abs(ybf.astype(jnp.float32) - y32)))
    assert err_bf < 1.5e-1, f"bf16 output path: max abs err {err_bf}"

    # PyTorch-layout (NCHW / OIHW) adapter parity check on case 0.
    x_nchw = jnp.transpose(x, (0, 3, 1, 2))
    w_oihw = jnp.transpose(w, (3, 2, 0, 1))
    y_nchw = jax.block_until_ready(drn_conv_nchw(
        x_nchw, w_oihw, gamma, beta, mean, var,
        stride=1, padding=1, dilation=1, activate=True, out_dtype=jnp.float32))
    parity = float(jnp.max(jnp.abs(y_nchw - jnp.transpose(y32, (0, 3, 1, 2)))))
    assert parity < 1e-6, f"NCHW adapter mismatch: {parity}"

    print("KERNEL_OK")
</pallas_src>

<mosaic_0001>
module attributes {stable_mosaic.version = 11 : i64} {
  func.func @_drn_conv_kernel(%arg0: i32, %arg1: i32, %arg2: memref<1x18x18x16xbf16, #tpu.memory_space<vmem>>, %arg3: memref<3x3x16x128xbf16, #tpu.memory_space<vmem>>, %arg4: memref<1x128xf32, #tpu.memory_space<vmem>>, %arg5: memref<1x128xf32, #tpu.memory_space<vmem>>, %arg6: memref<1x256x128xf32, #tpu.memory_space<vmem>>) attributes {dimension_semantics = [#tpu.dimension_semantics<parallel>, #tpu.dimension_semantics<parallel>], iteration_bounds = array<i64: 1, 2>, scalar_prefetch = 0 : i64, scratch_operands = 0 : i64, tpu.core_type = #tpu.core_type<tc>, window_params = [{transform_indices = @transform_0, window_bounds = array<i64: 1, 18, 18, 16>}, {transform_indices = @transform_1, window_bounds = array<i64: 3, 3, 16, 128>}, {transform_indices = @transform_2, window_bounds = array<i64: 1, 128>}, {transform_indices = @transform_3, window_bounds = array<i64: 1, 128>}, {transform_indices = @transform_4, window_bounds = array<i64: 1, 256, 128>}]} {
    %c0 = arith.constant 0 : index
    %c0_0 = arith.constant 0 : index
    %0 = vector.load %arg4[%c0, %c0_0] : memref<1x128xf32, #tpu.memory_space<vmem>>, vector<1x128xf32>
    %c0_1 = arith.constant 0 : index
    %c0_2 = arith.constant 0 : index
    %1 = vector.load %arg5[%c0_1, %c0_2] : memref<1x128xf32, #tpu.memory_space<vmem>>, vector<1x128xf32>
    %c0_3 = arith.constant 0 : index
    %c0_4 = arith.constant 0 : index
    %c0_5 = arith.constant 0 : index
    %c0_6 = arith.constant 0 : index
    %2 = vector.load %arg2[%c0_3, %c0_4, %c0_5, %c0_6] : memref<1x18x18x16xbf16, #tpu.memory_space<vmem>>, vector<1x8x16x16xbf16>
    %3 = vector.shape_cast %2 : vector<1x8x16x16xbf16> to vector<8x16x16xbf16>
    %4 = vector.shape_cast %3 : vector<8x16x16xbf16> to vector<128x16xbf16>
    %c0_7 = arith.constant 0 : index
    %c0_8 = arith.constant 0 : index
    %c0_9 = arith.constant 0 : index
    %c0_10 = arith.constant 0 : index
    %5 = vector.load %arg3[%c0_7, %c0_8, %c0_9, %c0_10] : memref<3x3x16x128xbf16, #tpu.memory_space<vmem>>, vector<1x1x16x128xbf16>
    %6 = vector.shape_cast %5 : vector<1x1x16x128xbf16> to vector<16x128xbf16>
    %cst = arith.constant dense<0.000000e+00> : vector<128x128xf32>
    %7 = tpu.matmul %4, %6, %cst {dimension_numbers = #tpu.dot_dimension_numbers<[1], [0], [0], [1], [0, 0, 1, 1], [], []>} : vector<128x16xbf16>, vector<16x128xbf16>, vector<128x128xf32> -> vector<128x128xf32>
    %c0_11 = arith.constant 0 : index
    %c0_12 = arith.constant 0 : index
    %c1 = arith.constant 1 : index
    %c0_13 = arith.constant 0 : index
    %8 = vector.load %arg2[%c0_11, %c0_12, %c1, %c0_13] : memref<1x18x18x16xbf16, #tpu.memory_space<vmem>>, vector<1x8x16x16xbf16>
    %9 = vector.shape_cast %8 : vector<1x8x16x16xbf16> to vector<8x16x16xbf16>
    %10 = vector.shape_cast %9 : vector<8x16x16xbf16> to vector<128x16xbf16>
    %c0_14 = arith.constant 0 : index
    %c1_15 = arith.constant 1 : index
    %c0_16 = arith.constant 0 : index
    %c0_17 = arith.constant 0 : index
    %11 = vector.load %arg3[%c0_14, %c1_15, %c0_16, %c0_17] : memref<3x3x16x128xbf16, #tpu.memory_space<vmem>>, vector<1x1x16x128xbf16>
    %12 = vector.shape_cast %11 : vector<1x1x16x128xbf16> to vector<16x128xbf16>
    %cst_18 = arith.constant dense<0.000000e+00> : vector<128x128xf32>
    %13 = tpu.matmul %10, %12, %cst_18 {dimension_numbers = #tpu.dot_dimension_numbers<[1], [0], [0], [1], [0, 0, 1, 1], [], []>} : vector<128x16xbf16>, vector<16x128xbf16>, vector<128x128xf32> -> vector<128x128xf32>
    %14 = arith.addf %7, %13 : vector<128x128xf32>
    %c0_19 = arith.constant 0 : index
    %c0_20 = arith.constant 0 : index
    %c2 = arith.constant 2 : index
    %c0_21 = arith.constant 0 : index
    %15 = vector.load %arg2[%c0_19, %c0_20, %c2, %c0_21] : memref<1x18x18x16xbf16, #tpu.memory_space<vmem>>, vector<1x8x16x16xbf16>
    %16 = vector.shape_cast %15 : vector<1x8x16x16xbf16> to vector<8x16x16xbf16>
    %17 = vector.shape_cast %16 : vector<8x16x16xbf16> to vector<128x16xbf16>
    %c0_22 = arith.constant 0 : index
    %c2_23 = arith.constant 2 : index
    %c0_24 = arith.constant 0 : index
    %c0_25 = arith.constant 0 : index
    %18 = vector.load %arg3[%c0_22, %c2_23, %c0_24, %c0_25] : memref<3x3x16x128xbf16, #tpu.memory_space<vmem>>, vector<1x1x16x128xbf16>
    %19 = vector.shape_cast %18 : vector<1x1x16x128xbf16> to vector<16x128xbf16>
    %cst_26 = arith.constant dense<0.000000e+00> : vector<128x128xf32>
    %20 = tpu.matmul %17, %19, %cst_26 {dimension_numbers = #tpu.dot_dimension_numbers<[1], [0], [0], [1], [0, 0, 1, 1], [], []>} : vector<128x16xbf16>, vector<16x128xbf16>, vector<128x128xf32> -> vector<128x128xf32>
    %21 = arith.addf %14, %20 : vector<128x128xf32>
    %c0_27 = arith.constant 0 : index
    %c1_28 = arith.constant 1 : index
    %c0_29 = arith.constant 0 : index
    %c0_30 = arith.constant 0 : index
    %22 = vector.load %arg2[%c0_27, %c1_28, %c0_29, %c0_30] : memref<1x18x18x16xbf16, #tpu.memory_space<vmem>>, vector<1x8x16x16xbf16>
    %23 = vector.shape_cast %22 : vector<1x8x16x16xbf16> to vector<8x16x16xbf16>
    %24 = vector.shape_cast %23 : vector<8x16x16xbf16> to vector<128x16xbf16>
    %c1_31 = arith.constant 1 : index
    %c0_32 = arith.constant 0 : index
    %c0_33 = arith.constant 0 : index
    %c0_34 = arith.constant 0 : index
    %25 = vector.load %arg3[%c1_31, %c0_32, %c0_33, %c0_34] : memref<3x3x16x128xbf16, #tpu.memory_space<vmem>>, vector<1x1x16x128xbf16>
    %26 = vector.shape_cast %25 : vector<1x1x16x128xbf16> to vector<16x128xbf16>
    %cst_35 = arith.constant dense<0.000000e+00> : vector<128x128xf32>
    %27 = tpu.matmul %24, %26, %cst_35 {dimension_numbers = #tpu.dot_dimension_numbers<[1], [0], [0], [1], [0, 0, 1, 1], [], []>} : vector<128x16xbf16>, vector<16x128xbf16>, vector<128x128xf32> -> vector<128x128xf32>
    %28 = arith.addf %21, %27 : vector<128x128xf32>
    %c0_36 = arith.constant 0 : index
    %c1_37 = arith.constant 1 : index
    %c1_38 = arith.constant 1 : index
    %c0_39 = arith.constant 0 : index
    %29 = vector.load %arg2[%c0_36, %c1_37, %c1_38, %c0_39] : memref<1x18x18x16xbf16, #tpu.memory_space<vmem>>, vector<1x8x16x16xbf16>
    %30 = vector.shape_cast %29 : vector<1x8x16x16xbf16> to vector<8x16x16xbf16>
    %31 = vector.shape_cast %30 : vector<8x16x16xbf16> to vector<128x16xbf16>
    %c1_40 = arith.constant 1 : index
    %c1_41 = arith.constant 1 : index
    %c0_42 = arith.constant 0 : index
    %c0_43 = arith.constant 0 : index
    %32 = vector.load %arg3[%c1_40, %c1_41, %c0_42, %c0_43] : memref<3x3x16x128xbf16, #tpu.memory_space<vmem>>, vector<1x1x16x128xbf16>
    %33 = vector.shape_cast %32 : vector<1x1x16x128xbf16> to vector<16x128xbf16>
    %cst_44 = arith.constant dense<0.000000e+00> : vector<128x128xf32>
    %34 = tpu.matmul %31, %33, %cst_44 {dimension_numbers = #tpu.dot_dimension_numbers<[1], [0], [0], [1], [0, 0, 1, 1], [], []>} : vector<128x16xbf16>, vector<16x128xbf16>, vector<128x128xf32> -> vector<128x128xf32>
    %35 = arith.addf %28, %34 : vector<128x128xf32>
    %c0_45 = arith.constant 0 : index
    %c1_46 = arith.constant 1 : index
    %c2_47 = arith.constant 2 : index
    %c0_48 = arith.constant 0 : index
    %36 = vector.load %arg2[%c0_45, %c1_46, %c2_47, %c0_48] : memref<1x18x18x16xbf16, #tpu.memory_space<vmem>>, vector<1x8x16x16xbf16>
    %37 = vector.shape_cast %36 : vector<1x8x16x16xbf16> to vector<8x16x16xbf16>
    %38 = vector.shape_cast %37 : vector<8x16x16xbf16> to vector<128x16xbf16>
    %c1_49 = arith.constant 1 : index
    %c2_50 = arith.constant 2 : index
    %c0_51 = arith.constant 0 : index
    %c0_52 = arith.constant 0 : index
    %39 = vector.load %arg3[%c1_49, %c2_50, %c0_51, %c0_52] : memref<3x3x16x128xbf16, #tpu.memory_space<vmem>>, vector<1x1x16x128xbf16>
    %40 = vector.shape_cast %39 : vector<1x1x16x128xbf16> to vector<16x128xbf16>
    %cst_53 = arith.constant dense<0.000000e+00> : vector<128x128xf32>
    %41 = tpu.matmul %38, %40, %cst_53 {dimension_numbers = #tpu.dot_dimension_numbers<[1], [0], [0], [1], [0, 0, 1, 1], [], []>} : vector<128x16xbf16>, vector<16x128xbf16>, vector<128x128xf32> -> vector<128x128xf32>
    %42 = arith.addf %35, %41 : vector<128x128xf32>
    %c0_54 = arith.constant 0 : index
    %c2_55 = arith.constant 2 : index
    %c0_56 = arith.constant 0 : index
    %c0_57 = arith.constant 0 : index
    %43 = vector.load %arg2[%c0_54, %c2_55, %c0_56, %c0_57] : memref<1x18x18x16xbf16, #tpu.memory_space<vmem>>, vector<1x8x16x16xbf16>
    %44 = vector.shape_cast %43 : vector<1x8x16x16xbf16> to vector<8x16x16xbf16>
    %45 = vector.shape_cast %44 : vector<8x16x16xbf16> to vector<128x16xbf16>
    %c2_58 = arith.constant 2 : index
    %c0_59 = arith.constant 0 : index
    %c0_60 = arith.constant 0 : index
    %c0_61 = arith.constant 0 : index
    %46 = vector.load %arg3[%c2_58, %c0_59, %c0_60, %c0_61] : memref<3x3x16x128xbf16, #tpu.memory_space<vmem>>, vector<1x1x16x128xbf16>
    %47 = vector.shape_cast %46 : vector<1x1x16x128xbf16> to vector<16x128xbf16>
    %cst_62 = arith.constant dense<0.000000e+00> : vector<128x128xf32>
    %48 = tpu.matmul %45, %47, %cst_62 {dimension_numbers = #tpu.dot_dimension_numbers<[1], [0], [0], [1], [0, 0, 1, 1], [], []>} : vector<128x16xbf16>, vector<16x128xbf16>, vector<128x128xf32> -> vector<128x128xf32>
    %49 = arith.addf %42, %48 : vector<128x128xf32>
    %c0_63 = arith.constant 0 : index
    %c2_64 = arith.constant 2 : index
    %c1_65 = arith.constant 1 : index
    %c0_66 = arith.constant 0 : index
    %50 = vector.load %arg2[%c0_63, %c2_64, %c1_65, %c0_66] : memref<1x18x18x16xbf16, #tpu.memory_space<vmem>>, vector<1x8x16x16xbf16>
    %51 = vector.shape_cast %50 : vector<1x8x16x16xbf16> to vector<8x16x16xbf16>
    %52 = vector.shape_cast %51 : vector<8x16x16xbf16> to vector<128x16xbf16>
    %c2_67 = arith.constant 2 : index
    %c1_68 = arith.constant 1 : index
    %c0_69 = arith.constant 0 : index
    %c0_70 = arith.constant 0 : index
    %53 = vector.load %arg3[%c2_67, %c1_68, %c0_69, %c0_70] : memref<3x3x16x128xbf16, #tpu.memory_space<vmem>>, vector<1x1x16x128xbf16>
    %54 = vector.shape_cast %53 : vector<1x1x16x128xbf16> to vector<16x128xbf16>
    %cst_71 = arith.constant dense<0.000000e+00> : vector<128x128xf32>
    %55 = tpu.matmul %52, %54, %cst_71 {dimension_numbers = #tpu.dot_dimension_numbers<[1], [0], [0], [1], [0, 0, 1, 1], [], []>} : vector<128x16xbf16>, vector<16x128xbf16>, vector<128x128xf32> -> vector<128x128xf32>
    %56 = arith.addf %49, %55 : vector<128x128xf32>
    %c0_72 = arith.constant 0 : index
    %c2_73 = arith.constant 2 : index
    %c2_74 = arith.constant 2 : index
    %c0_75 = arith.constant 0 : index
    %57 = vector.load %arg2[%c0_72, %c2_73, %c2_74, %c0_75] : memref<1x18x18x16xbf16, #tpu.memory_space<vmem>>, vector<1x8x16x16xbf16>
    %58 = vector.shape_cast %57 : vector<1x8x16x16xbf16> to vector<8x16x16xbf16>
    %59 = vector.shape_cast %58 : vector<8x16x16xbf16> to vector<128x16xbf16>
    %c2_76 = arith.constant 2 : index
    %c2_77 = arith.constant 2 : index
    %c0_78 = arith.constant 0 : index
    %c0_79 = arith.constant 0 : index
    %60 = vector.load %arg3[%c2_76, %c2_77, %c0_78, %c0_79] : memref<3x3x16x128xbf16, #tpu.memory_space<vmem>>, vector<1x1x16x128xbf16>
    %61 = vector.shape_cast %60 : vector<1x1x16x128xbf16> to vector<16x128xbf16>
    %cst_80 = arith.constant dense<0.000000e+00> : vector<128x128xf32>
    %62 = tpu.matmul %59, %61, %cst_80 {dimension_numbers = #tpu.dot_dimension_numbers<[1], [0], [0], [1], [0, 0, 1, 1], [], []>} : vector<128x16xbf16>, vector<16x128xbf16>, vector<128x128xf32> -> vector<128x128xf32>
    %63 = arith.addf %56, %62 : vector<128x128xf32>
    %64 = vector.broadcast %0 : vector<1x128xf32> to vector<128x128xf32>
    %65 = arith.mulf %63, %64 : vector<128x128xf32>
    %66 = vector.broadcast %1 : vector<1x128xf32> to vector<128x128xf32>
    %67 = arith.addf %65, %66 : vector<128x128xf32>
    %cst_81 = arith.constant 0.000000e+00 : f32
    %68 = vector.broadcast %cst_81 : f32 to vector<128x128xf32>
    %69 = arith.maximumf %67, %68 : vector<128x128xf32>
    %c0_82 = arith.constant 0 : index
    %c0_83 = arith.constant 0 : index
    %c0_84 = arith.constant 0 : index
    %70 = vector.load %arg6[%c0_82, %c0_83, %c0_84] : memref<1x256x128xf32, #tpu.memory_space<vmem>>, vector<1x128x128xf32>
    %71 = vector.shape_cast %70 : vector<1x128x128xf32> to vector<128x128xf32>
    %72 = vector.shape_cast %69 : vector<128x128xf32> to vector<1x128x128xf32>
    tpu.vector_store %arg6[%c0_82, %c0_83, %c0_84], %72 {strides = array<i32>} : memref<1x256x128xf32, #tpu.memory_space<vmem>>, vector<1x128x128xf32>,
    %c0_85 = arith.constant 0 : index
    %c8 = arith.constant 8 : index
    %c0_86 = arith.constant 0 : index
    %c0_87 = arith.constant 0 : index
    %73 = vector.load %arg2[%c0_85, %c8, %c0_86, %c0_87] : memref<1x18x18x16xbf16, #tpu.memory_space<vmem>>, vector<1x8x16x16xbf16>
    %74 = vector.shape_cast %73 : vector<1x8x16x16xbf16> to vector<8x16x16xbf16>
    %75 = vector.shape_cast %74 : vector<8x16x16xbf16> to vector<128x16xbf16>
    %c0_88 = arith.constant 0 : index
    %c0_89 = arith.constant 0 : index
    %c0_90 = arith.constant 0 : index
    %c0_91 = arith.constant 0 : index
    %76 = vector.load %arg3[%c0_88, %c0_89, %c0_90, %c0_91] : memref<3x3x16x128xbf16, #tpu.memory_space<vmem>>, vector<1x1x16x128xbf16>
    %77 = vector.shape_cast %76 : vector<1x1x16x128xbf16> to vector<16x128xbf16>
    %cst_92 = arith.constant dense<0.000000e+00> : vector<128x128xf32>
    %78 = tpu.matmul %75, %77, %cst_92 {dimension_numbers = #tpu.dot_dimension_numbers<[1], [0], [0], [1], [0, 0, 1, 1], [], []>} : vector<128x16xbf16>, vector<16x128xbf16>, vector<128x128xf32> -> vector<128x128xf32>
    %c0_93 = arith.constant 0 : index
    %c8_94 = arith.constant 8 : index
    %c1_95 = arith.constant 1 : index
    %c0_96 = arith.constant 0 : index
    %79 = vector.load %arg2[%c0_93, %c8_94, %c1_95, %c0_96] : memref<1x18x18x16xbf16, #tpu.memory_space<vmem>>, vector<1x8x16x16xbf16>
    %80 = vector.shape_cast %79 : vector<1x8x16x16xbf16> to vector<8x16x16xbf16>
    %81 = vector.shape_cast %80 : vector<8x16x16xbf16> to vector<128x16xbf16>
    %c0_97 = arith.constant 0 : index
    %c1_98 = arith.constant 1 : index
    %c0_99 = arith.constant 0 : index
    %c0_100 = arith.constant 0 : index
    %82 = vector.load %arg3[%c0_97, %c1_98, %c0_99, %c0_100] : memref<3x3x16x128xbf16, #tpu.memory_space<vmem>>, vector<1x1x16x128xbf16>
    %83 = vector.shape_cast %82 : vector<1x1x16x128xbf16> to vector<16x128xbf16>
    %cst_101 = arith.constant dense<0.000000e+00> : vector<128x128xf32>
    %84 = tpu.matmul %81, %83, %cst_101 {dimension_numbers = #tpu.dot_dimension_numbers<[1], [0], [0], [1], [0, 0, 1, 1], [], []>} : vector<128x16xbf16>, vector<16x128xbf16>, vector<128x128xf32> -> vector<128x128xf32>
    %85 = arith.addf %78, %84 : vector<128x128xf32>
    %c0_102 = arith.constant 0 : index
    %c8_103 = arith.constant 8 : index
    %c2_104 = arith.constant 2 : index
    %c0_105 = arith.constant 0 : index
    %86 = vector.load %arg2[%c0_102, %c8_103, %c2_104, %c0_105] : memref<1x18x18x16xbf16, #tpu.memory_space<vmem>>, vector<1x8x16x16xbf16>
    %87 = vector.shape_cast %86 : vector<1x8x16x16xbf16> to vector<8x16x16xbf16>
    %88 = vector.shape_cast %87 : vector<8x16x16xbf16> to vector<128x16xbf16>
    %c0_106 = arith.constant 0 : index
    %c2_107 = arith.constant 2 : index
    %c0_108 = arith.constant 0 : index
    %c0_109 = arith.constant 0 : index
    %89 = vector.load %arg3[%c0_106, %c2_107, %c0_108, %c0_109] : memref<3x3x16x128xbf16, #tpu.memory_space<vmem>>, vector<1x1x16x128xbf16>
    %90 = vector.shape_cast %89 : vector<1x1x16x128xbf16> to vector<16x128xbf16>
    %cst_110 = arith.constant dense<0.000000e+00> : vector<128x128xf32>
    %91 = tpu.matmul %88, %90, %cst_110 {dimension_numbers = #tpu.dot_dimension_numbers<[1], [0], [0], [1], [0, 0, 1, 1], [], []>} : vector<128x16xbf16>, vector<16x128xbf16>, vector<128x128xf32> -> vector<128x128xf32>
    %92 = arith.addf %85, %91 : vector<128x128xf32>
    %c0_111 = arith.constant 0 : index
    %c9 = arith.constant 9 : index
    %c0_112 = arith.constant 0 : index
    %c0_113 = arith.constant 0 : index
    %93 = vector.load %arg2[%c0_111, %c9, %c0_112, %c0_113] : memref<1x18x18x16xbf16, #tpu.memory_space<vmem>>, vector<1x8x16x16xbf16>
    %94 = vector.shape_cast %93 : vector<1x8x16x16xbf16> to vector<8x16x16xbf16>
    %95 = vector.shape_cast %94 : vector<8x16x16xbf16> to vector<128x16xbf16>
    %c1_114 = arith.constant 1 : index
    %c0_115 = arith.constant 0 : index
    %c0_116 = arith.constant 0 : index
    %c0_117 = arith.constant 0 : index
    %96 = vector.load %arg3[%c1_114, %c0_115, %c0_116, %c0_117] : memref<3x3x16x128xbf16, #tpu.memory_space<vmem>>, vector<1x1x16x128xbf16>
    %97 = vector.shape_cast %96 : vector<1x1x16x128xbf16> to vector<16x128xbf16>
    %cst_118 = arith.constant dense<0.000000e+00> : vector<128x128xf32>
    %98 = tpu.matmul %95, %97, %cst_118 {dimension_numbers = #tpu.dot_dimension_numbers<[1], [0], [0], [1], [0, 0, 1, 1], [], []>} : vector<128x16xbf16>, vector<16x128xbf16>, vector<128x128xf32> -> vector<128x128xf32>
    %99 = arith.addf %92, %98 : vector<128x128xf32>
    %c0_119 = arith.constant 0 : index
    %c9_120 = arith.constant 9 : index
    %c1_121 = arith.constant 1 : index
    %c0_122 = arith.constant 0 : index
    %100 = vector.load %arg2[%c0_119, %c9_120, %c1_121, %c0_122] : memref<1x18x18x16xbf16, #tpu.memory_space<vmem>>, vector<1x8x16x16xbf16>
    %101 = vector.shape_cast %100 : vector<1x8x16x16xbf16> to vector<8x16x16xbf16>
    %102 = vector.shape_cast %101 : vector<8x16x16xbf16> to vector<128x16xbf16>
    %c1_123 = arith.constant 1 : index
    %c1_124 = arith.constant 1 : index
    %c0_125 = arith.constant 0 : index
    %c0_126 = arith.constant 0 : index
    %103 = vector.load %arg3[%c1_123, %c1_124, %c0_125, %c0_126] : memref<3x3x16x128xbf16, #tpu.memory_space<vmem>>, vector<1x1x16x128xbf16>
    %104 = vector.shape_cast %103 : vector<1x1x16x128xbf16> to vector<16x128xbf16>
    %cst_127 = arith.constant dense<0.000000e+00> : vector<128x128xf32>
    %105 = tpu.matmul %102, %104, %cst_127 {dimension_numbers = #tpu.dot_dimension_numbers<[1], [0], [0], [1], [0, 0, 1, 1], [], []>} : vector<128x16xbf16>, vector<16x128xbf16>, vector<128x128xf32> -> vector<128x128xf32>
    %106 = arith.addf %99, %105 : vector<128x128xf32>
    %c0_128 = arith.constant 0 : index
    %c9_129 = arith.constant 9 : index
    %c2_130 = arith.constant 2 : index
    %c0_131 = arith.constant 0 : index
    %107 = vector.load %arg2[%c0_128, %c9_129, %c2_130, %c0_131] : memref<1x18x18x16xbf16, #tpu.memory_space<vmem>>, vector<1x8x16x16xbf16>
    %108 = vector.shape_cast %107 : vector<1x8x16x16xbf16> to vector<8x16x16xbf16>
    %109 = vector.shape_cast %108 : vector<8x16x16xbf16> to vector<128x16xbf16>
    %c1_132 = arith.constant 1 : index
    %c2_133 = arith.constant 2 : index
    %c0_134 = arith.constant 0 : index
    %c0_135 = arith.constant 0 : index
    %110 = vector.load %arg3[%c1_132, %c2_133, %c0_134, %c0_135] : memref<3x3x16x128xbf16, #tpu.memory_space<vmem>>, vector<1x1x16x128xbf16>
    %111 = vector.shape_cast %110 : vector<1x1x16x128xbf16> to vector<16x128xbf16>
    %cst_136 = arith.constant dense<0.000000e+00> : vector<128x128xf32>
    %112 = tpu.matmul %109, %111, %cst_136 {dimension_numbers = #tpu.dot_dimension_numbers<[1], [0], [0], [1], [0, 0, 1, 1], [], []>} : vector<128x16xbf16>, vector<16x128xbf16>, vector<128x128xf32> -> vector<128x128xf32>
    %113 = arith.addf %106, %112 : vector<128x128xf32>
    %c0_137 = arith.constant 0 : index
    %c10 = arith.constant 10 : index
    %c0_138 = arith.constant 0 : index
    %c0_139 = arith.constant 0 : index
    %114 = vector.load %arg2[%c0_137, %c10, %c0_138, %c0_139] : memref<1x18x18x16xbf16, #tpu.memory_space<vmem>>, vector<1x8x16x16xbf16>
    %115 = vector.shape_cast %114 : vector<1x8x16x16xbf16> to vector<8x16x16xbf16>
    %116 = vector.shape_cast %115 : vector<8x16x16xbf16> to vector<128x16xbf16>
    %c2_140 = arith.constant 2 : index
    %c0_141 = arith.constant 0 : index
    %c0_142 = arith.constant 0 : index
    %c0_143 = arith.constant 0 : index
    %117 = vector.load %arg3[%c2_140, %c0_141, %c0_142, %c0_143] : memref<3x3x16x128xbf16, #tpu.memory_space<vmem>>, vector<1x1x16x128xbf16>
    %118 = vector.shape_cast %117 : vector<1x1x16x128xbf16> to vector<16x128xbf16>
    %cst_144 = arith.constant dense<0.000000e+00> : vector<128x128xf32>
    %119 = tpu.matmul %116, %118, %cst_144 {dimension_numbers = #tpu.dot_dimension_numbers<[1], [0], [0], [1], [0, 0, 1, 1], [], []>} : vector<128x16xbf16>, vector<16x128xbf16>, vector<128x128xf32> -> vector<128x128xf32>
    %120 = arith.addf %113, %119 : vector<128x128xf32>
    %c0_145 = arith.constant 0 : index
    %c10_146 = arith.constant 10 : index
    %c1_147 = arith.constant 1 : index
    %c0_148 = arith.constant 0 : index
    %121 = vector.load %arg2[%c0_145, %c10_146, %c1_147, %c0_148] : memref<1x18x18x16xbf16, #tpu.memory_space<vmem>>, vector<1x8x16x16xbf16>
    %122 = vector.shape_cast %121 : vector<1x8x16x16xbf16> to vector<8x16x16xbf16>
    %123 = vector.shape_cast %122 : vector<8x16x16xbf16> to vector<128x16xbf16>
    %c2_149 = arith.constant 2 : index
    %c1_150 = arith.constant 1 : index
    %c0_151 = arith.constant 0 : index
    %c0_152 = arith.constant 0 : index
    %124 = vector.load %arg3[%c2_149, %c1_150, %c0_151, %c0_152] : memref<3x3x16x128xbf16, #tpu.memory_space<vmem>>, vector<1x1x16x128xbf16>
    %125 = vector.shape_cast %124 : vector<1x1x16x128xbf16> to vector<16x128xbf16>
    %cst_153 = arith.constant dense<0.000000e+00> : vector<128x128xf32>
    %126 = tpu.matmul %123, %125, %cst_153 {dimension_numbers = #tpu.dot_dimension_numbers<[1], [0], [0], [1], [0, 0, 1, 1], [], []>} : vector<128x16xbf16>, vector<16x128xbf16>, vector<128x128xf32> -> vector<128x128xf32>
    %127 = arith.addf %120, %126 : vector<128x128xf32>
    %c0_154 = arith.constant 0 : index
    %c10_155 = arith.constant 10 : index
    %c2_156 = arith.constant 2 : index
    %c0_157 = arith.constant 0 : index
    %128 = vector.load %arg2[%c0_154, %c10_155, %c2_156, %c0_157] : memref<1x18x18x16xbf16, #tpu.memory_space<vmem>>, vector<1x8x16x16xbf16>
    %129 = vector.shape_cast %128 : vector<1x8x16x16xbf16> to vector<8x16x16xbf16>
    %130 = vector.shape_cast %129 : vector<8x16x16xbf16> to vector<128x16xbf16>
    %c2_158 = arith.constant 2 : index
    %c2_159 = arith.constant 2 : index
    %c0_160 = arith.constant 0 : index
    %c0_161 = arith.constant 0 : index
    %131 = vector.load %arg3[%c2_158, %c2_159, %c0_160, %c0_161] : memref<3x3x16x128xbf16, #tpu.memory_space<vmem>>, vector<1x1x16x128xbf16>
    %132 = vector.shape_cast %131 : vector<1x1x16x128xbf16> to vector<16x128xbf16>
    %cst_162 = arith.constant dense<0.000000e+00> : vector<128x128xf32>
    %133 = tpu.matmul %130, %132, %cst_162 {dimension_numbers = #tpu.dot_dimension_numbers<[1], [0], [0], [1], [0, 0, 1, 1], [], []>} : vector<128x16xbf16>, vector<16x128xbf16>, vector<128x128xf32> -> vector<128x128xf32>
    %134 = arith.addf %127, %133 : vector<128x128xf32>
    %135 = vector.broadcast %0 : vector<1x128xf32> to vector<128x128xf32>
    %136 = arith.mulf %134, %135 : vector<128x128xf32>
    %137 = vector.broadcast %1 : vector<1x128xf32> to vector<128x128xf32>
    %138 = arith.addf %136, %137 : vector<128x128xf32>
    %cst_163 = arith.constant 0.000000e+00 : f32
    %139 = vector.broadcast %cst_163 : f32 to vector<128x128xf32>
    %140 = arith.maximumf %138, %139 : vector<128x128xf32>
    %c0_164 = arith.constant 0 : index
    %c128 = arith.constant 128 : index
    %c0_165 = arith.constant 0 : index
    %141 = vector.load %arg6[%c0_164, %c128, %c0_165] : memref<1x256x128xf32, #tpu.memory_space<vmem>>, vector<1x128x128xf32>
    %142 = vector.shape_cast %141 : vector<1x128x128xf32> to vector<128x128xf32>
    %143 = vector.shape_cast %140 : vector<128x128xf32> to vector<1x128x128xf32>
    tpu.vector_store %arg6[%c0_164, %c128, %c0_165], %143 {strides = array<i32>} : memref<1x256x128xf32, #tpu.memory_space<vmem>>, vector<1x128x128xf32>,
    return
  }
  func.func @transform_0(%arg0: i32, %arg1: i32) -> (i32, i32, i32, i32) {
    %c0_i32 = arith.constant 0 : i32
    %c0_i32_0 = arith.constant 0 : i32
    %c0_i32_1 = arith.constant 0 : i32
    %c0_i32_2 = arith.constant 0 : i32
    return %arg1, %c0_i32, %c0_i32_0, %c0_i32_1 : i32, i32, i32, i32
  }
  func.func @transform_1(%arg0: i32, %arg1: i32) -> (i32, i32, i32, i32) {
    %c0_i32 = arith.constant 0 : i32
    %c0_i32_0 = arith.constant 0 : i32
    %c0_i32_1 = arith.constant 0 : i32
    %c0_i32_2 = arith.constant 0 : i32
    return %c0_i32, %c0_i32_0, %c0_i32_1, %arg0 : i32, i32, i32, i32
  }
  func.func @transform_2(%arg0: i32, %arg1: i32) -> (i32, i32) {
    %c0_i32 = arith.constant 0 : i32
    %c0_i32_0 = arith.constant 0 : i32
    return %c0_i32, %arg0 : i32, i32
  }
  func.func @transform_3(%arg0: i32, %arg1: i32) -> (i32, i32) {
    %c0_i32 = arith.constant 0 : i32
    %c0_i32_0 = arith.constant 0 : i32
    return %c0_i32, %arg0 : i32, i32
  }
  func.func @transform_4(%arg0: i32, %arg1: i32) -> (i32, i32, i32) {
    %c0_i32 = arith.constant 0 : i32
    %c0_i32_0 = arith.constant 0 : i32
    return %arg1, %c0_i32, %arg0 : i32, i32, i32
  }
}

</mosaic_0001>

<bundles_post_ra>
// kernel: tpu_custom_call.1
= control target key start
LH: loop header
LB: loop body
LE: loop exit
PB: predicated region body
PF: predicated region fallthrough
CT: control target
= control target key end

     0   :  { %9 = vsyncpa [#allocation3], 0  ;;  %s9338_s0 = inlined_call_operand.vmem [shape: bf16[2,18,18,16], index: 0, kind: input, shape index: {}]   ;;  %s9339_s1 = inlined_call_operand.vmem [shape: bf16[3,3,16,128], index: 1, kind: input, shape index: {}]   ;;  %s9340_s2 = inlined_call_operand.vmem [shape: f32[1,128], index: 2, kind: input, shape index: {}]   ;;  %s9341_s3 = inlined_call_operand.vmem [shape: f32[1,128], index: 3, kind: input, shape index: {}]   ;;  %s9342_s4 = inlined_call_operand.hbm [shape: f32[2,256,128], index: 4, kind: output, shape index: {}]  }
   0x1   :  { %11 = vsyncpa [#allocation3 + $0x1], 0  ;;  %s6834_s15 = smov 0   ;;  %s6836_s16 = smov 0  }
   0x2   :  { %s6838_s17 = smov 0   ;;  %s6840_s18 = smov 0  }
   0x3   :  { %s6842_s19 = smov 0   ;;  %s6844_s20 = smov 0  }
   0x4 LB: > { %s5490_s21 = sadd.s32 4294967295, %s6804_s20   ;;  %s5491_s22 = sadd.s32 4294967294, %s6804_s20   ;;  %s6804_s20 = sphi %s6844_s20, %s17_s20   ;;  %s6800_s19 = sphi %s6842_s19, %s9460_s19   ;;  %s6796_s18 = sphi %s6840_s18, %s9459_s18   ;;  %s6792_s17 = sphi %s6838_s17, %s9458_s17   ;;  %s6788_s16 = sphi %s6836_s16, %s9457_s16   ;;  %s6784_s15 = sphi %s6834_s15, %s9456_s15  }
   0x5   : > { %s26_s23 = sadd.s32 1, %s6800_s19  ;;  %s142_s24 = sadd.s32 1, %s6792_s17 }
   0x6   : > { %p27_p0 = scmp.ge.s32.totalorder %s26_s23, 2  ;;  %p152_p1 = scmp.ne.s32.totalorder %s6792_s17, %s6788_s16 }
   0x7   : > { %p153_p2 = scmp.eq.s32.totalorder %s5490_s21, 1  ;;  %p158_p3 = scmp.ne.s32.totalorder %s6788_s16, %s6784_s15 }
   0x8   : > { %s9462_s23 = smov (%p27_p0, %s26_s23), 0  ;;  %p159_p5 = scmp.eq.s32.totalorder %s5491_s22, 1 }
   0x9   : > { %p6874_p4 = por %p153_p2, %p152_p1  ;;  %s137_s26 = ssub.s32 %s6800_s19, %s9462_s23 }
   0xa   : > { %p5497_p6 = scmp.ge.s32.totalorder %s6804_s20, 1  ;;  %p140_p7 = scmp.eq.s32.totalorder %s137_s26, 0 }
   0xb   : > { %p6881_p8 = por %p159_p5, %p158_p3  ;;  %p204_p9 = scmp.lt.s32.totalorder %s6804_s20, 3 }
   0xc   : > { %s6887_s28 = scalar_select %p140_p7, %s6792_s17, %s142_s24  }
   0xd   : > { %p205_p10 = pnand %p5497_p6, %p204_p9 }
   0xf   : > { %208 = sbr.rel (%p205_p10) target bundleno = 563 (0x233), region = 36 }
  0x14   : > { %v6662_v0 = vld [vmem:[%s9339_s1] sm:$0xff]   ;;  %p240_p11 = scmp.lt.s32.totalorder %s6796_s18, 1  ;;  %v6663_v1 = vld [vmem:[%s9339_s1 + $0x8] sm:$0xff]   ;;  %v6900_v2 = vld [vmem:[%s9339_s1 + $0x10] sm:$0xff]   ;;  %vm512_vm0 = vcmask 130048   ;;  %vm825_vm4 = vcmask 1042432  }
  0x15   : > { %6298 = vmatprep.subr.bf16.mxu1 %v6662_v0  ;;  %6280 = vmatprep.subr.bf16.mxu0 %v6663_v1  ;;  %v6667_v3 = vld [vmem:[%s9339_s1 + $0x18] sm:$0xff]   ;;  %vm284_vm1 = vsmask.f32 3328  ;;  %vm285_vm2 = vsmask.f32 7440  ;;  %v6946_v30 = vld [vmem:[%s9339_s1 + $0x28] sm:$0xff]  }
  0x16   : > { %s241_s7 = scalar_select %p240_p11, %s6796_s18, 1  ;;  %6299 = vmatpush3.bf16.msra.mxu1 %v6662_v0  ;;  %6281 = vmatpush3.bf16.msra.mxu0 %v6663_v1  ;;  %vm6950_vm3 = vmor %vm284_vm1, %vm285_vm2  ;;  %vm826_vm5 = vcmask 1046532  }
  0x17   : > { %6316 = vmatprep.subr.bf16.mxu0 %v6900_v2  ;;  %6334 = vmatprep.subr.bf16.mxu1 %v6667_v3  ;;  %vm7067_vm6 = vmor %vm825_vm4, %vm826_vm5  ;;  %s6117_s30 = sshll.u32 %s6796_s18, 12 }
  0x18   : > { %s6604_s10 = smul.u32 216, %s241_s7  ;;  %s9285_s8 = scalar_lea.hbm %s9342_s4, %s6117_s30 }
  0x1a   : > { %s6909_s21 = scalar_lea.vmem %s9338_s0, %s6604_s10  ;;  %s6806_s10 = smov [#allocation2]  }
  0x1b   : > { %v258_v4 = vld [vmem:[%s6909_s21] sm:$0xf]  ;;  %v6913_v5 = vld [vmem:[%s6909_s21 + $0x4] sm:$0xf]  ;;  %v260_v6 = vld [vmem:[%s6909_s21 + $0xc] sm:$0xf] }
  0x1c   : > { %v288_v7 = vshrl.u32 %v258_v4, 16  ;;  %v291_v8 = vshll.u32 %v258_v4, 16  ;;  %v301_v9 = vshrl.u32 %v6913_v5, 16  ;;  %v5519_v10 = vcombine.low %v258_v4, %v6913_v5  ;;  %v6919_v11 = vld [vmem:[%s6909_s21 + $0x10] sm:$0xf]  ;;  %s6732_s11 = sshll.u32 %s6806_s10, 4  ;;  %s6733_s11 = int_to_ptr.vmem [resolvable:$false] %s6732_s11 }
  0x1d   : > { %v830_v12 = vrot.slane %v6913_v5, 5  ;;  %v312_v13 = vshrl.u32 %v260_v6, 16  ;;  %v315_v14 = vshll.u32 %v260_v6, 16  ;;  %v325_v15 = vshrl.u32 %v6919_v11, 16  ;;  %v6924_v16 = vld [vmem:[%s6909_s21 + $0x8] sm:$0x1] }
  0x1e   : > { %v290_v17 = vrot.slane %v288_v7, 4  ;;  %v293_v18 = vrot.slane %v291_v8, 5  ;;  %6300 = vmatprep.mubr.msk.bf16.mxu1 %vm512_vm0, %v5519_v10  ;;  %v5520_v19 = vcombine.low %v260_v6, %v6919_v11  ;;  %v837_v20 = vrot.slane %v6919_v11, 5  ;;  %v6935_v25 = vld [vmem:[%s6909_s21 + $0x14] sm:$0x1]  ;;  %s6734_s12 = scalar_lea.vmem %s6733_s11, 8192 }
  0x1f   : > { %v6931_v21 = vrot.slane %v830_v12, 4  ;;  %v314_v22 = vrot.slane %v312_v13, 4  ;;  %v317_v23 = vrot.slane %v315_v14, 5  ;;  %v297_v24 = vshll.u32 %v6913_v5, 16  ;;  %v262_v36 = vld [vmem:[%s6909_s21 + $0x18] sm:$0xf] }
  0x20   : > { %6301 = vmatmul.mubr.msk.bf16.vlgmr.msra.gmra.mxu1 %vm512_vm0, %v5520_v19  ;;  %v6940_v26 = vrot.slane %v837_v20, 4  ;;  %v294_v27 = vor.u32 %v293_v18, %v290_v17  ;;  %v303_v28 = vrot.slane %v301_v9, 4  ;;  %v307_v29 = vshll.u32 %v6924_v16, 16  ;;  %v6959_v41 = vld [vmem:[%s6909_s21 + $0x1c] sm:$0xf] }
  0x21   : > { %v299_v32 = vrot.slane %v297_v24, 5  ;;  %v833_v33 = vrot.slane %v6924_v16, 5  ;;  %v318_v34 = vor.u32 %v317_v23, %v314_v22  ;;  %v321_v35 = vshll.u32 %v6919_v11, 16  ;;  %6335 = vmatpush3.bf16.msra.mxu1 %v6667_v3  ;;  %v264_v46 = vld [vmem:[%s6909_s21 + $0x24] sm:$0xf] }
  0x22   : > { %v295_v37 = vrot.slane %v294_v27, 4  ;;  %v309_v38 = vrot.slane %v307_v29, 5  ;;  %v327_v39 = vrot.slane %v325_v15, 4  ;;  %v331_v40 = vshll.u32 %v6935_v25, 16  ;;  %6370 = vmatprep.subr.bf16.mxu1 %v6946_v30  ;;  %v6967_v51 = vld [vmem:[%s6909_s21 + $0x28] sm:$0xf] }
  0x23   : > { %v304_v42 = vor.u32 %v303_v28, %v299_v32  ;;  %v319_v43 = vrot.slane %v318_v34, 4  ;;  %v323_v44 = vrot.slane %v321_v35, 5  ;;  %v840_v45 = vrot.slane %v6935_v25, 5  ;;  %v6977_v0 = vld [vmem:[%s6909_s21 + $0x20] sm:$0x1]  ;;  %v7112_v25 = vld [vmem:[%s9339_s1 + $0x38] sm:$0xff]  }
  0x24   : > { %v300_v47 = vsel %vm6950_vm3, %v295_v37, %v299_v32  ;;  %v333_v48 = vrot.slane %v331_v40, 5  ;;  %v336_v49 = vshrl.u32 %v262_v36, 16  ;;  %v339_v50 = vshll.u32 %v262_v36, 16  ;;  %v6982_v7 = vld [vmem:[%s6909_s21 + $0x2c] sm:$0x1]  ;;  %v6995_v22 = vld [vmem:[%s9339_s1 + $0x20] sm:$0xff]  }
  0x25   : > { %v305_v52 = vrot.slane %v304_v42, 4  ;;  %v324_v53 = vsel %vm6950_vm3, %v319_v43, %v323_v44  ;;  %v328_v54 = vor.u32 %v327_v39, %v323_v44  ;;  %v349_v55 = vshrl.u32 %v6959_v41, 16  ;;  %v266_v14 = vld [vmem:[%s6909_s21 + $0x30] sm:$0xf]  ;;  %v6999_v29 = vld [vmem:[%s6909_s21 + $0x34] sm:$0xf] }
  0x26   : > { %v338_v56 = vrot.slane %v336_v49, 4  ;;  %v341_v57 = vrot.slane %v339_v50, 5  ;;  %v5521_v58 = vcombine.low %v262_v36, %v6959_v41  ;;  %v360_v59 = vshrl.u32 %v264_v46, 16  ;;  %v268_v37 = vld [vmem:[%s6909_s21 + $0x3c] sm:$0xf] }
  0x27   : > { %v310_v60 = vsel %vm6950_vm3, %v305_v52, %v309_v38  ;;  %v329_v61 = vrot.slane %v328_v54, 4  ;;  %v363_v62 = vshll.u32 %v264_v46, 16  ;;  %v373_v63 = vshrl.u32 %v6967_v51, 16  ;;  %v7007_v43 = vld [vmem:[%s6909_s21 + $0x40] sm:$0xf] }
  0x28   : > { %v5502_v1 = vcombine.low %v300_v47, %v310_v60  ;;  %6304 = vmatprep.mubr.msk.bf16.mxu1 %vm512_vm0, %v5521_v58  ;;  %v362_v3 = vrot.slane %v360_v59, 4  ;;  %v5522_v4 = vcombine.low %v264_v46, %v6967_v51  ;;  %v342_v6 = vor.u32 %v341_v57, %v338_v56  ;;  %v7011_v49 = vld [vmem:[%s6909_s21 + $0x38] sm:$0x1] }
  0x29   : > { %v334_v8 = vsel %vm6950_vm3, %v329_v61, %v333_v48  ;;  %v365_v9 = vrot.slane %v363_v62, 5  ;;  %v345_v10 = vshll.u32 %v6959_v41, 16  ;;  %v351_v13 = vrot.slane %v349_v55, 4  ;;  %v7024_v62 = vld [vmem:[%s6909_s21 + $0x44] sm:$0x1] }
  0x2a   : > { %6282 = vmatprep.mubr.msk.bf16.mxu0 %vm512_vm0, %v5502_v1  ;;  %v5503_v15 = vcombine.low %v324_v53, %v334_v8  ;;  %6305 = vmatmul.mubr.msk.bf16.gmra.mxu1 %vm512_vm0, %v5522_v4  ;;  %v343_v17 = vrot.slane %v342_v6, 4  ;;  %v355_v18 = vshll.u32 %v6977_v0, 16  ;;  %v369_v19 = vshll.u32 %v6967_v51, 16  ;;  %v7031_v8 = vld [vmem:[%s6909_s21 + $0x4c] sm:$0xf] }
  0x2b   : > { %v347_v23 = vrot.slane %v345_v10, 5  ;;  %v366_v24 = vor.u32 %v365_v9, %v362_v3  ;;  %v375_v27 = vrot.slane %v373_v63, 4  ;;  %v379_v28 = vshll.u32 %v6982_v7, 16  ;;  %v270_v63 = vld [vmem:[%s6909_s21 + $0x48] sm:$0xf] }
  0x2c   : > { %6283 = vmatmul.mubr.msk.bf16.vlgmr.msra.gmra.mxu0 %vm512_vm0, %v5503_v15  ;;  %v357_v32 = vrot.slane %v355_v18, 5  ;;  %v371_v34 = vrot.slane %v369_v19, 5  ;;  %v384_v35 = vshrl.u32 %v266_v14, 16  ;;  %v387_v36 = vshll.u32 %v266_v14, 16 }
  0x2d   : > { %6317 = vmatpush3.bf16.msra.mxu0 %v6900_v2  ;;  %v348_v38 = vsel %vm6950_vm3, %v343_v17, %v347_v23  ;;  %v352_v39 = vor.u32 %v351_v13, %v347_v23  ;;  %v367_v40 = vrot.slane %v366_v24, 4  ;;  %v381_v42 = vrot.slane %v379_v28, 5 }
  0x2e   : > { %v376_v44 = vor.u32 %v375_v27, %v371_v34  ;;  %v386_v46 = vrot.slane %v384_v35, 4  ;;  %v389_v47 = vrot.slane %v387_v36, 5  ;;  %v397_v48 = vshrl.u32 %v6999_v29, 16  ;;  %6352 = vmatprep.subr.bf16.mxu0 %v6995_v22 }
  0x2f   : > { %v353_v50 = vrot.slane %v352_v39, 4  ;;  %v372_v2 = vsel %vm6950_vm3, %v367_v40, %v371_v34  ;;  %v5523_v52 = vcombine.low %v266_v14, %v6999_v29  ;;  %v408_v53 = vshrl.u32 %v268_v37, 16  ;;  %v7042_v34 = vld [vmem:[%s6909_s21 + $0x58] sm:$0xf]  ;;  %v7045_v39 = vld [vmem:[%s6909_s21 + $0x50] sm:$0x1] }
  0x30   : > { %v377_v54 = vrot.slane %v376_v44, 4  ;;  %v411_v55 = vshll.u32 %v268_v37, 16  ;;  %v421_v56 = vshrl.u32 %v7007_v43, 16  ;;  %v5524_v57 = vcombine.low %v268_v37, %v7007_v43 }
  0x31   : > { %v358_v58 = vsel %vm6950_vm3, %v353_v50, %v357_v32  ;;  %6308 = vmatprep.mubr.msk.bf16.mxu1 %vm512_vm0, %v5523_v52  ;;  %v410_v59 = vrot.slane %v408_v53, 4  ;;  %v390_v60 = vor.u32 %v389_v47, %v386_v46  ;;  %v393_v61 = vshll.u32 %v6999_v29, 16  ;;  %v272_v32 = vld [vmem:[%s6909_s21 + $0x54] sm:$0xf]  ;;  %v6674_v47 = vld [vmem:[%s6909_s21 + $0xc] sm:$0xff]  }
  0x32   : > { %v5504_v1 = vcombine.low %v348_v38, %v358_v58  ;;  %v382_v3 = vsel %vm6950_vm3, %v377_v54, %v381_v42  ;;  %v413_v4 = vrot.slane %v411_v55, 5  ;;  %6309 = vmatmul.mubr.msk.bf16.gmra.mxu1 %vm512_vm0, %v5524_v57  ;;  %v399_v6 = vrot.slane %v397_v48, 4  ;;  %v7058_v57 = vld [vmem:[%s6909_s21 + $0x5c] sm:$0x1]  ;;  %v801_v58 = vld [vmem:[%s6909_s21] sm:$0xe] }
  0x33   : > { %v5505_v9 = vcombine.low %v372_v2, %v382_v3  ;;  %v391_v10 = vrot.slane %v390_v60, 4  ;;  %v395_v13 = vrot.slane %v393_v61, 5  ;;  %v403_v14 = vshll.u32 %v7011_v49, 16 }
  0x34   : > { %6286 = vmatprep.mubr.msk.bf16.mxu0 %vm512_vm0, %v5504_v1  ;;  %v414_v15 = vor.u32 %v413_v4, %v410_v59  ;;  %v417_v17 = vshll.u32 %v7007_v43, 16  ;;  %v423_v18 = vrot.slane %v421_v56, 4  ;;  %v427_v19 = vshll.u32 %v7024_v62, 16  ;;  %v802_v1 = vld [vmem:[%s6909_s21 + $0xc] sm:$0xe] }
  0x35   : > { %6287 = vmatmul.mubr.msk.bf16.gmra.mxu0 %vm512_vm0, %v5505_v9  ;;  %v396_v23 = vsel %vm6950_vm3, %v391_v10, %v395_v13  ;;  %v400_v24 = vor.u32 %v399_v6, %v395_v13  ;;  %v405_v27 = vrot.slane %v403_v14, 5  ;;  %v432_v28 = vshrl.u32 %v270_v63, 16 }
  0x36   : > { %v415_v35 = vrot.slane %v414_v15, 4  ;;  %v419_v36 = vrot.slane %v417_v17, 5  ;;  %v429_v37 = vrot.slane %v427_v19, 5  ;;  %v435_v38 = vshll.u32 %v270_v63, 16 }
  0x37   : > { %v401_v40 = vrot.slane %v400_v24, 4  ;;  %v434_v42 = vrot.slane %v432_v28, 4  ;;  %v445_v44 = vshrl.u32 %v7031_v8, 16  ;;  %v5525_v46 = vcombine.low %v270_v63, %v7031_v8 }
  0x38   : > { %v420_v48 = vsel %vm6950_vm3, %v415_v35, %v419_v36  ;;  %v424_v50 = vor.u32 %v423_v18, %v419_v36  ;;  %v437_v2 = vrot.slane %v435_v38, 5  ;;  %v456_v52 = vshrl.u32 %v272_v32, 16 }
  0x39   : > { %v406_v53 = vsel %vm6950_vm3, %v401_v40, %v405_v27  ;;  %6312 = vmatprep.mubr.msk.bf16.mxu1 %vm512_vm0, %v5525_v46  ;;  %v459_v54 = vshll.u32 %v272_v32, 16  ;;  %v469_v55 = vshrl.u32 %v7042_v34, 16  ;;  %v5526_v56 = vcombine.low %v272_v32, %v7042_v34  ;;  %v6675_v40 = vld [vmem:[%s6909_s21 + $0x18] sm:$0xff]  }
  0x3a   : > { %v5506_v59 = vcombine.low %v396_v23, %v406_v53  ;;  %v425_v60 = vrot.slane %v424_v50, 4  ;;  %v458_v61 = vrot.slane %v456_v52, 4  ;;  %v438_v63 = vor.u32 %v437_v2, %v434_v42 }
  0x3b   : > { %v461_v3 = vrot.slane %v459_v54, 5  ;;  %6313 = vmatmul.mubr.msk.bf16.gmra.mxu1 %vm512_vm0, %v5526_v56  ;;  %v441_v4 = vshll.u32 %v7031_v8, 16  ;;  %v447_v6 = vrot.slane %v445_v44, 4  ;;  %v451_v9 = vshll.u32 %v7045_v39, 16  ;;  %v803_v44 = vld [vmem:[%s6909_s21 + $0x18] sm:$0xe] }
  0x3c   : > { %6290 = vmatprep.mubr.msk.bf16.mxu0 %vm512_vm0, %v5506_v59  ;;  %v430_v13 = vsel %vm6950_vm3, %v425_v60, %v429_v37  ;;  %v439_v14 = vrot.slane %v438_v63, 4  ;;  %v465_v15 = vshll.u32 %v7042_v34, 16  ;;  %v471_v17 = vrot.slane %v469_v55, 4  ;;  %6336 = vmatprep.mubr.msk.bf16.mxu1 %vm512_vm0, %v6674_v47 }
  0x3d   : > { %v5507_v18 = vcombine.low %v420_v48, %v430_v13  ;;  %v443_v19 = vrot.slane %v441_v4, 5  ;;  %v453_v23 = vrot.slane %v451_v9, 5  ;;  %v462_v24 = vor.u32 %v461_v3, %v458_v61  ;;  %v804_v48 = vld [vmem:[%s6909_s21 + $0x24] sm:$0xe]  ;;  %v806_v61 = vld [vmem:[%s6909_s21 + $0x3c] sm:$0xe] }
  0x3e   : > { %v467_v27 = vrot.slane %v465_v15, 5  ;;  %v475_v28 = vshll.u32 %v7058_v57, 16  ;;  %v5536_v32 = vrot.slane %v801_v58, 9  ;;  %v834_v35 = vsel %vm7067_vm6, %v6931_v21, %v833_v33  ;;  %v6678_v33 = vld [vmem:[%s6909_s21 + $0x24] sm:$0xff]   ;;  %v6679_v13 = vld [vmem:[%s6909_s21 + $0x30] sm:$0xff]  }
  0x3f   : > { %6291 = vmatmul.mubr.msk.bf16.gmra.mxu0 %vm512_vm0, %v5507_v18  ;;  %v444_v36 = vsel %vm6950_vm3, %v439_v14, %v443_v19  ;;  %v448_v37 = vor.u32 %v447_v6, %v443_v19  ;;  %v463_v38 = vrot.slane %v462_v24, 4  ;;  %v5537_v42 = vrot.slane %v802_v1, 9  ;;  %v807_v9 = vld [vmem:[%s6909_s21 + $0x48] sm:$0xe]  ;;  %v808_v18 = vld [vmem:[%s6909_s21 + $0x54] sm:$0xe] }
  0x40   : > { %v472_v46 = vor.u32 %v471_v17, %v467_v27  ;;  %v477_v47 = vrot.slane %v475_v28, 5  ;;  %v831_v16 = vsel %vm7067_vm6, %v5536_v32, %v830_v12  ;;  %v7096_v21 = vsel %vm7067_vm6, %v6940_v26, %v840_v45  ;;  %v805_v12 = vld [vmem:[%s6909_s21 + $0x30] sm:$0xe] }
  0x41   : > { %v449_v50 = vrot.slane %v448_v37, 4  ;;  %v468_v2 = vsel %vm6950_vm3, %v463_v38, %v467_v27  ;;  %v5546_v52 = vcombine.low %v831_v16, %v834_v35  ;;  %v7106_v5 = vsel %vm7067_vm6, %v5537_v42, %v837_v20  ;;  %v5599_v27 = vld [vmem:[%s6909_s21 + $0x10] sm:$0xf]  ;;  %v5641_v42 = vld [vmem:[%s6909_s21 + $0xc] sm:$0xe] }
  0x42   : > { %v473_v26 = vrot.slane %v472_v46, 4  ;;  %v5547_v45 = vcombine.low %v7106_v5, %v7096_v21  ;;  %v5538_v53 = vrot.slane %v803_v44, 9  ;;  %v844_v54 = vrot.slane %v6959_v41, 5  ;;  %v5642_v16 = vld [vmem:[%s6909_s21 + $0x18] sm:$0xe] }
  0x43   : > { %v454_v11 = vsel %vm6950_vm3, %v449_v50, %v453_v23  ;;  %6337 = vmatmul.mubr.msk.bf16.vlgmr.msra.gmra.mxu1 %vm512_vm0, %v6675_v40  ;;  %v847_v20 = vrot.slane %v6977_v0, 5  ;;  %v5539_v55 = vrot.slane %v804_v48, 9  ;;  %v851_v56 = vrot.slane %v6967_v51, 5 }
  0x44   : > { %v5508_v58 = vcombine.low %v444_v36, %v454_v11  ;;  %v478_v59 = vsel %vm6950_vm3, %v473_v26, %v477_v47  ;;  %6371 = vmatpush3.bf16.msra.mxu1 %v6946_v30  ;;  %6340 = vmatprep.mubr.msk.bf16.mxu1 %vm512_vm0, %v6678_v33  ;;  %v7128_v41 = vsel %vm7067_vm6, %v5538_v53, %v844_v54  ;;  %v846_v60 = vrot.slane %v844_v54, 4  ;;  %v5600_v36 = vld [vmem:[%s6909_s21 + $0x14] sm:$0x1]  ;;  %v7187_v47 = vld [vmem:[%s6909_s21 + $0x1c] sm:$0xf] }
  0x45   : > { %v5509_v0 = vcombine.low %v468_v2, %v478_v59  ;;  %v7133_v51 = vsel %vm7067_vm6, %v5539_v55, %v851_v56  ;;  %v853_v63 = vrot.slane %v851_v56, 4  ;;  %v854_v1 = vrot.slane %v6982_v7, 5  ;;  %6406 = vmatprep.subr.bf16.mxu1 %v7112_v25  ;;  %v5603_v2 = vld [vmem:[%s6909_s21 + $0x20] sm:$0x1]  ;;  %v5598_v54 = vld [vmem:[%s6909_s21 + $0xc] sm:$0xf] }
  0x46   : > { %6294 = vmatprep.mubr.msk.bf16.mxu0 %vm512_vm0, %v5508_v58  ;;  %v848_v30 = vsel %vm7067_vm6, %v846_v60, %v847_v20  ;;  %v5540_v3 = vrot.slane %v805_v12, 9  ;;  %v858_v4 = vrot.slane %v6999_v29, 5  ;;  %v861_v6 = vrot.slane %v7011_v49, 5  ;;  %v6680_v49 = vld [vmem:[%s6909_s21 + $0x3c] sm:$0xff]   ;;  %v7207_v11 = vld [vmem:[%s9339_s1 + $0x30] sm:$0xff]   ;;  %v6681_v58 = vld [vmem:[%s6909_s21 + $0x48] sm:$0xff]  }
  0x47   : > { %6295 = vmatmul.mubr.msk.bf16.gmra.mxu0 %vm512_vm0, %v5509_v0  ;;  %v5548_v7 = vcombine.low %v7128_v41, %v848_v30  ;;  %v7148_v14 = vsel %vm7067_vm6, %v853_v63, %v854_v1  ;;  %v5541_v15 = vrot.slane %v806_v61, 9  ;;  %v865_v17 = vrot.slane %v7007_v43, 5  ;;  %v6682_v0 = vld [vmem:[%s6909_s21 + $0x54] sm:$0xff]  }
  0x48   : > { %6318 = vmatprep.mubr.msk.bf16.mxu0 %vm512_vm0, %v5546_v52  ;;  %v5549_v29 = vcombine.low %v7133_v51, %v7148_v14  ;;  %v7158_v19 = vsel %vm7067_vm6, %v5540_v3, %v858_v4  ;;  %v860_v23 = vrot.slane %v858_v4, 4  ;;  %v868_v24 = vrot.slane %v7024_v62, 5  ;;  %v5604_v14 = vld [vmem:[%s6909_s21 + $0x24] sm:$0xf] }
  0x49   : > { %v7164_v43 = vsel %vm7067_vm6, %v5541_v15, %v865_v17  ;;  %v867_v28 = vrot.slane %v865_v17, 4  ;;  %v5542_v32 = vrot.slane %v807_v9, 9  ;;  %v872_v35 = vrot.slane %v7031_v8, 5  ;;  %v5643_v15 = vld [vmem:[%s6909_s21 + $0x24] sm:$0xe] }
  0x4a   : > { %v7170_v37 = vsel %vm7067_vm6, %v860_v23, %v861_v6  ;;  %v875_v38 = vrot.slane %v7045_v39, 5  ;;  %v5543_v62 = vrot.slane %v808_v18, 9  ;;  %v879_v40 = vrot.slane %v7042_v34, 5 }
  0x4b   : > { %6341 = vmatmul.mubr.msk.bf16.gmra.mxu1 %vm512_vm0, %v6679_v13  ;;  %v5550_v44 = vcombine.low %v7158_v19, %v7170_v37  ;;  %v7180_v8 = vsel %vm7067_vm6, %v867_v28, %v868_v24  ;;  %v7184_v46 = vsel %vm7067_vm6, %v5542_v32, %v872_v35  ;;  %v874_v39 = vrot.slane %v872_v35, 4  ;;  %v7248_v24 = vld [vmem:[%s6909_s21 + $0x28] sm:$0xf] }
  0x4c   : > { %6344 = vmatprep.mubr.msk.bf16.mxu1 %vm512_vm0, %v6680_v49  ;;  %v5551_v34 = vcombine.low %v7164_v43, %v7180_v8  ;;  %v7195_v33 = vsel %vm7067_vm6, %v5543_v62, %v879_v40  ;;  %v881_v48 = vrot.slane %v879_v40, 4  ;;  %v882_v50 = vrot.slane %v7058_v57, 5 }
  0x4d   : > { %v7201_v52 = vsel %vm7067_vm6, %v874_v39, %v875_v38  ;;  %v5649_v12 = vrot.slane %v5641_v42, 9  ;;  %v1677_v26 = vrot.slane %v5599_v27, 5  ;;  %v1680_v53 = vrot.slane %v5600_v36, 5  ;;  %v6683_v38 = vld [vmem:[%s6909_s21 + $0x60] sm:$0xff]  }
  0x4e   : > { %v5552_v20 = vcombine.low %v7184_v46, %v7201_v52  ;;  %v7213_v57 = vsel %vm7067_vm6, %v881_v48, %v882_v50  ;;  %v5650_v55 = vrot.slane %v5642_v16, 9  ;;  %v1684_v56 = vrot.slane %v7187_v47, 5  ;;  %v5644_v16 = vld [vmem:[%s6909_s21 + $0x30] sm:$0xe] }
  0x4f   : > { %6319 = vmatmul.mubr.msk.bf16.vlgmr.msra.gmra.mxu0 %vm512_vm0, %v5547_v45  ;;  %v5553_v59 = vcombine.low %v7195_v33, %v7213_v57  ;;  %v7225_v41 = vsel %vm7067_vm6, %v5649_v12, %v1677_v26  ;;  %v1679_v60 = vrot.slane %v1677_v26, 4  ;;  %v1687_v61 = vrot.slane %v5603_v2, 5 }
  0x50   : > { %6353 = vmatpush3.bf16.msra.mxu0 %v6995_v22  ;;  %6322 = vmatprep.mubr.msk.bf16.mxu0 %vm512_vm0, %v5548_v7  ;;  %v7232_v21 = vsel %vm7067_vm6, %v5650_v55, %v1684_v56  ;;  %v1686_v5 = vrot.slane %v1684_v56, 4  ;;  %v1282_v45 = vshrl.u32 %v5598_v54, 16  ;;  %v1285_v63 = vshll.u32 %v5598_v54, 16  ;;  %v5601_v22 = vld [vmem:[%s6909_s21 + $0x18] sm:$0xf] }
  0x51   : > { %v1681_v1 = vsel %vm7067_vm6, %v1679_v60, %v1680_v53  ;;  %v1291_v30 = vshll.u32 %v5599_v27, 16  ;;  %v1295_v3 = vshrl.u32 %v5599_v27, 16  ;;  %v1301_v4 = vshll.u32 %v5600_v36, 16  ;;  %6388 = vmatprep.subr.bf16.mxu0 %v7207_v11  ;;  %v5606_v36 = vld [vmem:[%s6909_s21 + $0x2c] sm:$0x1] }
  0x52   : > { %v5659_v6 = vcombine.low %v7225_v41, %v1681_v1  ;;  %v7241_v9 = vsel %vm7067_vm6, %v1686_v5, %v1687_v61  ;;  %v1284_v13 = vrot.slane %v1282_v45, 4  ;;  %v1287_v7 = vrot.slane %v1285_v63, 5  ;;  %v7257_v53 = vld [vmem:[%s6909_s21 + $0x34] sm:$0xf]  ;;  %v5607_v63 = vld [vmem:[%s6909_s21 + $0x30] sm:$0xf] }
  0x53   : > { %6345 = vmatmul.mubr.msk.bf16.gmra.mxu1 %vm512_vm0, %v6681_v58  ;;  %v5660_v17 = vcombine.low %v7232_v21, %v7241_v9  ;;  %v1293_v18 = vrot.slane %v1291_v30, 5  ;;  %v1297_v49 = vrot.slane %v1295_v3, 4  ;;  %v1303_v23 = vrot.slane %v1301_v4, 5 }
  0x54   : > { %6348 = vmatprep.mubr.msk.bf16.mxu1 %vm512_vm0, %v6682_v0  ;;  %v1288_v27 = vor.u32 %v1287_v7, %v1284_v13  ;;  %v1306_v28 = vshrl.u32 %v5601_v22, 16  ;;  %v1309_v32 = vshll.u32 %v5601_v22, 16  ;;  %v1315_v35 = vshll.u32 %v7187_v47, 16 }
  0x55   : > { %v1298_v62 = vor.u32 %v1297_v49, %v1293_v18  ;;  %v1319_v40 = vshrl.u32 %v7187_v47, 16  ;;  %v1325_v42 = vshll.u32 %v5603_v2, 16  ;;  %v5651_v39 = vrot.slane %v5643_v15, 9  ;;  %v5609_v2 = vld [vmem:[%s6909_s21 + $0x38] sm:$0x1] }
  0x56   : > { %v1289_v48 = vrot.slane %v1288_v27, 4  ;;  %v1308_v50 = vrot.slane %v1306_v28, 4  ;;  %v1311_v12 = vrot.slane %v1309_v32, 5  ;;  %v1317_v26 = vrot.slane %v1315_v35, 5 }
  0x57   : > { %6323 = vmatmul.mubr.msk.bf16.gmra.mxu0 %vm512_vm0, %v5549_v29  ;;  %v1299_v54 = vrot.slane %v1298_v62, 4  ;;  %v1321_v55 = vrot.slane %v1319_v40, 4  ;;  %v1327_v56 = vrot.slane %v1325_v42, 5  ;;  %v1691_v47 = vrot.slane %v7248_v24, 5 }
  0x58   : > { %6326 = vmatprep.mubr.msk.bf16.mxu0 %vm512_vm0, %v5550_v44  ;;  %v1294_v58 = vsel %vm6950_vm3, %v1289_v48, %v1293_v18  ;;  %v1312_v41 = vor.u32 %v1311_v12, %v1308_v50  ;;  %v1694_v60 = vrot.slane %v5606_v36, 5  ;;  %v5652_v51 = vrot.slane %v5644_v16, 9  ;;  %v7310_v16 = vld [vmem:[%s6909_s21 + $0x44] sm:$0x1]  ;;  %v5645_v48 = vld [vmem:[%s6909_s21 + $0x3c] sm:$0xe] }
  0x59   : > { %v1304_v29 = vsel %vm6950_vm3, %v1299_v54, %v1303_v23  ;;  %v1322_v61 = vor.u32 %v1321_v55, %v1317_v26  ;;  %v1692_v0 = vsel %vm7067_vm6, %v5651_v39, %v1691_v47  ;;  %v1693_v5 = vrot.slane %v1691_v47, 4  ;;  %v7324_v50 = vld [vmem:[%s6909_s21 + $0x4c] sm:$0xf] }
  0x5a   : > { %v7276_v45 = vcombine.low %v1294_v58, %v1304_v29  ;;  %v1313_v19 = vrot.slane %v1312_v41, 4  ;;  %v1698_v37 = vrot.slane %v7257_v53, 5  ;;  %v1701_v44 = vrot.slane %v5609_v2, 5  ;;  %v7329_v41 = vld [vmem:[%s6909_s21 + $0x50] sm:$0x1] }
  0x5b   : > { %6349 = vmatmul.mubr.msk.bf16.gmra.mxu1 %vm512_vm0, %v6683_v38  ;;  %v1323_v1 = vrot.slane %v1322_v61, 4  ;;  %v1695_v30 = vsel %vm7067_vm6, %v1693_v5, %v1694_v60  ;;  %v1330_v3 = vshrl.u32 %v5604_v14, 16  ;;  %v1333_v4 = vshll.u32 %v5604_v14, 16  ;;  %v7301_v38 = vld [vmem:[%s6909_s21 + $0x40] sm:$0xf] }
  0x5c   : > { %6372 = vmatprep.mubr.msk.bf16.mxu1 %vm512_vm0, %v5659_v6  ;;  %v1318_v22 = vsel %vm6950_vm3, %v1313_v19, %v1317_v26  ;;  %v5661_v13 = vcombine.low %v1692_v0, %v1695_v30  ;;  %v7288_v7 = vsel %vm7067_vm6, %v5652_v51, %v1698_v37  ;;  %v1700_v15 = vrot.slane %v1698_v37, 4 }
  0x5d   : > { %v1328_v18 = vsel %vm6950_vm3, %v1323_v1, %v1327_v56  ;;  %v1332_v49 = vrot.slane %v1330_v3, 4  ;;  %v1335_v23 = vrot.slane %v1333_v4, 5  ;;  %v1339_v27 = vshll.u32 %v7248_v24, 16  ;;  %v5646_v56 = vld [vmem:[%s6909_s21 + $0x48] sm:$0xe] }
  0x5e   : > { %v7293_v28 = vcombine.low %v1318_v22, %v1328_v18  ;;  %v7297_v6 = vsel %vm7067_vm6, %v1700_v15, %v1701_v44  ;;  %v1343_v32 = vshrl.u32 %v7248_v24, 16  ;;  %v1349_v35 = vshll.u32 %v5606_v36, 16  ;;  %v7316_v24 = vld [vmem:[%s9339_s1 + $0x8] sm:$0xff]  }
  0x5f   : > { %6327 = vmatmul.mubr.msk.bf16.gmra.mxu0 %vm512_vm0, %v5551_v34  ;;  %v5662_v62 = vcombine.low %v7288_v7, %v7297_v6  ;;  %v1336_v40 = vor.u32 %v1335_v23, %v1332_v49  ;;  %v1341_v42 = vrot.slane %v1339_v27, 5  ;;  %v1354_v39 = vshrl.u32 %v5607_v63, 16  ;;  %v5613_v4 = vld [vmem:[%s6909_s21 + $0x48] sm:$0xf] }
  0x60   : > { %6330 = vmatprep.mubr.msk.bf16.mxu0 %vm512_vm0, %v5552_v20  ;;  %v1345_v43 = vrot.slane %v1343_v32, 4  ;;  %v1351_v8 = vrot.slane %v1349_v35, 5  ;;  %v1357_v34 = vshll.u32 %v5607_v63, 16  ;;  %v1363_v36 = vshll.u32 %v7257_v53, 16  ;;  %v7372_v35 = vld [vmem:[%s6909_s21 + $0x58] sm:$0xf] }
  0x61   : > { %v1337_v12 = vrot.slane %v1336_v40, 4  ;;  %v1356_v26 = vrot.slane %v1354_v39, 4  ;;  %v1367_v54 = vshrl.u32 %v7257_v53, 16  ;;  %v1373_v55 = vshll.u32 %v5609_v2, 16  ;;  %v5610_v2 = vld [vmem:[%s6909_s21 + $0x3c] sm:$0xf] }
  0x62   : > { %v1346_v47 = vor.u32 %v1345_v43, %v1341_v42  ;;  %v1359_v58 = vrot.slane %v1357_v34, 5  ;;  %v1365_v46 = vrot.slane %v1363_v36, 5  ;;  %v5653_v52 = vrot.slane %v5645_v48, 9  ;;  %v5647_v40 = vld [vmem:[%s6909_s21 + $0x54] sm:$0xe] }
  0x63   : > { %6373 = vmatmul.mubr.msk.bf16.vlgmr.msra.gmra.mxu1 %vm512_vm0, %v5660_v17  ;;  %v1342_v20 = vsel %vm6950_vm3, %v1337_v12, %v1341_v42  ;;  %v1369_v60 = vrot.slane %v1367_v54, 4  ;;  %v1375_v51 = vrot.slane %v1373_v55, 5  ;;  %v1705_v53 = vrot.slane %v7301_v38, 5  ;;  %v7380_v43 = vld [vmem:[%s6909_s21 + $0x5c] sm:$0x1] }
  0x64   : > { %6407 = vmatpush3.bf16.msra.mxu1 %v7112_v25  ;;  %6376 = vmatprep.mubr.msk.bf16.mxu1 %vm512_vm0, %v5661_v13  ;;  %v1347_v14 = vrot.slane %v1346_v47, 4  ;;  %v1360_v29 = vor.u32 %v1359_v58, %v1356_v26  ;;  %v1708_v61 = vrot.slane %v7310_v16, 5  ;;  %v5654_v21 = vrot.slane %v5646_v56, 9  ;;  %v5648_v58 = vld [vmem:[%s6909_s21 + $0x60] sm:$0xe] }
  0x65   : > { %v1370_v9 = vor.u32 %v1369_v60, %v1365_v46  ;;  %v1706_v17 = vsel %vm7067_vm6, %v5653_v52, %v1705_v53  ;;  %v1707_v0 = vrot.slane %v1705_v53, 4  ;;  %v1712_v5 = vrot.slane %v7324_v50, 5  ;;  %6442 = vmatprep.subr.bf16.mxu1 %v7316_v24 }
  0x66   : > { %v1352_v25 = vsel %vm6950_vm3, %v1347_v14, %v1351_v8  ;;  %v1361_v19 = vrot.slane %v1360_v29, 4  ;;  %v1715_v37 = vrot.slane %v7329_v41, 5  ;;  %v1378_v44 = vshrl.u32 %v5610_v2, 16  ;;  %v5621_v14 = vld [vmem:[%s6909_s21 + $0x68] sm:$0x1] }
  0x67   : > { %6331 = vmatmul.mubr.msk.bf16.gmra.mxu0 %vm512_vm0, %v5553_v59  ;;  %v5626_v63 = vcombine.low %v1342_v20, %v1352_v25  ;;  %v1371_v1 = vrot.slane %v1370_v9, 4  ;;  %v1709_v30 = vsel %vm7067_vm6, %v1707_v0, %v1708_v61  ;;  %v1713_v3 = vsel %vm7067_vm6, %v5654_v21, %v1712_v5  ;;  %v5616_v29 = vld [vmem:[%s6909_s21 + $0x54] sm:$0xf] }
  0x68   : > { %6354 = vmatprep.mubr.msk.bf16.mxu0 %vm512_vm0, %v7276_v45  ;;  %v1366_v22 = vsel %vm6950_vm3, %v1361_v19, %v1365_v46  ;;  %v5663_v33 = vcombine.low %v1706_v17, %v1709_v30  ;;  %v1714_v57 = vrot.slane %v1712_v5, 4  ;;  %v1380_v59 = vrot.slane %v1378_v44, 4 }
  0x69   : > { %v1376_v13 = vsel %vm6950_vm3, %v1371_v1, %v1375_v51  ;;  %v1381_v15 = vshll.u32 %v5610_v2, 16  ;;  %v1387_v18 = vshll.u32 %v7301_v38, 16  ;;  %v1391_v49 = vshrl.u32 %v7301_v38, 16  ;;  %v5620_v51 = vld [vmem:[%s6909_s21 + $0x64] sm:$0xf] }
  0x6a   : > { %v7366_v23 = vcombine.low %v1366_v22, %v1376_v13  ;;  %v1716_v45 = vsel %vm7067_vm6, %v1714_v57, %v1715_v37  ;;  %v1397_v27 = vshll.u32 %v7310_v16, 16  ;;  %v1402_v32 = vshrl.u32 %v5613_v4, 16  ;;  %v7385_v16 = vld [vmem:[%s9339_s1 + $0x40] sm:$0xff]  }
  0x6b   : > { %6377 = vmatmul.mubr.msk.bf16.gmra.mxu1 %vm512_vm0, %v5662_v62  ;;  %v5664_v42 = vcombine.low %v1713_v3, %v1716_v45  ;;  %v1383_v39 = vrot.slane %v1381_v15, 5  ;;  %v1389_v48 = vrot.slane %v1387_v18, 5  ;;  %v1393_v38 = vrot.slane %v1391_v49, 4 }
  0x6c   : > { %6380 = vmatprep.mubr.msk.bf16.mxu1 %vm512_vm0, %v5663_v33  ;;  %v1399_v8 = vrot.slane %v1397_v27, 5  ;;  %v1404_v34 = vrot.slane %v1402_v32, 4  ;;  %v1405_v36 = vshll.u32 %v5613_v4, 16  ;;  %v1411_v7 = vshll.u32 %v7324_v50, 16  ;;  %v5619_v4 = vld [vmem:[%s6909_s21 + $0x60] sm:$0xf] }
  0x6d   : > { %v1384_v6 = vor.u32 %v1383_v39, %v1380_v59  ;;  %v1394_v62 = vor.u32 %v1393_v38, %v1389_v48  ;;  %v1415_v12 = vshrl.u32 %v7324_v50, 16  ;;  %v1421_v26 = vshll.u32 %v7329_v41, 16 }
  0x6e   : > { %v1407_v54 = vrot.slane %v1405_v36, 5  ;;  %v1413_v55 = vrot.slane %v1411_v7, 5  ;;  %v5655_v56 = vrot.slane %v5647_v40, 9  ;;  %v1719_v47 = vrot.slane %v7372_v35, 5 }
  0x6f   : > { %6355 = vmatmul.mubr.msk.bf16.vlgmr.msra.gmra.mxu0 %vm512_vm0, %v7293_v28  ;;  %v1385_v46 = vrot.slane %v1384_v6, 4  ;;  %v1395_v52 = vrot.slane %v1394_v62, 4  ;;  %v1417_v20 = vrot.slane %v1415_v12, 4  ;;  %v1423_v60 = vrot.slane %v1421_v26, 5 }
  0x70   : > { %6389 = vmatpush3.bf16.msra.mxu0 %v7207_v11  ;;  %6358 = vmatprep.mubr.msk.bf16.mxu0 %vm512_vm0, %v5626_v63  ;;  %v1408_v50 = vor.u32 %v1407_v54, %v1404_v34  ;;  %v1720_v41 = vsel %vm7067_vm6, %v5655_v56, %v1719_v47  ;;  %v1721_v53 = vrot.slane %v1719_v47, 4  ;;  %v1722_v2 = vrot.slane %v7380_v43, 5 }
  0x71   : > { %v1390_v28 = vsel %vm6950_vm3, %v1385_v46, %v1389_v48  ;;  %v1400_v61 = vsel %vm6950_vm3, %v1395_v52, %v1399_v8  ;;  %v1418_v21 = vor.u32 %v1417_v20, %v1413_v55  ;;  %v5656_v11 = vrot.slane %v5648_v58, 9  ;;  %6424 = vmatprep.subr.bf16.mxu0 %v7385_v16  ;;  %v7429_v8 = vld [vmem:[%s6909_s21 + $0x1c] sm:$0xf] }
  0x72   : > { %v5628_v9 = vcombine.low %v1390_v28, %v1400_v61  ;;  %v1409_v17 = vrot.slane %v1408_v50, 4  ;;  %v1723_v0 = vsel %vm7067_vm6, %v1721_v53, %v1722_v2  ;;  %v1726_v5 = vrot.slane %v5620_v51, 5  ;;  %v7443_v2 = vld [vmem:[%s6909_s21 + $0x28] sm:$0xf] }
  0x73   : > { %6381 = vmatmul.mubr.msk.bf16.gmra.mxu1 %vm512_vm0, %v5664_v42  ;;  %v1419_v25 = vrot.slane %v1418_v21, 4  ;;  %v5665_v19 = vcombine.low %v1720_v41, %v1723_v0  ;;  %v1729_v37 = vrot.slane %v5621_v14, 5  ;;  %v1426_v44 = vshrl.u32 %v5616_v29, 16  ;;  %v5711_v42 = vld [vmem:[%s6909_s21 + $0x18] sm:$0xf] }
  0x74   : > { %v1414_v63 = vsel %vm6950_vm3, %v1409_v17, %v1413_v55  ;;  %v1727_v1 = vsel %vm7067_vm6, %v5656_v11, %v1726_v5  ;;  %v1728_v30 = vrot.slane %v1726_v5, 4  ;;  %v1429_v3 = vshll.u32 %v5616_v29, 16  ;;  %v7448_v17 = vld [vmem:[%s6909_s21 + $0x2c] sm:$0x1] }
  0x75   : > { %v1424_v22 = vsel %vm6950_vm3, %v1419_v25, %v1423_v60  ;;  %6384 = vmatprep.mubr.msk.bf16.mxu1 %vm512_vm0, %v5665_v19  ;;  %v1428_v33 = vrot.slane %v1426_v44, 4  ;;  %v1435_v57 = vshll.u32 %v7372_v35, 16  ;;  %v1439_v59 = vshrl.u32 %v7372_v35, 16  ;;  %v5714_v60 = vld [vmem:[%s6909_s21 + $0x24] sm:$0xf] }
  0x76   : > { %v5629_v13 = vcombine.low %v1414_v63, %v1424_v22  ;;  %v1730_v15 = vsel %vm7067_vm6, %v1728_v30, %v1729_v37  ;;  %v1431_v18 = vrot.slane %v1429_v3, 5  ;;  %v1445_v49 = vshll.u32 %v7380_v43, 16  ;;  %v5717_v44 = vld [vmem:[%s6909_s21 + $0x30] sm:$0xf] }
  0x77   : > { %6359 = vmatmul.mubr.msk.bf16.gmra.mxu0 %vm512_vm0, %v7366_v23  ;;  %v5666_v45 = vcombine.low %v1727_v1, %v1730_v15  ;;  %v1437_v27 = vrot.slane %v1435_v57, 5  ;;  %v1441_v32 = vrot.slane %v1439_v59, 4  ;;  %v1450_v40 = vshrl.u32 %v5619_v4, 16  ;;  %v7432_v23 = vld [vmem:[%s6909_s21 + $0x20] sm:$0x1] }
  0x78   : > { %6362 = vmatprep.mubr.msk.bf16.mxu0 %vm512_vm0, %v5628_v9  ;;  %v1432_v35 = vor.u32 %v1431_v18, %v1428_v33  ;;  %v1447_v39 = vrot.slane %v1445_v49, 5  ;;  %v1453_v48 = vshll.u32 %v5619_v4, 16  ;;  %v1459_v38 = vshll.u32 %v5620_v51, 16  ;;  %v7458_v4 = vld [vmem:[%s6909_s21 + $0x34] sm:$0xf] }
  0x79   : > { %v1442_v34 = vor.u32 %v1441_v32, %v1437_v27  ;;  %v1452_v36 = vrot.slane %v1450_v40, 4  ;;  %v1463_v43 = vshrl.u32 %v5620_v51, 16  ;;  %v1469_v7 = vshll.u32 %v5621_v14, 16  ;;  %v7465_v49 = vld [vmem:[%s6909_s21 + $0x38] sm:$0x1] }
  0x7a   : > { %v1433_v6 = vrot.slane %v1432_v35, 4  ;;  %v1455_v62 = vrot.slane %v1453_v48, 5  ;;  %v1461_v12 = vrot.slane %v1459_v38, 5  ;;  %v2129_v26 = vshrl.u32 %v5711_v42, 16  ;;  %v6686_v40 = vld [vmem:[%s6909_s21 + $0x18] sm:$0xff]  }
  0x7b   : > { %6385 = vmatmul.mubr.msk.bf16.gmra.mxu1 %vm512_vm0, %v5666_v45  ;;  %v1443_v54 = vrot.slane %v1442_v34, 4  ;;  %v1465_v55 = vrot.slane %v1463_v43, 4  ;;  %v1471_v56 = vrot.slane %v1469_v7, 5  ;;  %v2132_v47 = vshll.u32 %v5711_v42, 16 }
  0x7c   : > { %v1438_v58 = vsel %vm6950_vm3, %v1433_v6, %v1437_v27  ;;  %v1456_v46 = vor.u32 %v1455_v62, %v1452_v36  ;;  %v2131_v52 = vrot.slane %v2129_v26, 4  ;;  %v2138_v20 = vshll.u32 %v7429_v8, 16 }
  0x7d   : > { %v1448_v51 = vsel %vm6950_vm3, %v1443_v54, %v1447_v39  ;;  %v1466_v50 = vor.u32 %v1465_v55, %v1461_v12  ;;  %v2134_v41 = vrot.slane %v2132_v47, 5  ;;  %v2142_v53 = vshrl.u32 %v7429_v8, 16  ;;  %v5720_v39 = vld [vmem:[%s6909_s21 + $0x3c] sm:$0xf] }
  0x7e   : > { %v5630_v14 = vcombine.low %v1438_v58, %v1448_v51  ;;  %v1457_v29 = vrot.slane %v1456_v46, 4  ;;  %v2140_v28 = vrot.slane %v2138_v20, 5  ;;  %v2148_v61 = vshll.u32 %v7432_v23, 16 }
  0x7f   : > { %6363 = vmatmul.mubr.msk.bf16.gmra.mxu0 %vm512_vm0, %v5629_v13  ;;  %v1467_v21 = vrot.slane %v1466_v50, 4  ;;  %v2135_v11 = vor.u32 %v2134_v41, %v2131_v52  ;;  %v2144_v9 = vrot.slane %v2142_v53, 4  ;;  %v2153_v0 = vshrl.u32 %v5714_v60, 16  ;;  %v7483_v52 = vld [vmem:[%s6909_s21 + $0x44] sm:$0x1] }
  0x80   : > { %6366 = vmatprep.mubr.msk.bf16.mxu0 %vm512_vm0, %v5630_v14  ;;  %v1462_v5 = vsel %vm6950_vm3, %v1457_v29, %v1461_v12  ;;  %v2150_v25 = vrot.slane %v2148_v61, 5  ;;  %v2156_v19 = vshll.u32 %v5714_v60, 16  ;;  %v2162_v37 = vshll.u32 %v7443_v2, 16  ;;  %v7474_v12 = vld [vmem:[%s6909_s21 + $0x40] sm:$0xf] }
  0x81   : > { %v1472_v63 = vsel %vm6950_vm3, %v1467_v21, %v1471_v56  ;;  %v2136_v1 = vrot.slane %v2135_v11, 4  ;;  %v2145_v30 = vor.u32 %v2144_v9, %v2140_v28  ;;  %v2155_v3 = vrot.slane %v2153_v0, 4  ;;  %v5723_v53 = vld [vmem:[%s6909_s21 + $0x48] sm:$0xf]  ;;  %v7491_v21 = vld [vmem:[%s6909_s21 + $0x4c] sm:$0xf] }
  0x82   : > { %v5631_v22 = vcombine.low %v1462_v5, %v1472_v63  ;;  %v2158_v33 = vrot.slane %v2156_v19, 5  ;;  %v2164_v57 = vrot.slane %v2162_v37, 5  ;;  %v2166_v59 = vshrl.u32 %v7443_v2, 16  ;;  %v6688_v9 = vld [vmem:[%s6909_s21 + $0x24] sm:$0xff]   ;;  %v7498_v19 = vld [vmem:[%s9339_s1 + $0x10] sm:$0xff]  }
  0x83   : > { %v2141_v13 = vsel %vm6950_vm3, %v2136_v1, %v2140_v28  ;;  %v2146_v15 = vrot.slane %v2145_v30, 4  ;;  %v2172_v18 = vshll.u32 %v7448_v17, 16  ;;  %v2177_v45 = vshrl.u32 %v5717_v44, 16  ;;  %v6690_v1 = vld [vmem:[%s6909_s21 + $0x30] sm:$0xff]  }
  0x84   : > { %v2159_v27 = vor.u32 %v2158_v33, %v2155_v3  ;;  %v2168_v32 = vrot.slane %v2166_v59, 4  ;;  %v2180_v42 = vshll.u32 %v5717_v44, 16  ;;  %v2186_v35 = vshll.u32 %v7458_v4, 16  ;;  %v7504_v30 = vld [vmem:[%s6909_s21 + $0x50] sm:$0x1] }
  0x85   : > { %v2151_v48 = vsel %vm6950_vm3, %v2146_v15, %v2150_v25  ;;  %v2174_v38 = vrot.slane %v2172_v18, 5  ;;  %v2179_v34 = vrot.slane %v2177_v45, 4  ;;  %v2190_v36 = vshrl.u32 %v7458_v4, 16  ;;  %v7514_v15 = vld [vmem:[%s9339_s1] sm:$0xff]  }
  0x86   : > { %v5737_v43 = vcombine.low %v2141_v13, %v2151_v48  ;;  %v2160_v7 = vrot.slane %v2159_v27, 4  ;;  %v2169_v6 = vor.u32 %v2168_v32, %v2164_v57  ;;  %v2182_v62 = vrot.slane %v2180_v42, 5  ;;  %v5726_v13 = vld [vmem:[%s6909_s21 + $0x54] sm:$0xf] }
  0x87   : > { %6367 = vmatmul.mubr.msk.bf16.gmra.mxu0 %vm512_vm0, %v5631_v22  ;;  %v2188_v26 = vrot.slane %v2186_v35, 5  ;;  %v2192_v54 = vrot.slane %v2190_v36, 4  ;;  %v2196_v55 = vshll.u32 %v7465_v49, 16  ;;  %v2201_v56 = vshrl.u32 %v5720_v39, 16 }
  0x88   : > { %6408 = vmatprep.mubr.msk.bf16.mxu1 %vm512_vm0, %v5737_v43  ;;  %v2165_v47 = vsel %vm6950_vm3, %v2160_v7, %v2164_v57  ;;  %v2170_v58 = vrot.slane %v2169_v6, 4  ;;  %6390 = vmatprep.mubr.msk.bf16.mxu0 %vm512_vm0, %v6686_v40  ;;  %v2183_v46 = vor.u32 %v2182_v62, %v2179_v34  ;;  %v2204_v20 = vshll.u32 %v5720_v39, 16  ;;  %v7518_v40 = vld [vmem:[%s6909_s21 + $0x58] sm:$0xf]  ;;  %v5729_v7 = vld [vmem:[%s6909_s21 + $0x60] sm:$0xf] }
  0x89   : > { %v2193_v60 = vor.u32 %v2192_v54, %v2188_v26  ;;  %v2198_v51 = vrot.slane %v2196_v55, 5  ;;  %v2203_v50 = vrot.slane %v2201_v56, 4  ;;  %v2210_v41 = vshll.u32 %v7474_v12, 16  ;;  %v7535_v55 = vld [vmem:[%s6909_s21 + $0x64] sm:$0xf]  ;;  %v6691_v56 = vld [vmem:[%s6909_s21 + $0x3c] sm:$0xff]  }
  0x8a   : > { %v2175_v14 = vsel %vm6950_vm3, %v2170_v58, %v2174_v38  ;;  %v2184_v29 = vrot.slane %v2183_v46, 4  ;;  %v2206_v28 = vrot.slane %v2204_v20, 5  ;;  %v2214_v61 = vshrl.u32 %v7474_v12, 16  ;;  %v7524_v38 = vld [vmem:[%s6909_s21 + $0x5c] sm:$0x1] }
  0x8b   : > { %v5738_v11 = vcombine.low %v2165_v47, %v2175_v14  ;;  %v2194_v0 = vrot.slane %v2193_v60, 4  ;;  %v2212_v5 = vrot.slane %v2210_v41, 5  ;;  %v2220_v25 = vshll.u32 %v7483_v52, 16 }
  0x8c   : > { %v2189_v37 = vsel %vm6950_vm3, %v2184_v29, %v2188_v26  ;;  %v2207_v44 = vor.u32 %v2206_v28, %v2203_v50  ;;  %v2216_v63 = vrot.slane %v2214_v61, 4  ;;  %v2225_v3 = vshrl.u32 %v5723_v53, 16  ;;  %v6692_v29 = vld [vmem:[%s6909_s21 + $0x48] sm:$0xff]  }
  0x8d   : > { %6409 = vmatmul.mubr.msk.bf16.vlgmr.msra.gmra.mxu1 %vm512_vm0, %v5738_v11  ;;  %v2199_v22 = vsel %vm6950_vm3, %v2194_v0, %v2198_v51  ;;  %v2222_v33 = vrot.slane %v2220_v25, 5  ;;  %v2228_v57 = vshll.u32 %v5723_v53, 16  ;;  %v2234_v59 = vshll.u32 %v7491_v21, 16 }
  0x8e   : > { %6443 = vmatpush3.bf16.msra.mxu1 %v7316_v24  ;;  %v5739_v18 = vcombine.low %v2189_v37, %v2199_v22  ;;  %v2208_v45 = vrot.slane %v2207_v44, 4  ;;  %v2217_v27 = vor.u32 %v2216_v63, %v2212_v5  ;;  %v2227_v32 = vrot.slane %v2225_v3, 4 }
  0x8f   : > { %6391 = vmatmul.mubr.msk.bf16.vlgmr.msra.gmra.mxu0 %vm512_vm0, %v6688_v9  ;;  %v2230_v42 = vrot.slane %v2228_v57, 5  ;;  %v2236_v35 = vrot.slane %v2234_v59, 5  ;;  %v2238_v39 = vshrl.u32 %v7491_v21, 16  ;;  %v2244_v48 = vshll.u32 %v7504_v30, 16  ;;  %6478 = vmatprep.subr.bf16.mxu1 %v7498_v19  ;;  %v7548_v9 = vld [vmem:[%s6909_s21 + $0x68] sm:$0x1] }
  0x90   : > { %6425 = vmatpush3.bf16.msra.mxu0 %v7385_v16  ;;  %6412 = vmatprep.mubr.msk.bf16.mxu1 %vm512_vm0, %v5739_v18  ;;  %v2213_v24 = vsel %vm6950_vm3, %v2208_v45, %v2212_v5  ;;  %v2218_v34 = vrot.slane %v2217_v27, 4  ;;  %v2249_v36 = vshrl.u32 %v5726_v13, 16  ;;  %v2252_v43 = vshll.u32 %v5726_v13, 16  ;;  %v7557_v59 = vld [vmem:[%s6909_s21 + $0x70] sm:$0xf] }
  0x91   : > { %6394 = vmatprep.mubr.msk.bf16.mxu0 %vm512_vm0, %v6690_v1  ;;  %v2231_v6 = vor.u32 %v2230_v42, %v2227_v32  ;;  %v2240_v62 = vrot.slane %v2238_v39, 4  ;;  %v2246_v26 = vrot.slane %v2244_v48, 5  ;;  %v2258_v54 = vshll.u32 %v7518_v40, 16  ;;  %6460 = vmatprep.subr.bf16.mxu0 %v7514_v15  ;;  %v5732_v1 = vld [vmem:[%s6909_s21 + $0x6c] sm:$0xf] }
  0x92   : > { %v2223_v16 = vsel %vm6950_vm3, %v2218_v34, %v2222_v33  ;;  %v2251_v47 = vrot.slane %v2249_v36, 4  ;;  %v2254_v58 = vrot.slane %v2252_v43, 5  ;;  %v2262_v46 = vshrl.u32 %v7518_v40, 16 }
  0x93   : > { %v5740_v20 = vcombine.low %v2213_v24, %v2223_v16  ;;  %v2232_v60 = vrot.slane %v2231_v6, 4  ;;  %v2241_v51 = vor.u32 %v2240_v62, %v2236_v35  ;;  %v2260_v50 = vrot.slane %v2258_v54, 5  ;;  %v6693_v62 = vld [vmem:[%s6909_s21 + $0x54] sm:$0xff]  }
  0x94   : > { %v2255_v41 = vor.u32 %v2254_v58, %v2251_v47  ;;  %v2264_v53 = vrot.slane %v2262_v46, 4  ;;  %v2268_v14 = vshll.u32 %v7524_v38, 16  ;;  %v2273_v28 = vshrl.u32 %v5729_v7, 16  ;;  %v7577_v47 = vld [vmem:[%s6909_s21 + $0x64] sm:$0xf] }
  0x95   : > { %6413 = vmatmul.mubr.msk.bf16.gmra.mxu1 %vm512_vm0, %v5740_v20  ;;  %v2237_v61 = vsel %vm6950_vm3, %v2232_v60, %v2236_v35  ;;  %v2242_v11 = vrot.slane %v2241_v51, 4  ;;  %v2276_v0 = vshll.u32 %v5729_v7, 16  ;;  %v2282_v5 = vshll.u32 %v7535_v55, 16  ;;  %v7564_v35 = vld [vmem:[%s6909_s21 + $0x74] sm:$0x1] }
  0x96   : > { %v2256_v25 = vrot.slane %v2255_v41, 4  ;;  %v2265_v37 = vor.u32 %v2264_v53, %v2260_v50  ;;  %v2270_v44 = vrot.slane %v2268_v14, 5  ;;  %v2275_v63 = vrot.slane %v2273_v28, 4  ;;  %v7572_v7 = vld [vmem:[%s6909_s21 + $0x60] sm:$0xf] }
  0x97   : > { %6395 = vmatmul.mubr.msk.bf16.gmra.mxu0 %vm512_vm0, %v6691_v56  ;;  %v2247_v3 = vsel %vm6950_vm3, %v2242_v11, %v2246_v26  ;;  %v2278_v22 = vrot.slane %v2276_v0, 5  ;;  %v2284_v33 = vrot.slane %v2282_v5, 5  ;;  %v2286_v57 = vshrl.u32 %v7535_v55, 16  ;;  %v6694_v56 = vld [vmem:[%s6909_s21 + $0x60] sm:$0xff]   ;;  %v7581_v51 = vld [vmem:[%s6909_s21 + $0x68] sm:$0x1] }
  0x98   : > { %v5741_v13 = vcombine.low %v2237_v61, %v2247_v3  ;;  %v2261_v18 = vsel %vm6950_vm3, %v2256_v25, %v2260_v50  ;;  %v2266_v45 = vrot.slane %v2265_v37, 4  ;;  %6398 = vmatprep.mubr.msk.bf16.mxu0 %vm512_vm0, %v6692_v29  ;;  %v2292_v27 = vshll.u32 %v7548_v9, 16  ;;  %v7589_v29 = vld [vmem:[%s6909_s21 + $0x6c] sm:$0xf]  ;;  %v7593_v5 = vld [vmem:[%s6909_s21 + $0x70] sm:$0xf] }
  0x99   : > { %v2279_v32 = vor.u32 %v2278_v22, %v2275_v63  ;;  %v2288_v42 = vrot.slane %v2286_v57, 4  ;;  %v2297_v39 = vshrl.u32 %v5732_v1, 16  ;;  %v2300_v48 = vshll.u32 %v5732_v1, 16  ;;  %v7601_v57 = vld [vmem:[%s6909_s21 + $0x74] sm:$0x1] }
  0x9a   : > { %6416 = vmatprep.mubr.msk.bf16.mxu1 %vm512_vm0, %v5741_v13  ;;  %v2271_v24 = vsel %vm6950_vm3, %v2266_v45, %v2270_v44  ;;  %v2294_v34 = vrot.slane %v2292_v27, 5  ;;  %v2306_v36 = vshll.u32 %v7557_v59, 16  ;;  %v2310_v43 = vshrl.u32 %v7557_v59, 16  ;;  %v5754_v13 = vld [vmem:[%s6909_s21 + $0x18] sm:$0xe] }
  0x9b   : > { %v5742_v6 = vcombine.low %v2261_v18, %v2271_v24  ;;  %v2280_v26 = vrot.slane %v2279_v32, 4  ;;  %v2289_v54 = vor.u32 %v2288_v42, %v2284_v33  ;;  %v2299_v16 = vrot.slane %v2297_v39, 4  ;;  %v6695_v18 = vld [vmem:[%s6909_s21 + $0x6c] sm:$0xff]  }
  0x9c   : > { %v2302_v58 = vrot.slane %v2300_v48, 5  ;;  %v2308_v46 = vrot.slane %v2306_v36, 5  ;;  %v2312_v20 = vrot.slane %v2310_v43, 4  ;;  %v2316_v60 = vshll.u32 %v7564_v35, 16 }
  0x9d   : > { %6417 = vmatmul.mubr.msk.bf16.gmra.mxu1 %vm512_vm0, %v5742_v6  ;;  %v2285_v50 = vsel %vm6950_vm3, %v2280_v26, %v2284_v33  ;;  %v2290_v41 = vrot.slane %v2289_v54, 4  ;;  %v2852_v53 = vshrl.u32 %v7572_v7, 16  ;;  %v2855_v14 = vshll.u32 %v7572_v7, 16 }
  0x9e   : > { %v2303_v28 = vor.u32 %v2302_v58, %v2299_v16  ;;  %v2313_v61 = vor.u32 %v2312_v20, %v2308_v46  ;;  %v2318_v11 = vrot.slane %v2316_v60, 5  ;;  %v2861_v0 = vshll.u32 %v7577_v47, 16  ;;  %v5755_v58 = vld [vmem:[%s6909_s21 + $0x24] sm:$0xe] }
  0x9f   : > { %6399 = vmatmul.mubr.msk.bf16.gmra.mxu0 %vm512_vm0, %v6693_v62  ;;  %v2295_v25 = vsel %vm6950_vm3, %v2290_v41, %v2294_v34  ;;  %v2854_v37 = vrot.slane %v2852_v53, 4  ;;  %v2857_v44 = vrot.slane %v2855_v14, 5  ;;  %v2865_v63 = vshrl.u32 %v7577_v47, 16 }
  0xa0   : > { %v5743_v1 = vcombine.low %v2285_v50, %v2295_v25  ;;  %v2304_v3 = vrot.slane %v2303_v28, 4  ;;  %v2314_v22 = vrot.slane %v2313_v61, 4  ;;  %6402 = vmatprep.mubr.msk.bf16.mxu0 %vm512_vm0, %v6694_v56  ;;  %v2863_v33 = vrot.slane %v2861_v0, 5 }
  0xa1   : > { %v2858_v45 = vor.u32 %v2857_v44, %v2854_v37  ;;  %v2867_v27 = vrot.slane %v2865_v63, 4  ;;  %v2871_v32 = vshll.u32 %v7581_v51, 16  ;;  %v2876_v42 = vshrl.u32 %v7589_v29, 16  ;;  %v7627_v37 = vld [vmem:[%s6909_s21 + $0x78] sm:$0xf] }
  0xa2   : > { %6420 = vmatprep.mubr.msk.bf16.mxu1 %vm512_vm0, %v5743_v1  ;;  %v2309_v39 = vsel %vm6950_vm3, %v2304_v3, %v2308_v46  ;;  %v2319_v48 = vsel %vm6950_vm3, %v2314_v22, %v2318_v11  ;;  %v2879_v24 = vshll.u32 %v7589_v29, 16  ;;  %v2885_v34 = vshll.u32 %v7593_v5, 16 }
  0xa3   : > { %v5744_v36 = vcombine.low %v2309_v39, %v2319_v48  ;;  %v2859_v43 = vrot.slane %v2858_v45, 4  ;;  %v2868_v6 = vor.u32 %v2867_v27, %v2863_v33  ;;  %v2873_v62 = vrot.slane %v2871_v32, 5  ;;  %v7644_v45 = vld [vmem:[%s6909_s21 + $0x88] sm:$0xf] }
  0xa4   : > { %v2878_v26 = vrot.slane %v2876_v42, 4  ;;  %v2881_v54 = vrot.slane %v2879_v24, 5  ;;  %v2887_v16 = vrot.slane %v2885_v34, 5  ;;  %v2889_v56 = vshrl.u32 %v7593_v5, 16 }
  0xa5   : > { %6421 = vmatmul.mubr.msk.bf16.gmra.mxu1 %vm512_vm0, %v5744_v36  ;;  %v2864_v46 = vsel %vm6950_vm3, %v2859_v43, %v2863_v33  ;;  %v2869_v20 = vrot.slane %v2868_v6, 4  ;;  %v2895_v60 = vshll.u32 %v7601_v57, 16  ;;  %v5762_v50 = vrot.slane %v5754_v13, 9 }
  0xa6   : > { %v2882_v41 = vor.u32 %v2881_v54, %v2878_v26  ;;  %v2891_v53 = vrot.slane %v2889_v56, 4  ;;  %v2524_v14 = vrot.slane %v7429_v8, 5  ;;  %v2527_v28 = vrot.slane %v7432_v23, 5  ;;  %v7632_v23 = vld [vmem:[%s6909_s21 + $0x7c] sm:$0xf] }
  0xa7   : > { %6403 = vmatmul.mubr.msk.bf16.gmra.mxu0 %vm512_vm0, %v6695_v18  ;;  %v2874_v61 = vsel %vm6950_vm3, %v2869_v20, %v2873_v62  ;;  %v2897_v11 = vrot.slane %v2895_v60, 5  ;;  %v5763_v0 = vrot.slane %v5755_v58, 9  ;;  %v2531_v25 = vrot.slane %v7443_v2, 5  ;;  %v7638_v18 = vld [vmem:[%s6909_s21 + $0x80] sm:$0x1] }
  0xa8   : > { %v5817_v44 = vcombine.low %v2864_v46, %v2874_v61  ;;  %v2883_v63 = vrot.slane %v2882_v41, 4  ;;  %v2892_v1 = vor.u32 %v2891_v53, %v2887_v16  ;;  %v2525_v8 = vsel %vm7067_vm6, %v5762_v50, %v2524_v14  ;;  %v7641_v2 = vld [vmem:[%s6909_s21 + $0x84] sm:$0xf]  ;;  %v7660_v26 = vld [vmem:[%s6909_s21 + $0x8c] sm:$0x1]  ;;  %v7665_v46 = vld [vmem:[%s9339_s1 + $0x18] sm:$0xff]  }
  0xa9   : > { %v2526_v3 = vrot.slane %v2524_v14, 4  ;;  %v2532_v22 = vsel %vm7067_vm6, %v5763_v0, %v2531_v25  ;;  %v2533_v33 = vrot.slane %v2531_v25, 4  ;;  %v2534_v13 = vrot.slane %v7448_v17, 5  ;;  %v7670_v20 = vld [vmem:[%s9339_s1 + $0x20] sm:$0xff]   ;;  %v5756_v0 = vld [vmem:[%s6909_s21 + $0x30] sm:$0xe] }
  0xaa   : > { %6444 = vmatprep.mubr.msk.bf16.mxu1 %vm512_vm0, %v5817_v44  ;;  %v2888_v27 = vsel %vm6950_vm3, %v2883_v63, %v2887_v16  ;;  %v2893_v32 = vrot.slane %v2892_v1, 4  ;;  %v2900_v42 = vshrl.u32 %v7627_v37, 16  ;;  %v2903_v39 = vshll.u32 %v7627_v37, 16  ;;  %v5757_v25 = vld [vmem:[%s6909_s21 + $0x3c] sm:$0xe] }
  0xab   : > { %v2528_v17 = vsel %vm7067_vm6, %v2526_v3, %v2527_v28  ;;  %v2535_v48 = vsel %vm7067_vm6, %v2533_v33, %v2534_v13  ;;  %v2909_v24 = vshll.u32 %v7632_v23, 16  ;;  %v2913_v34 = vshrl.u32 %v7632_v23, 16  ;;  %v7686_v3 = vld [vmem:[%s6909_s21 + $0x90] sm:$0xf] }
  0xac   : > { %v2898_v36 = vsel %vm6950_vm3, %v2893_v32, %v2897_v11  ;;  %v5772_v43 = vcombine.low %v2525_v8, %v2528_v17  ;;  %v5773_v6 = vcombine.low %v2532_v22, %v2535_v48  ;;  %v2902_v62 = vrot.slane %v2900_v42, 4 }
  0xad   : > { %v5818_v54 = vcombine.low %v2888_v27, %v2898_v36  ;;  %v2905_v16 = vrot.slane %v2903_v39, 5  ;;  %v2911_v56 = vrot.slane %v2909_v24, 5  ;;  %v2915_v58 = vrot.slane %v2913_v34, 4  ;;  %v7697_v34 = vld [vmem:[%s6909_s21 + $0x94] sm:$0xf] }
  0xae   : > { %6426 = vmatprep.mubr.msk.bf16.mxu0 %vm512_vm0, %v5772_v43  ;;  %v2919_v60 = vshll.u32 %v7638_v18, 16  ;;  %v2924_v50 = vshrl.u32 %v7641_v2, 16  ;;  %v2927_v41 = vshll.u32 %v7641_v2, 16  ;;  %v2933_v53 = vshll.u32 %v7644_v45, 16 }
  0xaf   : > { %6445 = vmatmul.mubr.msk.bf16.vlgmr.msra.gmra.mxu1 %vm512_vm0, %v5818_v54  ;;  %6427 = vmatmul.mubr.msk.bf16.vlgmr.msra.gmra.mxu0 %vm512_vm0, %v5773_v6  ;;  %v2906_v14 = vor.u32 %v2905_v16, %v2902_v62  ;;  %v2916_v28 = vor.u32 %v2915_v58, %v2911_v56  ;;  %v2937_v61 = vshrl.u32 %v7644_v45, 16  ;;  %v2943_v11 = vshll.u32 %v7660_v26, 16  ;;  %v7704_v16 = vld [vmem:[%s6909_s21 + $0x98] sm:$0x1] }
  0xb0   : > { %6461 = vmatpush3.bf16.msra.mxu0 %v7514_v15  ;;  %6479 = vmatpush3.bf16.msra.mxu1 %v7498_v19  ;;  %v2921_v44 = vrot.slane %v2919_v60, 5  ;;  %v2926_v63 = vrot.slane %v2924_v50, 4  ;;  %v2929_v1 = vrot.slane %v2927_v41, 5  ;;  %v2935_v8 = vrot.slane %v2933_v53, 5 }
  0xb1   : > { %v2907_v22 = vrot.slane %v2906_v14, 4  ;;  %v2917_v33 = vrot.slane %v2916_v28, 4  ;;  %v2939_v13 = vrot.slane %v2937_v61, 4  ;;  %v2945_v27 = vrot.slane %v2943_v11, 5  ;;  %6496 = vmatprep.subr.bf16.mxu0 %v7665_v46  ;;  %6514 = vmatprep.subr.bf16.mxu1 %v7670_v20  ;;  %v7725_v11 = vld [vmem:[%s6909_s21 + $0xa4] sm:$0x1] }
  0xb2   : > { %v2930_v32 = vor.u32 %v2929_v1, %v2926_v63  ;;  %v5764_v15 = vrot.slane %v5756_v0, 9  ;;  %v2538_v19 = vrot.slane %v7458_v4, 5  ;;  %v2541_v42 = vrot.slane %v7465_v49, 5  ;;  %v5758_v1 = vld [vmem:[%s6909_s21 + $0x48] sm:$0xe] }
  0xb3   : > { %v2912_v39 = vsel %vm6950_vm3, %v2907_v22, %v2911_v56  ;;  %v2922_v17 = vsel %vm6950_vm3, %v2917_v33, %v2921_v44  ;;  %v2940_v48 = vor.u32 %v2939_v13, %v2935_v8  ;;  %v5765_v24 = vrot.slane %v5757_v25, 9 }
  0xb4   : > { %v5819_v36 = vcombine.low %v2912_v39, %v2922_v17  ;;  %v2931_v43 = vrot.slane %v2930_v32, 4  ;;  %v2539_v6 = vsel %vm7067_vm6, %v5764_v15, %v2538_v19  ;;  %v2540_v4 = vrot.slane %v2538_v19, 4 }
  0xb5   : > { %v2941_v62 = vrot.slane %v2940_v48, 4  ;;  %v2545_v49 = vrot.slane %v7474_v12, 5  ;;  %v2548_v54 = vrot.slane %v7483_v52, 5  ;;  %v2948_v56 = vshrl.u32 %v7686_v3, 16  ;;  %v7715_v12 = vld [vmem:[%s6909_s21 + $0x9c] sm:$0xf] }
  0xb6   : > { %6448 = vmatprep.mubr.msk.bf16.mxu1 %vm512_vm0, %v5819_v36  ;;  %v2936_v58 = vsel %vm6950_vm3, %v2931_v43, %v2935_v8  ;;  %v2542_v60 = vsel %vm7067_vm6, %v2540_v4, %v2541_v42  ;;  %v2951_v50 = vshll.u32 %v7686_v3, 16  ;;  %v2957_v41 = vshll.u32 %v7697_v34, 16  ;;  %v7718_v52 = vld [vmem:[%s6909_s21 + $0xa0] sm:$0xf] }
  0xb7   : > { %v2946_v53 = vsel %vm6950_vm3, %v2941_v62, %v2945_v27  ;;  %v5774_v14 = vcombine.low %v2539_v6, %v2542_v60  ;;  %v2546_v28 = vsel %vm7067_vm6, %v5765_v24, %v2545_v49  ;;  %v2547_v61 = vrot.slane %v2545_v49, 4  ;;  %v5759_v24 = vld [vmem:[%s6909_s21 + $0x54] sm:$0xe] }
  0xb8   : > { %v5820_v0 = vcombine.low %v2936_v58, %v2946_v53  ;;  %v2950_v25 = vrot.slane %v2948_v56, 4  ;;  %v2953_v44 = vrot.slane %v2951_v50, 5  ;;  %v2959_v63 = vrot.slane %v2957_v41, 5  ;;  %v7743_v58 = vld [vmem:[%s6909_s21 + $0xa8] sm:$0xf] }
  0xb9   : > { %6430 = vmatprep.mubr.msk.bf16.mxu0 %vm512_vm0, %v5774_v14  ;;  %v2549_v8 = vsel %vm7067_vm6, %v2547_v61, %v2548_v54  ;;  %v2961_v22 = vshrl.u32 %v7697_v34, 16  ;;  %v2967_v33 = vshll.u32 %v7704_v16, 16  ;;  %v2972_v13 = vshrl.u32 %v7715_v12, 16 }
  0xba   : > { %6449 = vmatmul.mubr.msk.bf16.gmra.mxu1 %vm512_vm0, %v5820_v0  ;;  %v5775_v27 = vcombine.low %v2546_v28, %v2549_v8  ;;  %v2954_v32 = vor.u32 %v2953_v44, %v2950_v25  ;;  %v2975_v15 = vshll.u32 %v7715_v12, 16  ;;  %v2981_v19 = vshll.u32 %v7718_v52, 16  ;;  %v7751_v25 = vld [vmem:[%s6909_s21 + $0xac] sm:$0xf] }
  0xbb   : > { %v2963_v42 = vrot.slane %v2961_v22, 4  ;;  %v2969_v39 = vrot.slane %v2967_v33, 5  ;;  %v2974_v17 = vrot.slane %v2972_v13, 4  ;;  %v2985_v48 = vshrl.u32 %v7718_v52, 16 }
  0xbc   : > { %6431 = vmatmul.mubr.msk.bf16.gmra.mxu0 %vm512_vm0, %v5775_v27  ;;  %v2955_v36 = vrot.slane %v2954_v32, 4  ;;  %v2977_v43 = vrot.slane %v2975_v15, 5  ;;  %v2983_v6 = vrot.slane %v2981_v19, 5  ;;  %v2991_v4 = vshll.u32 %v7725_v11, 16  ;;  %v7771_v19 = vld [vmem:[%s6909_s21 + $0xb8] sm:$0xf] }
  0xbd   : > { %v2964_v62 = vor.u32 %v2963_v42, %v2959_v63  ;;  %v2987_v49 = vrot.slane %v2985_v48, 4  ;;  %v5766_v54 = vrot.slane %v5758_v1, 9  ;;  %v2552_v56 = vrot.slane %v7491_v21, 5  ;;  %v7754_v21 = vld [vmem:[%s6909_s21 + $0xb0] sm:$0x1] }
  0xbe   : > { %v2960_v60 = vsel %vm6950_vm3, %v2955_v36, %v2959_v63  ;;  %v2978_v50 = vor.u32 %v2977_v43, %v2974_v17  ;;  %v2993_v41 = vrot.slane %v2991_v4, 5  ;;  %v2555_v53 = vrot.slane %v7504_v30, 5  ;;  %v7759_v30 = vld [vmem:[%s6909_s21 + $0xb4] sm:$0xf]  ;;  %v5760_v36 = vld [vmem:[%s6909_s21 + $0x60] sm:$0xe] }
  0xbf   : > { %v2965_v14 = vrot.slane %v2964_v62, 4  ;;  %v2988_v28 = vor.u32 %v2987_v49, %v2983_v6  ;;  %v2553_v61 = vsel %vm7067_vm6, %v5766_v54, %v2552_v56  ;;  %v2554_v0 = vrot.slane %v2552_v56, 4 }
  0xc0   : > { %v2979_v44 = vrot.slane %v2978_v50, 4  ;;  %v5767_v1 = vrot.slane %v5759_v24, 9  ;;  %v2559_v8 = vrot.slane %v7518_v40, 5  ;;  %v2562_v63 = vrot.slane %v7524_v38, 5  ;;  %v7777_v24 = vld [vmem:[%s6909_s21 + $0xbc] sm:$0x1] }
  0xc1   : > { %v2970_v22 = vsel %vm6950_vm3, %v2965_v14, %v2969_v39  ;;  %v2989_v33 = vrot.slane %v2988_v28, 4  ;;  %v2556_v13 = vsel %vm7067_vm6, %v2554_v0, %v2555_v53  ;;  %v2996_v27 = vshrl.u32 %v7743_v58, 16 }
  0xc2   : > { %v5821_v32 = vcombine.low %v2960_v60, %v2970_v22  ;;  %v2984_v15 = vsel %vm6950_vm3, %v2979_v44, %v2983_v6  ;;  %v5776_v40 = vcombine.low %v2553_v61, %v2556_v13  ;;  %v2560_v38 = vsel %vm7067_vm6, %v5767_v1, %v2559_v8 }
  0xc3   : > { %v2994_v42 = vsel %vm6950_vm3, %v2989_v33, %v2993_v41  ;;  %v2561_v39 = vrot.slane %v2559_v8, 4  ;;  %v2998_v17 = vrot.slane %v2996_v27, 4  ;;  %v2999_v48 = vshll.u32 %v7743_v58, 16 }
  0xc4   : > { %6452 = vmatprep.mubr.msk.bf16.mxu1 %vm512_vm0, %v5821_v32  ;;  %v5822_v43 = vcombine.low %v2984_v15, %v2994_v42  ;;  %6434 = vmatprep.mubr.msk.bf16.mxu0 %vm512_vm0, %v5776_v40  ;;  %v3005_v6 = vshll.u32 %v7751_v25, 16  ;;  %v3009_v4 = vshrl.u32 %v7751_v25, 16  ;;  %v3015_v62 = vshll.u32 %v7754_v21, 16  ;;  %v5761_v15 = vld [vmem:[%s6909_s21 + $0x6c] sm:$0xe] }
  0xc5   : > { %v2563_v49 = vsel %vm7067_vm6, %v2561_v39, %v2562_v63  ;;  %v3001_v54 = vrot.slane %v2999_v48, 5  ;;  %v3020_v56 = vshrl.u32 %v7759_v30, 16  ;;  %v3023_v60 = vshll.u32 %v7759_v30, 16 }
  0xc6   : > { %6453 = vmatmul.mubr.msk.bf16.gmra.mxu1 %vm512_vm0, %v5822_v43  ;;  %v5777_v50 = vcombine.low %v2560_v38, %v2563_v49  ;;  %v3007_v41 = vrot.slane %v3005_v6, 5  ;;  %v3011_v53 = vrot.slane %v3009_v4, 4  ;;  %v3017_v14 = vrot.slane %v3015_v62, 5 }
  0xc7   : > { %v3002_v28 = vor.u32 %v3001_v54, %v2998_v17  ;;  %v3022_v61 = vrot.slane %v3020_v56, 4  ;;  %v3025_v0 = vrot.slane %v3023_v60, 5  ;;  %v3029_v44 = vshll.u32 %v7771_v19, 16  ;;  %v5851_v17 = vld [vmem:[%s6909_s21 + $0x60] sm:$0xe] }
  0xc8   : > { %6435 = vmatmul.mubr.msk.bf16.gmra.mxu0 %vm512_vm0, %v5777_v50  ;;  %v3012_v1 = vor.u32 %v3011_v53, %v3007_v41  ;;  %v3033_v8 = vshrl.u32 %v7771_v19, 16  ;;  %v3039_v63 = vshll.u32 %v7777_v24, 16  ;;  %v5768_v22 = vrot.slane %v5760_v36, 9  ;;  %v5852_v54 = vld [vmem:[%s6909_s21 + $0x6c] sm:$0xe] }
  0xc9   : > { %v3003_v33 = vrot.slane %v3002_v28, 4  ;;  %v3026_v13 = vor.u32 %v3025_v0, %v3022_v61  ;;  %v3031_v27 = vrot.slane %v3029_v44, 5  ;;  %v2566_v32 = vrot.slane %v7535_v55, 5 }
  0xca   : > { %v3013_v40 = vrot.slane %v3012_v1, 4  ;;  %v3035_v38 = vrot.slane %v3033_v8, 4  ;;  %v3041_v42 = vrot.slane %v3039_v63, 5  ;;  %v2569_v39 = vrot.slane %v7548_v9, 5 }
  0xcb   : > { %v3008_v48 = vsel %vm6950_vm3, %v3003_v33, %v3007_v41  ;;  %v3027_v43 = vrot.slane %v3026_v13, 4  ;;  %v2567_v36 = vsel %vm7067_vm6, %v5768_v22, %v2566_v32  ;;  %v2568_v6 = vrot.slane %v2566_v32, 4  ;;  %v5853_v22 = vld [vmem:[%s6909_s21 + $0x78] sm:$0xe] }
  0xcc   : > { %v3018_v4 = vsel %vm6950_vm3, %v3013_v40, %v3017_v14  ;;  %v3036_v62 = vor.u32 %v3035_v38, %v3031_v27  ;;  %v5769_v55 = vrot.slane %v5761_v15, 9  ;;  %v2573_v49 = vrot.slane %v7557_v59, 5  ;;  %v5854_v38 = vld [vmem:[%s6909_s21 + $0x84] sm:$0xe] }
  0xcd   : > { %v5823_v56 = vcombine.low %v3008_v48, %v3018_v4  ;;  %v3032_v9 = vsel %vm6950_vm3, %v3027_v43, %v3031_v27  ;;  %v2570_v60 = vsel %vm7067_vm6, %v2568_v6, %v2569_v39  ;;  %v2576_v50 = vrot.slane %v7564_v35, 5 }
  0xce   : > { %v3037_v41 = vrot.slane %v3036_v62, 4  ;;  %v5778_v53 = vcombine.low %v2567_v36, %v2570_v60  ;;  %v2574_v14 = vsel %vm7067_vm6, %v5769_v55, %v2573_v49  ;;  %v2575_v28 = vrot.slane %v2573_v49, 4  ;;  %v5856_v62 = vld [vmem:[%s6909_s21 + $0x9c] sm:$0xe] }
  0xcf   : > { %6456 = vmatprep.mubr.msk.bf16.mxu1 %vm512_vm0, %v5823_v56  ;;  %v5859_v59 = vrot.slane %v5851_v17, 9  ;;  %v3389_v61 = vrot.slane %v7577_v47, 5  ;;  %v3392_v0 = vrot.slane %v7581_v51, 5  ;;  %v5860_v44 = vrot.slane %v5852_v54, 9 }
  0xd0   : > { %v3042_v1 = vsel %vm6950_vm3, %v3037_v41, %v3041_v42  ;;  %6438 = vmatprep.mubr.msk.bf16.mxu0 %vm512_vm0, %v5778_v53  ;;  %v2577_v35 = vsel %vm7067_vm6, %v2575_v28, %v2576_v50  ;;  %v3396_v8 = vrot.slane %v7593_v5, 5  ;;  %v3399_v63 = vrot.slane %v7601_v57, 5  ;;  %v5857_v41 = vld [vmem:[%s6909_s21 + $0xa8] sm:$0xe] }
  0xd1   : > { %v5824_v33 = vcombine.low %v3032_v9, %v3042_v1  ;;  %v5779_v13 = vcombine.low %v2574_v14, %v2577_v35  ;;  %v3390_v27 = vsel %vm7067_vm6, %v5859_v59, %v3389_v61  ;;  %v3391_v51 = vrot.slane %v3389_v61, 4 }
  0xd2   : > { %v3397_v32 = vsel %vm7067_vm6, %v5860_v44, %v3396_v8  ;;  %v3398_v15 = vrot.slane %v3396_v8, 4  ;;  %v5834_v40 = vcombine.low %v7572_v7, %v7577_v47  ;;  %v5861_v42 = vrot.slane %v5853_v22, 9  ;;  %v5855_v47 = vld [vmem:[%s6909_s21 + $0x90] sm:$0xe] }
  0xd3   : > { %6457 = vmatmul.mubr.msk.bf16.gmra.mxu1 %vm512_vm0, %v5824_v33  ;;  %6439 = vmatmul.mubr.msk.bf16.gmra.mxu0 %vm512_vm0, %v5779_v13  ;;  %v3393_v57 = vsel %vm7067_vm6, %v3391_v51, %v3392_v0  ;;  %v3403_v39 = vrot.slane %v7632_v23, 5  ;;  %v3406_v17 = vrot.slane %v7638_v18, 5  ;;  %v3410_v7 = vrot.slane %v7644_v45, 5  ;;  %v7895_v51 = vld [vmem:[%s6909_s21 + $0x70] sm:$0xf] }
  0xd4   : > { %v5869_v48 = vcombine.low %v3390_v27, %v3393_v57  ;;  %v3400_v43 = vsel %vm7067_vm6, %v3398_v15, %v3399_v63  ;;  %6462 = vmatprep.mubr.msk.bf16.mxu0 %vm512_vm0, %v5834_v40  ;;  %v5835_v36 = vcombine.low %v7589_v29, %v7593_v5  ;;  %v5862_v4 = vrot.slane %v5854_v38, 9  ;;  %v5921_v27 = vld [vmem:[%s6909_s21 + $0x6c] sm:$0xf]  ;;  %v7911_v38 = vld [vmem:[%s6909_s21 + $0x74] sm:$0x1] }
  0xd5   : > { %v3405_v6 = vrot.slane %v3403_v39, 4  ;;  %v5870_v18 = vcombine.low %v3397_v32, %v3400_v43  ;;  %v3404_v55 = vsel %vm7067_vm6, %v5861_v42, %v3403_v39  ;;  %v3412_v49 = vrot.slane %v3410_v7, 4  ;;  %v5924_v39 = vld [vmem:[%s6909_s21 + $0x78] sm:$0xf] }
  0xd6   : > { %6480 = vmatprep.mubr.msk.bf16.mxu1 %vm512_vm0, %v5869_v48  ;;  %v3413_v54 = vrot.slane %v7660_v26, 5  ;;  %v5863_v9 = vrot.slane %v5855_v47, 9  ;;  %v3417_v60 = vrot.slane %v7697_v34, 5  ;;  %v3420_v29 = vrot.slane %v7704_v16, 5  ;;  %v5858_v26 = vld [vmem:[%s6909_s21 + $0xb4] sm:$0xe] }
  0xd7   : > { %v3407_v56 = vsel %vm7067_vm6, %v3405_v6, %v3406_v17  ;;  %v5864_v5 = vrot.slane %v5856_v62, 9  ;;  %v3424_v50 = vrot.slane %v7718_v52, 5  ;;  %v5836_v14 = vcombine.low %v7627_v37, %v7632_v23  ;;  %v7868_v37 = vld [vmem:[%s9339_s1 + $0x28] sm:$0xff]   ;;  %v7873_v23 = vld [vmem:[%s9339_s1 + $0x30] sm:$0xff]   ;;  %v7926_v47 = vld [vmem:[%s6909_s21 + $0x7c] sm:$0xf] }
  0xd8   : > { %v5871_v53 = vcombine.low %v3404_v55, %v3407_v56  ;;  %v3419_v28 = vrot.slane %v3417_v60, 4  ;;  %v3427_v59 = vrot.slane %v7725_v11, 5  ;;  %v3411_v61 = vsel %vm7067_vm6, %v5862_v4, %v3410_v7 }
  0xd9   : > { %v3414_v0 = vsel %vm7067_vm6, %v3412_v49, %v3413_v54  ;;  %v3418_v16 = vsel %vm7067_vm6, %v5863_v9, %v3417_v60  ;;  %v3426_v44 = vrot.slane %v3424_v50, 4  ;;  %v7881_v1 = vsel %vm7067_vm6, %v5864_v5, %v3424_v50  ;;  %v5927_v50 = vld [vmem:[%s6909_s21 + $0x84] sm:$0xf] }
  0xda   : > { %v3421_v11 = vsel %vm7067_vm6, %v3419_v28, %v3420_v29  ;;  %v5865_v35 = vrot.slane %v5857_v41, 9  ;;  %v3431_v8 = vrot.slane %v7751_v25, 5  ;;  %v5837_v63 = vcombine.low %v7641_v2, %v7644_v45  ;;  %v7952_v28 = vld [vmem:[%s6909_s21 + $0x88] sm:$0xf] }
  0xdb   : > { %6481 = vmatmul.mubr.msk.bf16.vlgmr.msra.gmra.mxu1 %vm512_vm0, %v5870_v18  ;;  %6463 = vmatmul.mubr.msk.bf16.vlgmr.msra.gmra.mxu0 %vm512_vm0, %v5835_v36  ;;  %v7890_v22 = vsel %vm7067_vm6, %v3426_v44, %v3427_v59  ;;  %v5866_v33 = vrot.slane %v5858_v26, 9  ;;  %v3438_v13 = vrot.slane %v7771_v19, 5  ;;  %v5839_v2 = vcombine.low %v7715_v12, %v7718_v52  ;;  %v7932_v18 = vld [vmem:[%s6909_s21 + $0x80] sm:$0x1] }
  0xdc   : > { %6497 = vmatpush3.bf16.msra.mxu0 %v7665_v46  ;;  %6515 = vmatpush3.bf16.msra.mxu1 %v7670_v20  ;;  %v5872_v46 = vcombine.low %v3411_v61, %v3414_v0  ;;  %v5838_v20 = vcombine.low %v7686_v3, %v7697_v34  ;;  %v5873_v45 = vcombine.low %v3418_v16, %v3421_v11  ;;  %v3434_v40 = vrot.slane %v7754_v21, 5 }
  0xdd   : > { %6484 = vmatprep.mubr.msk.bf16.mxu1 %vm512_vm0, %v5871_v53  ;;  %6466 = vmatprep.mubr.msk.bf16.mxu0 %vm512_vm0, %v5836_v14  ;;  %v5874_v32 = vcombine.low %v7881_v1, %v7890_v22  ;;  %v7907_v15 = vsel %vm7067_vm6, %v5865_v35, %v3431_v8  ;;  %v3433_v3 = vrot.slane %v3431_v8, 4  ;;  %v3839_v34 = vshrl.u32 %v5921_v27, 16 }
  0xde   : > { %6532 = vmatprep.subr.bf16.mxu0 %v7868_v37  ;;  %6550 = vmatprep.subr.bf16.mxu1 %v7873_v23  ;;  %v3842_v57 = vshll.u32 %v5921_v27, 16  ;;  %v3848_v42 = vshll.u32 %v7895_v51, 16  ;;  %v7919_v17 = vsel %vm7067_vm6, %v5866_v33, %v3438_v13  ;;  %v3440_v48 = vrot.slane %v3438_v13, 4  ;;  %v7960_v13 = vld [vmem:[%s6909_s21 + $0x8c] sm:$0x1] }
  0xdf   : > { %v3441_v21 = vrot.slane %v7777_v24, 5  ;;  %v3852_v43 = vshrl.u32 %v7895_v51, 16  ;;  %v3841_v36 = vrot.slane %v3839_v34, 4  ;;  %v3858_v62 = vshll.u32 %v7911_v38, 16 }
  0xe0   : > { %v7923_v7 = vpop.f32.mrf.mxu1  ;;  %v3844_v6 = vrot.slane %v3842_v57, 5  ;;  %v7928_v4 = vrot.slane %v3848_v42, 5  ;;  %v5840_v55 = vcombine.low %v7743_v58, %v7751_v25  ;;  %v3863_v24 = vshrl.u32 %v5924_v39, 16  ;;  %v7966_v57 = vld [vmem:[%s6909_s21 + $0x94] sm:$0xf] }
  0xe1   : > { %v3854_v49 = vrot.slane %v3852_v43, 4  ;;  %v3866_v54 = vshll.u32 %v5924_v39, 16  ;;  %v3435_v9 = vsel %vm7067_vm6, %v3433_v3, %v3434_v40  ;;  %v3872_v29 = vshll.u32 %v7926_v47, 16 }
  0xe2   : > { %v7936_v56 = vpop.f32.mrf.mxu1  ;;  %v3845_v60 = vor.u32 %v3844_v6, %v3841_v36  ;;  %v3876_v5 = vshrl.u32 %v7926_v47, 16  ;;  %v3865_v25 = vrot.slane %v3863_v24, 4  ;;  %v3882_v53 = vshll.u32 %v7932_v18, 16 }
  0xe3   : > { %6485 = vmatmul.mubr.msk.bf16.gmra.mxu1 %vm512_vm0, %v5872_v46  ;;  %6467 = vmatmul.mubr.msk.bf16.gmra.mxu0 %vm512_vm0, %v5837_v63  ;;  %v3855_v58 = vor.u32 %v3854_v49, %v7928_v4  ;;  %v3868_v41 = vrot.slane %v3866_v54, 5  ;;  %v5841_v59 = vcombine.low %v7759_v30, %v7771_v19  ;;  %v3860_v26 = vrot.slane %v3858_v62, 5 }
  0xe4   : > { %6488 = vmatprep.mubr.msk.bf16.mxu1 %vm512_vm0, %v5873_v45  ;;  %6470 = vmatprep.mubr.msk.bf16.mxu0 %vm512_vm0, %v5838_v20  ;;  %v7949_v14 = vpop.f32.mrf.mxu1  ;;  %v3874_v61 = vrot.slane %v3872_v29, 5  ;;  %v3878_v0 = vrot.slane %v3876_v5, 4  ;;  %v3846_v16 = vrot.slane %v3845_v60, 4  ;;  %v3887_v8 = vshrl.u32 %v5927_v50, 16  ;;  %v5930_v20 = vld [vmem:[%s6909_s21 + $0x90] sm:$0xf] }
  0xe5   : > { %v3856_v44 = vrot.slane %v3855_v58, 4  ;;  %v3869_v11 = vor.u32 %v3868_v41, %v3865_v25  ;;  %v5875_v63 = vcombine.low %v7907_v15, %v3435_v9  ;;  %v3890_v27 = vshll.u32 %v5927_v50, 16 }
  0xe6   : > { %v7956_v35 = vpop.f32.mrf.mxu1  ;;  %v3879_v33 = vor.u32 %v3878_v0, %v3874_v61  ;;  %v3896_v46 = vshll.u32 %v7952_v28, 16  ;;  %v3884_v40 = vrot.slane %v3882_v53, 5  ;;  %v3889_v3 = vrot.slane %v3887_v8, 4  ;;  %v6708_v8 = vld [vmem:[%s6909_s21 + $0x6c] sm:$0xff]  }
  0xe7   : > { %v3870_v45 = vrot.slane %v3869_v11, 4  ;;  %v3900_v34 = vshrl.u32 %v7952_v28, 16  ;;  %v3442_v42 = vsel %vm7067_vm6, %v3440_v48, %v3441_v21  ;;  %v3892_v43 = vrot.slane %v3890_v27, 5 }
  0xe8   : > { %v3880_v39 = vrot.slane %v3879_v33, 4  ;;  %v7970_v15 = vrot.slane %v3896_v46, 5  ;;  %v3851_v36 = vsel %vm6950_vm3, %v3846_v16, %v7928_v4  ;;  %v3861_v6 = vsel %vm6950_vm3, %v3856_v44, %v3860_v26  ;;  %v8020_v44 = vld [vmem:[%s6909_s21 + $0xa4] sm:$0x1] }
  0xe9   : > { %v3902_v62 = vrot.slane %v3900_v34, 4  ;;  %v3911_v24 = vshrl.u32 %v5930_v20, 16  ;;  %v3893_v48 = vor.u32 %v3892_v43, %v3889_v3  ;;  %v3906_v21 = vshll.u32 %v7960_v13, 16 }
  0xea   : > { %v7977_v49 = vpop.f32.mrf.mxu1  ;;  %v3914_v4 = vshll.u32 %v5930_v20, 16  ;;  %v3920_v54 = vshll.u32 %v7966_v57, 16  ;;  %v3875_v1 = vsel %vm6950_vm3, %v3870_v45, %v3874_v61  ;;  %v3885_v22 = vsel %vm6950_vm3, %v3880_v39, %v3884_v40  ;;  %v5936_v45 = vld [vmem:[%s6909_s21 + $0xa8] sm:$0xf] }
  0xeb   : > { %6489 = vmatmul.mubr.msk.bf16.gmra.mxu1 %vm512_vm0, %v5874_v32  ;;  %6471 = vmatmul.mubr.msk.bf16.gmra.mxu0 %vm512_vm0, %v5839_v2  ;;  %v3903_v52 = vor.u32 %v3902_v62, %v7970_v15  ;;  %v5933_v32 = vld [vmem:[%s6909_s21 + $0x9c] sm:$0xf]  ;;  %v8002_v60 = vrot.slane %v3893_v48, 4  ;;  %v3913_v29 = vrot.slane %v3911_v24, 4  ;;  %v5876_v50 = vcombine.low %v7919_v17, %v3442_v42  ;;  %v8042_v24 = vld [vmem:[%s6909_s21 + $0xac] sm:$0xf] }
  0xec   : > { %6492 = vmatprep.mubr.msk.bf16.mxu1 %vm512_vm0, %v5875_v63  ;;  %6474 = vmatprep.mubr.msk.bf16.mxu0 %vm512_vm0, %v5840_v55  ;;  %v6284_v12 = vpop.f32.mrf.mxu0  ;;  %v7996_v2 = vpop.f32.mrf.mxu1  ;;  %v8005_v55 = vld [vmem:[%s6909_s21 + $0x98] sm:$0x1]  ;;  %v3916_v5 = vrot.slane %v3914_v4, 5  ;;  %v5947_v58 = vcombine.low %v3851_v36, %v3861_v6  ;;  %v8008_v41 = vrot.slane %v3920_v54, 5  ;;  %v3924_v53 = vshrl.u32 %v7966_v57, 16 }
  0xed   : > { %v8000_v9 = vadd.f32 %v7923_v7, %v6284_v12  ;;  %v8014_v7 = vld [vmem:[%s6909_s21 + $0xa0] sm:$0xf]  ;;  %v3904_v0 = vrot.slane %v3903_v52, 4  ;;  %v3908_v16 = vrot.slane %v3906_v21, 5  ;;  %v3935_v11 = vshrl.u32 %v5933_v32, 16 }
  0xee   : > { %v571_v25 = vpop.f32.mrf.mxu0  ;;  %v8011_v26 = vpop.f32.mrf.mxu1  ;;  %v8022_v17 = vcombine.low %v3875_v1, %v3885_v22  ;;  %v3926_v33 = vrot.slane %v3924_v53, 4  ;;  %v3930_v27 = vshll.u32 %v8005_v55, 16  ;;  %v3938_v20 = vshll.u32 %v5933_v32, 16  ;;  %v6710_v53 = vld [vmem:[%s6909_s21 + $0x78] sm:$0xff]  }
  0xef   : > { %v8017_v61 = vadd.f32 %v7936_v56, %v571_v25  ;;  %v3899_v56 = vsel %vm6950_vm3, %v8002_v60, %v7970_v15  ;;  %v3917_v3 = vor.u32 %v3916_v5, %v3913_v29  ;;  %v3937_v34 = vrot.slane %v3935_v11, 4  ;;  %v5939_v25 = vld [vmem:[%s6909_s21 + $0xb4] sm:$0xf] }
  0xf0   : > { %v6285_v63 = vpop.f32.mrf.mxu0  ;;  %v8026_v46 = vpop.f32.mrf.mxu1  ;;  %v3927_v42 = vor.u32 %v3926_v33, %v8008_v41  ;;  %v3940_v43 = vrot.slane %v3938_v20, 5  ;;  %v3944_v36 = vshll.u32 %v8014_v7, 16  ;;  %v3948_v6 = vshrl.u32 %v8014_v7, 16 }
  0xf1   : > { %v8034_v40 = vadd.f32 %v7949_v14, %v6285_v63  ;;  %v3909_v14 = vsel %vm6950_vm3, %v3904_v0, %v3908_v16  ;;  %v3954_v48 = vshll.u32 %v8020_v44, 16  ;;  %v3959_v21 = vshrl.u32 %v5936_v45, 16 }
  0xf2   : > { %v574_v39 = vpop.f32.mrf.mxu0  ;;  %v8039_v62 = vpop.f32.mrf.mxu1  ;;  %v3932_v4 = vrot.slane %v3930_v27, 5  ;;  %v3941_v54 = vor.u32 %v3940_v43, %v3937_v34  ;;  %v8057_v30 = vrot.slane %v3944_v36, 5  ;;  %v3950_v19 = vrot.slane %v3948_v6, 4  ;;  %v6712_v27 = vld [vmem:[%s6909_s21 + $0x84] sm:$0xff]   ;;  %v8088_v36 = vld [vmem:[%s6909_s21 + $0xb8] sm:$0xf] }
  0xf3   : > { %6493 = vmatmul.mubr.msk.bf16.gmra.mxu1 %vm512_vm0, %v5876_v50  ;;  %6475 = vmatmul.mubr.msk.bf16.gmra.mxu0 %vm512_vm0, %v5841_v59  ;;  %v8052_v15 = vadd.f32 %v7956_v35, %v574_v39  ;;  %v3918_v1 = vrot.slane %v3917_v3, 4  ;;  %v3928_v35 = vrot.slane %v3927_v42, 4  ;;  %v3962_v12 = vshll.u32 %v5936_v45, 16  ;;  %v8067_v50 = vld [vmem:[%s6909_s21 + $0xb0] sm:$0x1] }
  0xf4   : > { %6516 = vmatprep.mubr.msk.bf16.mxu1 %vm512_vm0, %v5947_v58  ;;  %6498 = vmatprep.mubr.msk.bf16.mxu0 %vm512_vm0, %v6708_v8  ;;  %v8059_v59 = vpop.f32.mrf.mxu1  ;;  %v3968_v52 = vshll.u32 %v8042_v24, 16  ;;  %v3942_v60 = vrot.slane %v3941_v54, 4  ;;  %v3951_v29 = vor.u32 %v3950_v19, %v8057_v30  ;;  %v3956_v5 = vrot.slane %v3954_v48, 5  ;;  %v8104_v48 = vld [vmem:[%s6909_s21 + $0xbc] sm:$0x1]  ;;  %v8110_v19 = vld [vmem:[%s9339_s1 + $0x40] sm:$0xff]  }
  0xf5   : > { %v6288_v22 = vpop.f32.mrf.mxu0  ;;  %v3961_v16 = vrot.slane %v3959_v21, 4  ;;  %v3964_v11 = vrot.slane %v3962_v12, 5  ;;  %v3972_v63 = vshrl.u32 %v8042_v24, 16  ;;  %v5949_v33 = vcombine.low %v3899_v56, %v3909_v14  ;;  %v8093_v56 = vld [vmem:[%s9339_s1 + $0x38] sm:$0xff]   ;;  %v5942_v54 = vld [vmem:[%s6909_s21 + $0xc0] sm:$0xf] }
  0xf6   : > { %v8063_v32 = vadd.f32 %v7977_v49, %v6288_v22  ;;  %v8069_v58 = vpop.f32.mrf.mxu1  ;;  %v8073_v8 = vrot.slane %v3968_v52, 5  ;;  %v4240_v49 = vrot.slane %v7926_v47, 5  ;;  %v3952_v45 = vrot.slane %v3951_v29, 4  ;;  %v8128_v29 = vld [vmem:[%s6909_s21 + $0xc4] sm:$0xf] }
  0xf7   : > { %v587_v0 = vpop.f32.mrf.mxu0  ;;  %v3923_v34 = vsel %vm6950_vm3, %v3918_v1, %v8008_v41  ;;  %v3974_v39 = vrot.slane %v3972_v63, 4  ;;  %v3978_v43 = vshll.u32 %v8067_v50, 16  ;;  %v3983_v6 = vshrl.u32 %v5939_v25, 16  ;;  %v6713_v63 = vld [vmem:[%s6909_s21 + $0x90] sm:$0xff]  }
  0xf8   : > { %v8079_v20 = vadd.f32 %v7996_v2, %v587_v0  ;;  %v8081_v3 = vpop.f32.mrf.mxu1  ;;  %v3933_v2 = vsel %vm6950_vm3, %v3928_v35, %v3932_v4  ;;  %v3947_v14 = vsel %vm6950_vm3, %v3942_v60, %v8057_v30  ;;  %v3986_v21 = vshll.u32 %v5939_v25, 16 }
  0xf9   : > { %v6289_v42 = vpop.f32.mrf.mxu0  ;;  %v3957_v4 = vsel %vm6950_vm3, %v3952_v45, %v3956_v5  ;;  %v3975_v30 = vor.u32 %v3974_v39, %v8073_v8  ;;  %v3985_v35 = vrot.slane %v3983_v6, 4  ;;  %v3992_v52 = vshll.u32 %v8088_v36, 16  ;;  %v6714_v6 = vld [vmem:[%s6909_s21 + $0x9c] sm:$0xff]  }
  0xfa   : > { %v8101_v41 = vadd.f32 %v8011_v26, %v6289_v42  ;;  %v3965_v26 = vor.u32 %v3964_v11, %v3961_v16  ;;  %v3996_v60 = vshrl.u32 %v8088_v36, 16  ;;  %v5950_v5 = vcombine.low %v3923_v34, %v3933_v2 }
  0xfb   : > { %6517 = vmatmul.mubr.msk.bf16.vlgmr.msra.gmra.mxu1 %vm512_vm0, %v8022_v17  ;;  %6499 = vmatmul.mubr.msk.bf16.vlgmr.msra.gmra.mxu0 %vm512_vm0, %v6710_v53  ;;  %v590_v1 = vpop.f32.mrf.mxu0  ;;  %v8118_v22 = vpop.f32.mrf.mxu1  ;;  %v3988_v17 = vrot.slane %v3986_v21, 5  ;;  %v3980_v25 = vrot.slane %v3978_v43, 5  ;;  %v8135_v0 = vrot.slane %v3992_v52, 5  ;;  %v4010_v11 = vshll.u32 %v5942_v54, 16 }
  0xfc   : > { %6533 = vmatpush3.bf16.msra.mxu0 %v7868_v37  ;;  %6551 = vmatpush3.bf16.msra.mxu1 %v7873_v23  ;;  %v8123_v12 = vadd.f32 %v8026_v46, %v590_v1  ;;  %v4002_v37 = vshll.u32 %v8104_v48, 16  ;;  %v4007_v23 = vshrl.u32 %v5942_v54, 16  ;;  %v3998_v16 = vrot.slane %v3996_v60, 4  ;;  %v8149_v1 = vld [vmem:[%s6909_s21 + $0xc8] sm:$0x1] }
  0xfd   : > { %6520 = vmatprep.mubr.msk.bf16.mxu1 %vm512_vm0, %v5949_v33  ;;  %6502 = vmatprep.mubr.msk.bf16.mxu0 %vm512_vm0, %v6712_v27  ;;  %v8133_v46 = vpop.f32.mrf.mxu1  ;;  %v3989_v53 = vor.u32 %v3988_v17, %v3985_v35  ;;  %v5951_v33 = vcombine.low %v3947_v14, %v3957_v4  ;;  %v3966_v27 = vrot.slane %v3965_v26, 4  ;;  %v4016_v42 = vshll.u32 %v8128_v29, 16 }
  0xfe   : > { %6568 = vmatprep.subr.bf16.mxu0 %v8093_v56  ;;  %6586 = vmatprep.subr.bf16.mxu1 %v8110_v19  ;;  %v4009_v34 = vrot.slane %v4007_v23, 4  ;;  %v3976_v43 = vrot.slane %v3975_v30, 4  ;;  %v3999_v54 = vor.u32 %v3998_v16, %v8135_v0  ;;  %v4004_v14 = vrot.slane %v4002_v37, 5 }
  0xff   : > { %v6292_v45 = vpop.f32.mrf.mxu0  ;;  %v8141_v39 = vpop.f32.mrf.mxu1  ;;  %v3990_v21 = vrot.slane %v3989_v53, 4  ;;  %v4012_v4 = vrot.slane %v4010_v11, 5  ;;  %v8151_v26 = vrot.slane %v4016_v42, 5  ;;  %v4020_v17 = vshrl.u32 %v8128_v29, 16  ;;  %v5964_v53 = vld [vmem:[%s6909_s21 + $0x6c] sm:$0xe] }
 0x100   : > { %v8145_v2 = vadd.f32 %v8039_v62, %v6292_v45  ;;  %v4243_v30 = vrot.slane %v7932_v18, 5  ;;  %v4000_v23 = vrot.slane %v3999_v54, 4  ;;  %v3971_v37 = vsel %vm6950_vm3, %v3966_v27, %v8073_v8 }
 0x101   : > { %v603_v35 = vpop.f32.mrf.mxu0  ;;  %v8154_v52 = vpop.f32.mrf.mxu1  ;;  %v4013_v11 = vor.u32 %v4012_v4, %v4009_v34  ;;  %v4022_v45 = vrot.slane %v4020_v17, 4  ;;  %v4026_v18 = vshll.u32 %v8149_v1, 16  ;;  %v3995_v8 = vsel %vm6950_vm3, %v3990_v21, %v8135_v0  ;;  %v6715_v17 = vld [vmem:[%s6909_s21 + $0xa8] sm:$0xff]  }
 0x102   : > { %v8159_v60 = vadd.f32 %v8059_v59, %v603_v35  ;;  %v5965_v59 = vld [vmem:[%s6909_s21 + $0x78] sm:$0xe]  ;;  %v4233_v27 = vrot.slane %v7895_v51, 5  ;;  %v4005_v34 = vsel %vm6950_vm3, %v4000_v23, %v4004_v14  ;;  %v4242_v62 = vrot.slane %v4240_v49, 4 }
 0x103   : > { %6521 = vmatmul.mubr.msk.bf16.gmra.mxu1 %vm512_vm0, %v5950_v5  ;;  %6503 = vmatmul.mubr.msk.bf16.gmra.mxu0 %vm512_vm0, %v6713_v63  ;;  %v6293_v16 = vpop.f32.mrf.mxu0  ;;  %v8168_v42 = vpop.f32.mrf.mxu1  ;;  %v3981_v5 = vsel %vm6950_vm3, %v3976_v43, %v3980_v25  ;;  %v5972_v25 = vrot.slane %v5964_v53, 9  ;;  %v4236_v43 = vrot.slane %v7911_v38, 5  ;;  %v4014_v4 = vrot.slane %v4013_v11, 4  ;;  %v6716_v38 = vld [vmem:[%s6909_s21 + $0xb4] sm:$0xff]  }
 0x104   : > { %6524 = vmatprep.mubr.msk.bf16.mxu1 %vm512_vm0, %v5951_v33  ;;  %6506 = vmatprep.mubr.msk.bf16.mxu0 %vm512_vm0, %v6714_v6  ;;  %v8179_v63 = vadd.f32 %v8069_v58, %v6293_v16  ;;  %v4023_v33 = vor.u32 %v4022_v45, %v8151_v26  ;;  %v5966_v6 = vld [vmem:[%s6909_s21 + $0x84] sm:$0xe]  ;;  %v4235_v58 = vrot.slane %v4233_v27, 4  ;;  %v5973_v21 = vrot.slane %v5965_v59, 9 }
 0x105   : > { %v606_v54 = vpop.f32.mrf.mxu0  ;;  %v8185_v35 = vpop.f32.mrf.mxu1  ;;  %v5952_v51 = vcombine.low %v3971_v37, %v3981_v5  ;;  %v4028_v14 = vrot.slane %v4026_v18, 5  ;;  %v5953_v53 = vcombine.low %v3995_v8, %v4005_v34  ;;  %v4247_v59 = vrot.slane %v7952_v28, 5 }
 0x106   : > { %v8190_v0 = vadd.f32 %v8081_v3, %v606_v54  ;;  %v4024_v16 = vrot.slane %v4023_v33, 4  ;;  %v5974_v3 = vrot.slane %v5966_v6, 9  ;;  %v4271_v37 = vrot.slane %v8067_v50, 5 }
 0x107   : > { %v6296_v23 = vpop.f32.mrf.mxu0  ;;  %v8193_v45 = vpop.f32.mrf.mxu1  ;;  %v8205_v18 = vsel %vm7067_vm6, %v5972_v25, %v4233_v27  ;;  %v8209_v33 = vsel %vm7067_vm6, %v4235_v58, %v4236_v43  ;;  %v4250_v34 = vrot.slane %v7960_v13, 5  ;;  %v8224_v27 = vsel %vm7067_vm6, %v5973_v21, %v4240_v49  ;;  %v5967_v25 = vld [vmem:[%s6909_s21 + $0x90] sm:$0xe]  ;;  %v5968_v43 = vld [vmem:[%s6909_s21 + $0x9c] sm:$0xe] }
 0x108   : > { %v8199_v11 = vadd.f32 %v8118_v22, %v6296_v23  ;;  %v4019_v22 = vsel %vm6950_vm3, %v4014_v4, %v8151_v26  ;;  %v4249_v54 = vrot.slane %v4247_v59, 4  ;;  %v4029_v13 = vsel %vm6950_vm3, %v4024_v16, %v4028_v14  ;;  %v5970_v14 = vld [vmem:[%s6909_s21 + $0xb4] sm:$0xe] }
 0x109   : > { %v619_v5 = vpop.f32.mrf.mxu0  ;;  %v8211_v8 = vpop.f32.mrf.mxu1  ;;  %v4254_v49 = vrot.slane %v7966_v57, 5  ;;  %v4261_v6 = vrot.slane %v8014_v7, 5  ;;  %v5969_v57 = vld [vmem:[%s6909_s21 + $0xa8] sm:$0xe]  ;;  %v4264_v16 = vrot.slane %v8020_v44, 5 }
 0x10a   : > { %v8218_v28 = vadd.f32 %v8133_v46, %v619_v5  ;;  %v8234_v46 = vsel %vm7067_vm6, %v4242_v62, %v4243_v30  ;;  %v5982_v30 = vcombine.low %v8205_v18, %v8209_v33  ;;  %v8250_v62 = vsel %vm7067_vm6, %v5974_v3, %v4247_v59  ;;  %v6717_v5 = vld [vmem:[%s6909_s21 + $0xc0] sm:$0xff]   ;;  %v6718_v18 = vld [vmem:[%s6909_s21 + $0x78] sm:$0xff]  }
 0x10b   : > { %6525 = vmatmul.mubr.msk.bf16.gmra.mxu1 %vm512_vm0, %v5952_v51  ;;  %6507 = vmatmul.mubr.msk.bf16.gmra.mxu0 %vm512_vm0, %v6715_v17  ;;  %v6297_v26 = vpop.f32.mrf.mxu0  ;;  %v8236_v47 = vpop.f32.mrf.mxu1  ;;  %v8257_v51 = vsel %vm7067_vm6, %v4249_v54, %v4250_v34  ;;  %v5975_v17 = vrot.slane %v5967_v25, 9  ;;  %v4268_v3 = vrot.slane %v8042_v24, 5  ;;  %v5954_v59 = vcombine.low %v4019_v22, %v4029_v13  ;;  %v5971_v13 = vld [vmem:[%s6909_s21 + $0xc0] sm:$0xe] }
 0x10c   : > { %6528 = vmatprep.mubr.msk.bf16.mxu1 %vm512_vm0, %v5953_v53  ;;  %6510 = vmatprep.mubr.msk.bf16.mxu0 %vm512_vm0, %v6716_v38  ;;  %v8244_v58 = vadd.f32 %v8141_v39, %v6297_v26  ;;  %v5976_v39 = vrot.slane %v5968_v43, 9  ;;  %v4256_v53 = vrot.slane %v4254_v49, 4  ;;  %v4263_v38 = vrot.slane %v4261_v6, 4  ;;  %v6077_v26 = vld [vmem:[%s6909_s21 + $0x78] sm:$0xe] }
 0x10d   : > { %v622_v7 = vpop.f32.mrf.mxu0  ;;  %v8253_v21 = vpop.f32.mrf.mxu1  ;;  %v5977_v44 = vrot.slane %v5969_v57, 9  ;;  %v5978_v24 = vrot.slane %v5970_v14, 9  ;;  %v4278_v22 = vrot.slane %v8104_v48, 5  ;;  %v8282_v34 = vsel %vm7067_vm6, %v5975_v17, %v4254_v49  ;;  %v8291_v14 = vld [vmem:[%s6909_s21 + $0x7c] sm:$0xf] }
 0x10e   : > { %v8262_v23 = vadd.f32 %v8154_v52, %v622_v7  ;;  %v4275_v52 = vrot.slane %v8088_v36, 5  ;;  %v4270_v36 = vrot.slane %v4268_v3, 4  ;;  %v9351_v43 = vrot.slane %v8005_v55, 5 }
 0x10f   : > { %v6320_v33 = vpop.f32.mrf.mxu0  ;;  %v8269_v54 = vpop.f32.mrf.mxu1  ;;  %v8304_v17 = vsel %vm7067_vm6, %v4263_v38, %v4264_v16  ;;  %v8316_v55 = vsel %vm7067_vm6, %v5977_v44, %v4268_v3  ;;  %v8325_v38 = vld [vmem:[%s6909_s21 + $0x84] sm:$0xe]  ;;  %v5077_v3 = vrot.slane %v8291_v14, 5  ;;  %v8343_v44 = vld [vmem:[%s6909_s21 + $0x88] sm:$0xf] }
 0x110   : > { %9349 = vst [vmem:[#allocation5_spill] sm:$0xff] %v8269_v54  ;;  %v8273_v25 = vadd.f32 %v6320_v33, %v8000_v9  ;;  %v8288_v9 = vsel %vm7067_vm6, %v5976_v39, %v4261_v6  ;;  %v4277_v33 = vrot.slane %v4275_v52, 4  ;;  %v8300_v49 = vsel %vm7067_vm6, %v4256_v53, %v9351_v43  ;;  %v8308_v39 = vld [vmem:[%s6909_s21 + $0x80] sm:$0x1] }
 0x111   : > { %v975_v7 = vpop.f32.mrf.mxu0  ;;  %v8284_v57 = vpop.f32.mrf.mxu1  ;;  %v4282_v6 = vrot.slane %v8128_v29, 5  ;;  %v8322_v16 = vsel %vm7067_vm6, %v4270_v36, %v4271_v37  ;;  %v5979_v29 = vrot.slane %v5971_v13, 9  ;;  %v6085_v53 = vrot.slane %v6077_v26, 9 }
 0x112   : > { %9350 = vst [vmem:[#allocation6_spill] sm:$0xff] %v8284_v57  ;;  %v8294_v48 = vadd.f32 %v975_v7, %v8017_v61  ;;  %v8335_v50 = vsel %vm7067_vm6, %v5978_v24, %v4275_v52  ;;  %v8339_v37 = vsel %vm7067_vm6, %v4277_v33, %v4278_v22  ;;  %v6719_v33 = vld [vmem:[%s6909_s21 + $0x84] sm:$0xff]   ;;  %v5079_v4 = vrot.slane %v5077_v3, 4 }
 0x113   : > { %6529 = vmatmul.mubr.msk.bf16.gmra.mxu1 %vm512_vm0, %v5954_v59  ;;  %6511 = vmatmul.mubr.msk.bf16.gmra.mxu0 %vm512_vm0, %v6717_v5  ;;  %v6321_v61 = vpop.f32.mrf.mxu0  ;;  %v8312_v7 = vpop.f32.mrf.mxu1  ;;  %v6034_v59 = vld [vmem:[%s6909_s21 + $0x78] sm:$0xf]  ;;  %v4284_v52 = vrot.slane %v4282_v6, 4  ;;  %v8365_v24 = vsel %vm7067_vm6, %v5979_v29, %v4282_v6  ;;  %v9356_v6 = vrot.slane %v8149_v1, 5  ;;  %v4696_v13 = vshrl.u32 %v8291_v14, 16 }
 0x114   : > { %9352 = vst [vmem:[#allocation7_spill] sm:$0xff] %v8312_v7  ;;  %6552 = vmatprep.mubr.msk.bf16.mxu1 %vm512_vm0, %v6718_v18  ;;  %6534 = vmatprep.mubr.msk.bf16.mxu0 %vm512_vm0, %v5982_v30  ;;  %v8331_v5 = vadd.f32 %v6321_v61, %v8034_v40  ;;  %v4683_v36 = vshrl.u32 %v6034_v59, 16  ;;  %v6037_v7 = vld [vmem:[%s6909_s21 + $0x84] sm:$0xf]  ;;  %v6722_v40 = vld [vmem:[%s6909_s21 + $0x90] sm:$0xff]   ;;  %v9358_v1 = vcombine.low %v8224_v27, %v8234_v46 }
 0x115   : > { %v978_v43 = vpop.f32.mrf.mxu0  ;;  %v8347_v18 = vpop.f32.mrf.mxu1  ;;  %v8386_v29 = vsel %vm7067_vm6, %v4284_v52, %v9356_v6  ;;  %v4710_v46 = vshll.u32 %v6037_v7, 16 }
 0x116   : > { %9353 = vst [vmem:[#allocation8_spill] sm:$0xff] %v8347_v18  ;;  %v8353_v22 = vadd.f32 %v978_v43, %v8052_v15  ;;  %v8369_v15 = vsel %vm7067_vm6, %v6085_v53, %v5077_v3  ;;  %v8372_v43 = vld [vmem:[%s6909_s21 + $0x8c] sm:$0x1]  ;;  %v4686_v18 = vshll.u32 %v6034_v59, 16  ;;  %v4692_v53 = vshll.u32 %v8291_v14, 16 }
 0x117   : > { %v6324_v61 = vpop.f32.mrf.mxu0  ;;  %v8359_v30 = vpop.f32.mrf.mxu1  ;;  %v5087_v59 = vrot.slane %v8372_v43, 5 }
 0x118   : > { %9354 = vst [vmem:[#allocation9_spill] sm:$0xff] %v8359_v30  ;;  %v8376_v26 = vadd.f32 %v6324_v61, %v8063_v32  ;;  %v4685_v30 = vrot.slane %v4683_v36, 4  ;;  %v4702_v32 = vshll.u32 %v8308_v39, 16  ;;  %v4688_v36 = vrot.slane %v4686_v18, 5 }
 0x119   : > { %v991_v57 = vpop.f32.mrf.mxu0  ;;  %v8380_v54 = vpop.f32.mrf.mxu1  ;;  %v8397_v61 = vadd.f32 %v8168_v42, %v8273_v25  ;;  %v4694_v6 = vrot.slane %v4692_v53, 5  ;;  %v4707_v18 = vshrl.u32 %v6037_v7, 16  ;;  %v4716_v25 = vshll.u32 %v8343_v44, 16  ;;  %v8423_v7 = vld [vmem:[%s6909_s21 + $0x94] sm:$0xf] }
 0x11a   : > { %9355 = vst [vmem:[#allocation10_spill] sm:$0xff] %v8380_v54  ;;  %v8392_v3 = vadd.f32 %v991_v57, %v8079_v20  ;;  %v9359_v20 = vrot.slane %v8343_v44, 5  ;;  %v4698_v54 = vrot.slane %v4696_v13, 4  ;;  %v4689_v27 = vor.u32 %v4688_v36, %v4685_v30 }
 0x11b   : > { %9357 = vst [vmem:[#allocation11_spill] sm:$0xff] %v8397_v61  ;;  %6553 = vmatmul.mubr.msk.bf16.vlgmr.msra.gmra.mxu1 %vm512_vm0, %v6719_v33  ;;  %6535 = vmatmul.mubr.msk.bf16.vlgmr.msra.gmra.mxu0 %vm512_vm0, %v9358_v1  ;;  %v6325_v14 = vpop.f32.mrf.mxu0  ;;  %v8404_v52 = vpop.f32.mrf.mxu1  ;;  %v9360_v13 = vcombine.low %v8250_v62, %v8257_v51  ;;  %v4704_v53 = vrot.slane %v4702_v32, 5  ;;  %v4720_v30 = vshrl.u32 %v8343_v44, 16  ;;  %v4712_v1 = vrot.slane %v4710_v46, 5  ;;  %v6079_v62 = vld [vmem:[%s6909_s21 + $0x90] sm:$0xe] }
 0x11c   : > { %v5086_v57 = vrot.slane %v9359_v20, 4  ;;  %6569 = vmatpush3.bf16.msra.mxu0 %v8093_v56  ;;  %6587 = vmatpush3.bf16.msra.mxu1 %v8110_v19  ;;  %v8411_v42 = vadd.f32 %v6325_v14, %v8101_v41  ;;  %v4699_v19 = vor.u32 %v4698_v54, %v4694_v6  ;;  %v4709_v41 = vrot.slane %v4707_v18, 4  ;;  %v6723_v51 = vld [vmem:[%s6909_s21 + $0x9c] sm:$0xff]  }
 0x11d   : > { %6556 = vmatprep.mubr.msk.bf16.mxu1 %vm512_vm0, %v6722_v40  ;;  %6538 = vmatprep.mubr.msk.bf16.mxu0 %vm512_vm0, %v9360_v13  ;;  %v994_v33 = vpop.f32.mrf.mxu0  ;;  %v8419_v56 = vpop.f32.mrf.mxu1  ;;  %v4690_v40 = vrot.slane %v4689_v27, 4  ;;  %v8428_v14 = vrot.slane %v4716_v25, 5  ;;  %v4722_v32 = vrot.slane %v4720_v30, 4  ;;  %v4726_v18 = vshll.u32 %v8372_v43, 16 }
 0x11e   : > { %v8426_v36 = vadd.f32 %v994_v33, %v8123_v12  ;;  %v4700_v54 = vrot.slane %v4699_v19, 4  ;;  %v8437_v61 = vadd.f32 %v8185_v35, %v8294_v48  ;;  %v6724_v12 = vld [vmem:[%s6909_s21 + $0xa8] sm:$0xff]   ;;  %v9361_v46 = vrot.slane %v8308_v39, 5 }
 0x11f   : > { %v6328_v20 = vpop.f32.mrf.mxu0  ;;  %v8432_v13 = vpop.f32.mrf.mxu1  ;;  %v4695_v33 = vsel %vm6950_vm3, %v4690_v40, %v4694_v6  ;;  %v4713_v19 = vor.u32 %v4712_v1, %v4709_v41  ;;  %v4723_v48 = vor.u32 %v4722_v32, %v8428_v14  ;;  %v6087_v39 = vrot.slane %v6079_v62, 9  ;;  %v6040_v40 = vld [vmem:[%s6909_s21 + $0x90] sm:$0xf] }
 0x120   : > { %v8441_v27 = vadd.f32 %v6328_v20, %v8145_v2  ;;  %v8447_v25 = vsel %vm7067_vm6, %v5079_v4, %v9361_v46  ;;  %v4705_v35 = vsel %vm6950_vm3, %v4700_v54, %v4704_v53  ;;  %v8457_v2 = vld [vmem:[%s6909_s21 + $0x98] sm:$0x1]  ;;  %v5091_v4 = vrot.slane %v8423_v7, 5  ;;  %v8499_v46 = vld [vmem:[%s6909_s21 + $0x9c] sm:$0xe] }
 0x121   : > { %v1007_v43 = vpop.f32.mrf.mxu0  ;;  %v8451_v30 = vpop.f32.mrf.mxu1  ;;  %v8465_v41 = vrot.slane %v4713_v19, 4  ;;  %v8469_v53 = vadd.f32 %v8193_v45, %v8331_v5  ;;  %v9362_v1 = vcombine.low %v8282_v34, %v8300_v49  ;;  %v9363_v32 = vrot.slane %v8343_v44, 5  ;;  %v8515_v19 = vld [vmem:[%s6909_s21 + $0xa4] sm:$0x1] }
 0x122   : > { %v8461_v20 = vadd.f32 %v1007_v43, %v8159_v60  ;;  %v9364_v45 = vrot.slane %v8325_v38, 9  ;;  %v8491_v34 = vsel %vm7067_vm6, %v5086_v57, %v5087_v59  ;;  %v8493_v49 = vrot.slane %v4726_v18, 5 }
 0x123   : > { %6557 = vmatmul.mubr.msk.bf16.gmra.mxu1 %vm512_vm0, %v6723_v51  ;;  %6539 = vmatmul.mubr.msk.bf16.gmra.mxu0 %vm512_vm0, %v9362_v1  ;;  %v6329_v60 = vpop.f32.mrf.mxu0  ;;  %v8479_v54 = vpop.f32.mrf.mxu1  ;;  %v8496_v51 = vld [vmem:[%s6909_s21 + $0xa0] sm:$0xf]  ;;  %v9365_v44 = vcombine.low %v8288_v9, %v8304_v17  ;;  %v8509_v59 = vcombine.low %v4695_v33, %v4705_v35  ;;  %v8511_v57 = vrot.slane %v4723_v48, 4  ;;  %v5094_v18 = vrot.slane %v8457_v2, 5 }
 0x124   : > { %v8487_v5 = vsel %vm7067_vm6, %v9364_v45, %v9363_v32  ;;  %6560 = vmatprep.mubr.msk.bf16.mxu1 %vm512_vm0, %v6724_v12  ;;  %v8507_v38 = vadd.f32 %v6329_v60, %v8179_v63  ;;  %v8521_v9 = vsel %vm7067_vm6, %v6087_v39, %v5091_v4  ;;  %v5093_v17 = vrot.slane %v5091_v4, 4  ;;  %v6043_v60 = vld [vmem:[%s6909_s21 + $0x9c] sm:$0xf]  ;;  %v6725_v32 = vld [vmem:[%s6909_s21 + $0xb4] sm:$0xff]  }
 0x125   : > { %6542 = vmatprep.mubr.msk.bf16.mxu0 %vm512_vm0, %v9365_v44  ;;  %v1010_v43 = vpop.f32.mrf.mxu0  ;;  %v8517_v12 = vpop.f32.mrf.mxu1  ;;  %v8525_v63 = vadd.f32 %v8211_v8, %v8353_v22  ;;  %v4731_v33 = vshrl.u32 %v6040_v40, 16  ;;  %v6088_v1 = vrot.slane %v8499_v46, 9  ;;  %v5098_v39 = vrot.slane %v8496_v51, 5 }
 0x126   : > { %9366 = vst [vmem:[#allocation12_spill] sm:$0xff] %v8517_v12  ;;  %v8528_v35 = vadd.f32 %v1010_v43, %v8190_v0  ;;  %v5101_v8 = vrot.slane %v8515_v19, 5  ;;  %v4734_v44 = vshll.u32 %v6040_v40, 16  ;;  %v4740_v0 = vshll.u32 %v8423_v7, 16  ;;  %v6726_v43 = vld [vmem:[%s6909_s21 + $0xc0] sm:$0xff]  }
 0x127   : > { %9367 = vst [vmem:[#allocation13_spill] sm:$0xff] %v8525_v63  ;;  %v6332_v4 = vpop.f32.mrf.mxu0  ;;  %v8538_v45 = vpop.f32.mrf.mxu1  ;;  %v4733_v22 = vrot.slane %v4731_v33, 4  ;;  %v4744_v48 = vshrl.u32 %v8423_v7, 16  ;;  %v4750_v46 = vshll.u32 %v8457_v2, 16  ;;  %v8550_v6 = vadd.f32 %v8236_v47, %v8376_v26 }
 0x128   : > { %9368 = vst [vmem:[#allocation14_spill] sm:$0xff] %v8538_v45  ;;  %v8544_v62 = vadd.f32 %v6332_v4, %v8199_v11  ;;  %v4729_v40 = vsel %vm6950_vm3, %v8511_v57, %v8493_v49  ;;  %v4736_v45 = vrot.slane %v4734_v44, 5  ;;  %v8558_v63 = vrot.slane %v4740_v0, 5 }
 0x129   : > { %9369 = vst [vmem:[#allocation15_spill] sm:$0xff] %v8550_v6  ;;  %v1023_v12 = vpop.f32.mrf.mxu0  ;;  %v8556_v33 = vpop.f32.mrf.mxu1  ;;  %v4755_v11 = vshrl.u32 %v6043_v60, 16  ;;  %v5100_v2 = vrot.slane %v5098_v39, 4  ;;  %v4746_v4 = vrot.slane %v4744_v48, 4  ;;  %v4752_v47 = vrot.slane %v4750_v46, 5 }
 0x12a   : > { %v8561_v7 = vadd.f32 %v1023_v12, %v8218_v28  ;;  %v9370_v26 = vcombine.low %v8316_v55, %v8322_v16  ;;  %v4737_v44 = vor.u32 %v4736_v45, %v4733_v22  ;;  %v4758_v6 = vshll.u32 %v6043_v60, 16  ;;  %v6081_v46 = vld [vmem:[%s6909_s21 + $0xa8] sm:$0xe] }
 0x12b   : > { %6561 = vmatmul.mubr.msk.bf16.gmra.mxu1 %vm512_vm0, %v6725_v32  ;;  %v6333_v49 = vpop.f32.mrf.mxu0  ;;  %v8568_v57 = vpop.f32.mrf.mxu1  ;;  %v4757_v0 = vrot.slane %v4755_v11, 4  ;;  %v4764_v28 = vshll.u32 %v8496_v51, 16  ;;  %v9371_v12 = vcombine.low %v8335_v50, %v8339_v37  ;;  %v4747_v16 = vor.u32 %v4746_v4, %v8558_v63  ;;  %v8583_v32 = vld [vmem:[%s6909_s21 + $0xac] sm:$0xf] }
 0x12c   : > { %6543 = vmatmul.mubr.msk.bf16.gmra.mxu0 %vm512_vm0, %v9370_v26  ;;  %6564 = vmatprep.mubr.msk.bf16.mxu1 %vm512_vm0, %v6726_v43  ;;  %v8577_v55 = vadd.f32 %v6333_v49, %v8244_v58  ;;  %v4768_v48 = vshrl.u32 %v8496_v51, 16  ;;  %v4774_v60 = vshll.u32 %v8515_v19, 16  ;;  %v4738_v43 = vrot.slane %v4737_v44, 4  ;;  %v8602_v26 = vld [vmem:[%s6909_s21 + $0xb0] sm:$0x1] }
 0x12d   : > { %6546 = vmatprep.mubr.msk.bf16.mxu0 %vm512_vm0, %v9371_v12  ;;  %v1026_v45 = vpop.f32.mrf.mxu0  ;;  %v8585_v22 = vpop.f32.mrf.mxu1  ;;  %v4760_v50 = vrot.slane %v4758_v6, 5  ;;  %v8587_v37 = vrot.slane %v4764_v28, 5  ;;  %v8591_v58 = vadd.f32 %v8253_v21, %v8392_v3  ;;  %v8599_v51 = vsel %vm7067_vm6, %v5093_v17, %v5094_v18  ;;  %v6727_v49 = vld [vmem:[%s6909_s21 + $0xcc] sm:$0xff]  }
 0x12e   : > { %v8595_v11 = vadd.f32 %v1026_v45, %v8262_v23  ;;  %v4748_v19 = vrot.slane %v4747_v16, 4  ;;  %v4770_v4 = vrot.slane %v4768_v48, 4  ;;  %v8609_v21 = vsel %vm7067_vm6, %v6088_v1, %v5098_v39  ;;  %v6046_v45 = vld [vmem:[%s6909_s21 + $0xa8] sm:$0xf] }
 0x12f   : > { %v8605_v6 = vpop.f32.mrf.mxu0  ;;  %v8613_v23 = vsel %vm7067_vm6, %v5100_v2, %v5101_v8  ;;  %v8615_v3 = vpop.f32.mrf.mxu1  ;;  %v4761_v18 = vor.u32 %v4760_v50, %v4757_v0  ;;  %v5105_v17 = vrot.slane %v8583_v32, 5  ;;  %v4743_v44 = vsel %vm6950_vm3, %v4738_v43, %v8558_v63 }
 0x130   : > { %v4771_v28 = vor.u32 %v4770_v4, %v8587_v37  ;;  %v4776_v12 = vrot.slane %v4774_v60, 5  ;;  %v6089_v16 = vrot.slane %v6081_v46, 9  ;;  %v4753_v39 = vsel %vm6950_vm3, %v4748_v19, %v4752_v47  ;;  %v9373_v60 = vld [vmem:[#allocation5_spill] sm:$0xff]  ;;  %v6050_v46 = vld [vmem:[%s6909_s21 + $0xb8] sm:$0xf] }
 0x131   : > { %v8622_v1 = vpop.f32.mrf.mxu0  ;;  %v4762_v8 = vrot.slane %v4761_v18, 4  ;;  %v8626_v2 = vpop.f32.mrf.mxu1  ;;  %v5107_v0 = vrot.slane %v5105_v17, 4  ;;  %v5108_v48 = vrot.slane %v8602_v26, 5  ;;  %v6096_v63 = vcombine.low %v8487_v5, %v8491_v34  ;;  %v6082_v18 = vld [vmem:[%s6909_s21 + $0xb4] sm:$0xe] }
 0x132   : > { %9372 = vst [vmem:[#allocation16_spill] sm:$0xff] %v8626_v2  ;;  %v4772_v43 = vrot.slane %v4771_v28, 4  ;;  %v8634_v50 = vadd.f32 %v9373_v60, %v8411_v42  ;;  %v9374_v47 = vcombine.low %v8365_v24, %v8386_v29  ;;  %v9375_v19 = vsel %vm6950_vm3, %v8465_v41, %v8428_v14  ;;  %v6049_v60 = vld [vmem:[%s6909_s21 + $0xb4] sm:$0xf] }
 0x133   : > { %6565 = vmatmul.mubr.msk.bf16.gmra.mxu1 %vm512_vm0, %v6727_v49  ;;  %v6061_v5 = vcombine.low %v9375_v19, %v4729_v40  ;;  %v6097_v34 = vcombine.low %v8521_v9, %v8599_v51  ;;  %v8649_v4 = vpop.f32.mrf.mxu0  ;;  %v8653_v49 = vpop.f32.mrf.mxu1  ;;  %v9377_v24 = vcombine.low %v8369_v15, %v8447_v25  ;;  %v6062_v29 = vcombine.low %v4743_v44, %v4753_v39  ;;  %v6051_v9 = vld [vmem:[%s6909_s21 + $0xbc] sm:$0x1]  ;;  %v9378_v44 = vld [vmem:[#allocation6_spill] sm:$0xff] }
 0x134   : > { %6547 = vmatmul.mubr.msk.bf16.gmra.mxu0 %vm512_vm0, %v9374_v47  ;;  %9376 = vst [vmem:[#allocation5_spill] sm:$0xff] %v8653_v49  ;;  %v4767_v14 = vsel %vm6950_vm3, %v4762_v8, %v8587_v37  ;;  %v8667_v41 = vsel %vm7067_vm6, %v6089_v16, %v5105_v17  ;;  %v4779_v40 = vshrl.u32 %v6046_v45, 16  ;;  %v4777_v15 = vsel %vm6950_vm3, %v4772_v43, %v4776_v12 }
 0x135   : > { %6588 = vmatprep.mubr.msk.bf16.mxu1 %vm512_vm0, %v9377_v24  ;;  %6570 = vmatprep.mubr.msk.bf16.mxu0 %vm512_vm0, %v8509_v59  ;;  %v8670_v51 = vpop.f32.mrf.mxu0  ;;  %v8676_v25 = vsel %vm7067_vm6, %v5107_v0, %v5108_v48  ;;  %v5112_v59 = vrot.slane %v6050_v46, 5  ;;  %v8680_v28 = vadd.f32 %v9378_v44, %v8426_v36  ;;  %v8682_v37 = vpop.f32.mrf.mxu1  ;;  %v6090_v17 = vrot.slane %v6082_v18, 9  ;;  %v9380_v48 = vld [vmem:[#allocation7_spill] sm:$0xff] }
 0x136   : > { %9379 = vst [vmem:[#allocation6_spill] sm:$0xff] %v8682_v37  ;;  %v4781_v16 = vrot.slane %v4779_v40, 4  ;;  %v4782_v39 = vshll.u32 %v6046_v45, 16  ;;  %v4788_v8 = vshll.u32 %v8583_v32, 16  ;;  %v5115_v12 = vrot.slane %v6051_v9, 5 }
 0x137   : > { %v8686_v47 = vpop.f32.mrf.mxu0  ;;  %v4792_v43 = vshrl.u32 %v8583_v32, 16  ;;  %v4798_v0 = vshll.u32 %v8602_v26, 16  ;;  %v1251_v19 = vadd.f32 %v9380_v48, %v8441_v27  ;;  %v8692_v36 = vpop.f32.mrf.mxu1  ;;  %v8694_v24 = vcombine.low %v4767_v14, %v4777_v15  ;;  %v8703_v14 = vld [vmem:[%s6909_s21 + $0xc4] sm:$0xf] }
 0x138   : > { %9381 = vst [vmem:[#allocation7_spill] sm:$0xff] %v8692_v36  ;;  %v4784_v18 = vrot.slane %v4782_v39, 5  ;;  %v4790_v40 = vrot.slane %v4788_v8, 5  ;;  %v5114_v42 = vrot.slane %v5112_v59, 4  ;;  %v4803_v32 = vshrl.u32 %v6049_v60, 16 }
 0x139   : > { %v8698_v44 = vpop.f32.mrf.mxu0  ;;  %v4794_v37 = vrot.slane %v4792_v43, 4  ;;  %v4806_v26 = vshll.u32 %v6049_v60, 16  ;;  %v8700_v49 = vpop.f32.mrf.mxu1  ;;  %v4800_v48 = vrot.slane %v4798_v0, 5  ;;  %v4812_v2 = vshll.u32 %v6050_v46, 16  ;;  %v6083_v60 = vld [vmem:[%s6909_s21 + $0xc0] sm:$0xe] }
 0x13a   : > { %9382 = vst [vmem:[#allocation17_spill] sm:$0xff] %v8700_v49  ;;  %v4785_v27 = vor.u32 %v4784_v18, %v4781_v16  ;;  %v4816_v36 = vshrl.u32 %v6050_v46, 16  ;;  %v4805_v8 = vrot.slane %v4803_v32, 4  ;;  %v4822_v45 = vshll.u32 %v6051_v9, 16 }
 0x13b   : > { %6589 = vmatmul.mubr.msk.bf16.vlgmr.msra.gmra.mxu1 %vm512_vm0, %v6096_v63  ;;  %v8707_v15 = vpop.f32.mrf.mxu0  ;;  %v4795_v39 = vor.u32 %v4794_v37, %v4790_v40  ;;  %v4808_v43 = vrot.slane %v4806_v26, 5  ;;  %v8714_v46 = vsel %vm7067_vm6, %v6090_v17, %v5112_v59  ;;  %v4814_v63 = vrot.slane %v4812_v2, 5  ;;  %v8727_v26 = vpop.f32.mrf.mxu1 }
 0x13c   : > { %6571 = vmatmul.mubr.msk.bf16.vlgmr.msra.gmra.mxu0 %vm512_vm0, %v6061_v5  ;;  %6592 = vmatprep.mubr.msk.bf16.mxu1 %vm512_vm0, %v6097_v34  ;;  %v4786_v16 = vrot.slane %v4785_v27, 4  ;;  %v4818_v0 = vrot.slane %v4816_v36, 4  ;;  %v8717_v5 = vld [vmem:[%s6909_s21 + $0xc8] sm:$0x1]  ;;  %v8721_v37 = vsel %vm7067_vm6, %v5114_v42, %v5115_v12  ;;  %v4824_v17 = vrot.slane %v4822_v45, 5 }
 0x13d   : > { %6574 = vmatprep.mubr.msk.bf16.mxu0 %vm512_vm0, %v6062_v29  ;;  %v8723_v9 = vpop.f32.mrf.mxu0  ;;  %v4796_v34 = vrot.slane %v4795_v39, 4  ;;  %v4809_v18 = vor.u32 %v4808_v43, %v4805_v8  ;;  %v9383_v29 = vld [vmem:[#allocation8_spill] sm:$0xff]  ;;  %v6091_v36 = vrot.slane %v6083_v60, 9  ;;  %v8732_v42 = vld [vmem:[%s6909_s21 + $0xd0] sm:$0xf]  ;;  %v5119_v8 = vrot.slane %v8703_v14, 5 }
 0x13e   : > { %v1249_v32 = vadd.f32 %v9383_v29, %v8461_v20  ;;  %9384 = vst [vmem:[#allocation8_spill] sm:$0xff] %v8727_v26  ;;  %v4791_v2 = vsel %vm6950_vm3, %v4786_v16, %v4790_v40  ;;  %v4819_v59 = vor.u32 %v4818_v0, %v4814_v63  ;;  %v5122_v20 = vrot.slane %v8717_v5, 5  ;;  %v6084_v43 = vld [vmem:[%s6909_s21 + $0xcc] sm:$0xe]  ;;  %v9385_v16 = vld [vmem:[#allocation9_spill] sm:$0xff] }
 0x13f   : > { %v4801_v12 = vsel %vm6950_vm3, %v4796_v34, %v4800_v48  ;;  %v6364_v27 = vpop.f32.mrf.mxu0  ;;  %v4810_v39 = vrot.slane %v4809_v18, 4  ;;  %v1252_v45 = vadd.f32 %v9385_v16, %v8507_v38  ;;  %v8744_v60 = vld [vmem:[%s6909_s21 + $0xd4] sm:$0x1]  ;;  %v6052_v0 = vld [vmem:[%s6909_s21 + $0xc0] sm:$0xf]  ;;  %v6100_v48 = vcombine.low %v8714_v46, %v8721_v37 }
 0x140   : > { %v6064_v29 = vcombine.low %v4791_v2, %v4801_v12  ;;  %v8739_v26 = vadd.f32 %v6364_v27, %v1251_v19  ;;  %v4820_v40 = vrot.slane %v4819_v59, 4  ;;  %v5120_v49 = vsel %vm7067_vm6, %v6091_v36, %v5119_v8  ;;  %v8753_v19 = vpop.f32.mrf.mxu1 }
 0x141   : > { %v4815_v34 = vsel %vm6950_vm3, %v4810_v39, %v4814_v63  ;;  %v1596_v18 = vpop.f32.mrf.mxu0  ;;  %v5121_v2 = vrot.slane %v5119_v8, 4  ;;  %v6092_v12 = vrot.slane %v6084_v43, 9  ;;  %v5126_v27 = vrot.slane %v8732_v42, 5 }
 0x142   : > { %v4825_v59 = vsel %vm6950_vm3, %v4820_v40, %v4824_v17  ;;  %v8757_v38 = vadd.f32 %v1596_v18, %v1249_v32  ;;  %v9386_v46 = vcombine.low %v8609_v21, %v8613_v23  ;;  %v5129_v17 = vrot.slane %v8744_v60, 5  ;;  %v9387_v32 = vld [vmem:[#allocation10_spill] sm:$0xff] }
 0x143   : > { %v5123_v63 = vsel %vm7067_vm6, %v5121_v2, %v5122_v20  ;;  %v6365_v37 = vpop.f32.mrf.mxu0  ;;  %v1250_v36 = vadd.f32 %v9387_v32, %v8528_v35  ;;  %v4827_v39 = vshrl.u32 %v6052_v0, 16  ;;  %v9388_v8 = vcombine.low %v8667_v41, %v8676_v25  ;;  %v8780_v2 = vpop.f32.mrf.mxu1 }
 0x144   : > { %6593 = vmatmul.mubr.msk.bf16.gmra.mxu1 %vm512_vm0, %v9386_v46  ;;  %6575 = vmatmul.mubr.msk.bf16.gmra.mxu0 %vm512_vm0, %v8694_v24  ;;  %v6065_v21 = vcombine.low %v4815_v34, %v4825_v59  ;;  %v6101_v23 = vcombine.low %v5120_v49, %v5123_v63  ;;  %v8776_v24 = vadd.f32 %v6365_v37, %v1252_v45  ;;  %v5128_v20 = vrot.slane %v5126_v27, 4  ;;  %v6055_v46 = vld [vmem:[%s6909_s21 + $0xcc] sm:$0xf]  ;;  %s237_s21 = sand.u32 1, %s6788_s16  }
 0x145   : > { %6596 = vmatprep.mubr.msk.bf16.mxu1 %vm512_vm0, %v9388_v8  ;;  %6578 = vmatprep.mubr.msk.bf16.mxu0 %vm512_vm0, %v6064_v29  ;;  %v1599_v43 = vpop.f32.mrf.mxu0  ;;  %v4829_v40 = vrot.slane %v4827_v39, 4  ;;  %v4830_v16 = vshll.u32 %v6052_v0, 16  ;;  %v4836_v18 = vshll.u32 %v8703_v14, 16  ;;  %v4840_v35 = vshrl.u32 %v8703_v14, 16  ;;  %9389 = vst [vmem:[#allocation9_spill] sm:$0xff] %v8780_v2  ;;  %s5498_s26 = sshll.u32 %s237_s21, 8 }
 0x146   : > { %v5127_v41 = vsel %vm7067_vm6, %v6092_v12, %v5126_v27  ;;  %v8785_v25 = vadd.f32 %v1599_v43, %v1250_v36  ;;  %v4846_v49 = vshll.u32 %v8717_v5, 16  ;;  %v1255_v29 = vadd.f32 %v8404_v52, %v8544_v62  ;;  %v8796_v52 = vpop.f32.mrf.mxu1  ;;  %s8922_s29 = scalar_lea.vmem [#allocation2], %s5498_s26  ;;  %s9293_s18 = scalar_lea.sflag [#allocation3], %s237_s21 }
 0x147   : > { %v5130_v45 = vsel %vm7067_vm6, %v5128_v20, %v5129_v17  ;;  %v4832_v0 = vrot.slane %v4830_v16, 5  ;;  %v4838_v34 = vrot.slane %v4836_v18, 5  ;;  %v4842_v59 = vrot.slane %v4840_v35, 4  ;;  %v6368_v14 = vpop.f32.mrf.mxu0  ;;  %9390 = vst [vmem:[#allocation10_spill] sm:$0xff] %v8796_v52  ;;  %s5379_s5 = sshll.u32 %s8922_s29, 4  ;;  %s9287_s5 = int_to_ptr.vmem [resolvable:$true] %s5379_s5 }
 0x148   : > { %v4848_v63 = vrot.slane %v4846_v49, 5  ;;  %v8792_v37 = vadd.f32 %v6368_v14, %v1255_v29  ;;  %v4851_v32 = vshrl.u32 %v6055_v46, 16  ;;  %v4854_v39 = vshll.u32 %v6055_v46, 16  ;;  %s6728_s9 = scalar_lea.vmem %s9287_s5, 4096  ;;  %p6735_p1 = scmp.lt.s32.totalorder %s9287_s5, %s6733_s11 }
 0x149   : > { %v4833_v12 = vor.u32 %v4832_v0, %v4829_v40  ;;  %v4843_v27 = vor.u32 %v4842_v59, %v4838_v34  ;;  %v4860_v36 = vshll.u32 %v8732_v42, 16  ;;  %v4864_v5 = vshrl.u32 %v8732_v42, 16  ;;  %v1612_v8 = vpop.f32.mrf.mxu0  ;;  %p6729_p12 = scmp.ne.s32.totalorder %s9287_s5, %s6728_s9  ;;  %p6736_p2 = scmp.lt.s32.totalorder %s6734_s12, %s6728_s9 }
 0x14a   : > { %v4853_v10 = vrot.slane %v4851_v32, 4  ;;  %v4856_v62 = vrot.slane %v4854_v39, 5  ;;  %v4870_v17 = vshll.u32 %v8744_v60, 16  ;;  %v1253_v20 = vadd.f32 %v8419_v56, %v8561_v7 }
 0x14b   : > { %v4834_v43 = vrot.slane %v4833_v12, 4  ;;  %v4844_v40 = vrot.slane %v4843_v27, 4  ;;  %v4862_v16 = vrot.slane %v4860_v36, 5  ;;  %v4866_v18 = vrot.slane %v4864_v5, 4  ;;  %v6369_v35 = vpop.f32.mrf.mxu0  ;;  %p6730_p13 = pnand %p6729_p12, %p6874_p4  ;;  %p6737_p3 = por %p6736_p2, %p6735_p1 }
 0x14c   : > { %6597 = vmatmul.mubr.msk.bf16.gmra.mxu1 %vm512_vm0, %v6100_v48  ;;  %6579 = vmatmul.mubr.msk.bf16.gmra.mxu0 %vm512_vm0, %v6065_v21  ;;  %v4857_v42 = vor.u32 %v4856_v62, %v4853_v10  ;;  %v4872_v46 = vrot.slane %v4870_v17, 5  ;;  %v8804_v49 = vadd.f32 %v1612_v8, %v1253_v20  ;;  %v1256_v60 = vadd.f32 %v8432_v13, %v8577_v55 }
 0x14d   : > { %6600 = vmatprep.mubr.msk.bf16.mxu1 %vm512_vm0, %v6101_v23  ;;  %v4839_v56 = vsel %vm6950_vm3, %v4834_v43, %v4838_v34  ;;  %v4849_v7 = vsel %vm6950_vm3, %v4844_v40, %v4848_v63  ;;  %v4867_v48 = vor.u32 %v4866_v18, %v4862_v16  ;;  %v6410_v21 = vpop.f32.mrf.mxu1  ;;  %v1254_v29 = vadd.f32 %v8451_v30, %v8595_v11  ;;  %v1615_v0 = vpop.f32.mrf.mxu0  ;;  %p6731_p0 = pneg %p6730_p13 }
 0x14e   : > { %v6066_v23 = vcombine.low %v4839_v56, %v4849_v7  ;;  %v4858_v59 = vrot.slane %v4857_v42, 4  ;;  %v8814_v14 = vadd.f32 %v6369_v35, %v1256_v60  ;;  %v6102_v32 = vcombine.low %v5127_v41, %v5130_v45  ;;  %v9392_v56 = vld [vmem:[#allocation11_spill] sm:$0xff] }
 0x14f   : > { %v4868_v39 = vrot.slane %v4867_v48, 4  ;;  %v8816_v12 = vadd.f32 %v1615_v0, %v1254_v29  ;;  %v2411_v13 = vpop.f32.mrf.mxu1  ;;  %v6392_v55 = vpop.f32.mrf.mxu0  ;;  %v1629_v7 = vadd.f32 %v8605_v6, %v9392_v56  ;;  %v1627_v0 = vadd.f32 %v8622_v1, %v8437_v61  ;;  %p6738_p5 = pnand %p6737_p3, %p6731_p0 }
 0x150   : > { %6582 = vmatprep.mubr.msk.bf16.mxu0 %vm512_vm0, %v6066_v23  ;;  %v4863_v34 = vsel %vm6950_vm3, %v4858_v59, %v4862_v16 }
 0x151   : > { %9391 = vst [vmem:[#allocation18_spill] sm:$0xff] %v8816_v12  ;;  %v4873_v63 = vsel %vm6950_vm3, %v4868_v39, %v4872_v46  ;;  %v6411_v30 = vpop.f32.mrf.mxu1  ;;  %v2025_v11 = vpop.f32.mrf.mxu0  ;;  %v1887_v39 = vadd.f32 %v8479_v54, %v1629_v7  ;;  %v9398_v12 = vld [vmem:[#allocation14_spill] sm:$0xff] }
 0x152   : > { %v6067_v27 = vcombine.low %v4863_v34, %v4873_v63  ;;  %v9396_v63 = vld [vmem:[#allocation13_spill] sm:$0xff] }
 0x153   : > { %v2414_v36 = vpop.f32.mrf.mxu1  ;;  %v6393_v41 = vpop.f32.mrf.mxu0  ;;  %v2090_v56 = vadd.f32 %v6392_v55, %v1887_v39 }
 0x154   : > { %6601 = vmatmul.mubr.msk.bf16.gmra.mxu1 %vm512_vm0, %v6102_v32  ;;  %6583 = vmatmul.mubr.msk.bf16.gmra.mxu0 %vm512_vm0, %v6067_v27  ;;  %v1630_v32 = vadd.f32 %v8649_v4, %v8469_v53  ;;  %v1628_v27 = vadd.f32 %v8670_v51, %v9396_v63  ;;  %v8891_v51 = vld [vmem:[%s9340_s2] ss:$0 sm:$0xff] }
 0x155   : > { %v8825_v45 = vpop.f32.mrf.mxu1  ;;  %v2028_v5 = vpop.f32.mrf.mxu0 }
 0x156   : > { %v1888_v53 = vadd.f32 %v9398_v12, %v1630_v32  ;;  %v1886_v7 = vadd.f32 %v8556_v33, %v1628_v27  ;;  %v9399_v12 = vld [vmem:[#allocation15_spill] sm:$0xff]  ;;  %v8900_v33 = vld [vmem:[%s9341_s3] ss:$0 sm:$0xff] }
 0x157   : > { %v8827_v8 = vpop.f32.mrf.mxu1  ;;  %v8829_v10 = vpop.f32.mrf.mxu0  ;;  %v1633_v32 = vadd.f32 %v8686_v47, %v9399_v12 }
 0x158   : > { %v2091_v54 = vadd.f32 %v6393_v41, %v1888_v53  ;;  %v1634_v53 = vadd.f32 %v8707_v15, %v8634_v50 }
 0x159   : > { %v8831_v62 = vpop.f32.mrf.mxu1  ;;  %v8833_v31 = vpop.f32.mrf.mxu0 }
 0x15a   : > { %v2477_v27 = vadd.f32 %v6411_v30, %v2091_v54 }
 0x15b   : > { %v8835_v17 = vpop.f32.mrf.mxu1  ;;  %v8837_v20 = vpop.f32.mrf.mxu0 }
 0x15d   : > { %v8839_v43 = vpop.f32.mrf.mxu1  ;;  %v8841_v40 = vpop.f32.mrf.mxu0 }
 0x15f   : > { %v8843_v16 = vpop.f32.mrf.mxu1  ;;  %v8845_v18 = vpop.f32.mrf.mxu0 }
 0x161   : > { %v8847_v35 = vpop.f32.mrf.mxu1  ;;  %v8849_v42 = vpop.f32.mrf.mxu0 }
 0x163   : > { %v8851_v46 = vpop.f32.mrf.mxu1  ;;  %v8853_v60 = vpop.f32.mrf.mxu0 }
 0x165   : > { %v8857_v48 = vpop.f32.mrf.mxu1  ;;  %v8859_v29 = vpop.f32.mrf.mxu0 }
 0x166   : > { %9393 = vst [vmem:[#allocation11_spill] sm:$0xff] %v8857_v48  ;;  %v9397_v48 = vld [vmem:[#allocation12_spill] sm:$0xff] }
 0x167   : > { %v8863_v23 = vpop.f32.mrf.mxu1  ;;  %v8865_v59 = vpop.f32.mrf.mxu0  ;;  %v1885_v61 = vadd.f32 %v9397_v48, %v1627_v0  ;;  %v2089_v48 = vadd.f32 %v2028_v5, %v1886_v7  ;;  %v1891_v7 = vadd.f32 %v8568_v57, %v1633_v32 }
 0x168   : > { %9394 = vst [vmem:[#allocation19_spill] sm:$0xff] %v8863_v23 }
 0x169   : > { %v8870_v34 = vpop.f32.mrf.mxu1  ;;  %v8872_v6 = vpop.f32.mrf.mxu0  ;;  %v2088_v52 = vadd.f32 %v2025_v11, %v1885_v61  ;;  %v2475_v61 = vadd.f32 %v2414_v36, %v2089_v48  ;;  %v2094_v12 = vadd.f32 %v8829_v10, %v1891_v7 }
 0x16a   : > { %9395 = vst [vmem:[#allocation20_spill] sm:$0xff] %v8870_v34  ;;  %v2476_v34 = vadd.f32 %v6410_v21, %v2090_v56 }
 0x16b   : > { %v8877_v1 = vpop.f32.mrf.mxu1  ;;  %v8879_v23 = vpop.f32.mrf.mxu0  ;;  %v2474_v0 = vadd.f32 %v2411_v13, %v2088_v52  ;;  %v1631_v52 = vadd.f32 %v8698_v44, %v8591_v58 }
 0x16d   : > { %v8882_v4 = vpop.f32.mrf.mxu0  ;;  %v1889_v36 = vadd.f32 %v8585_v22, %v1631_v52 }
 0x16f   : > { %v8885_v2 = vpop.f32.mrf.mxu1  ;;  %v6428_v55 = vpop.f32.mrf.mxu0  ;;  %v2092_v48 = vadd.f32 %v8833_v31, %v1889_v36 }
 0x170   : > { %v2734_v11 = vadd.f32 %v6428_v55, %v2476_v34 }
 0x171   : > { %v8895_v39 = vpop.f32.mrf.mxu1  ;;  %v2669_v21 = vpop.f32.mrf.mxu0 }
 0x172   : > { %v2756_v41 = vmul.f32 %v8891_v51, %v2734_v11  ;;  %v2732_v63 = vadd.f32 %v2669_v21, %v2474_v0  ;;  %v1632_v0 = vadd.f32 %v8723_v9, %v8680_v28  ;;  %v1892_v28 = vadd.f32 %v8615_v3, %v1634_v53  ;;  %v9400_v21 = vld [vmem:[#allocation16_spill] sm:$0xff] }
 0x173   : > { %v8907_v13 = vpop.f32.mrf.mxu1  ;;  %v6429_v47 = vpop.f32.mrf.mxu0 }
 0x174   : > { %v2778_v5 = vadd.f32 %v8900_v33, %v2756_v41  ;;  %v2754_v34 = vmul.f32 %v8891_v51, %v2732_v63  ;;  %v2735_v56 = vadd.f32 %v6429_v47, %v2477_v27  ;;  %v2095_v32 = vadd.f32 %v8837_v20, %v1892_v28 }
 0x175   : > { %v2672_v55 = vpop.f32.mrf.mxu0  ;;  %v8915_v54 = vpop.f32.mrf.mxu1  ;;  %v1890_v41 = vadd.f32 %v9400_v21, %v1632_v0  ;;  %v2480_v63 = vadd.f32 %v8825_v45, %v2094_v12  ;;  %v9401_v45 = vld [vmem:[#allocation5_spill] sm:$0xff] }
 0x176   : > { %v2794_v11 = vmax.f32 %v2778_v5, 0.0  ;;  %v2776_v30 = vadd.f32 %v8900_v33, %v2754_v34  ;;  %v2757_v58 = vmul.f32 %v8891_v51, %v2735_v56  ;;  %v2733_v44 = vadd.f32 %v2672_v55, %v2475_v61 }
 0x177   : > { %v2093_v47 = vadd.f32 %v8841_v40, %v1890_v41  ;;  %v2478_v5 = vadd.f32 %v8827_v8, %v2092_v48  ;;  %v2481_v53 = vadd.f32 %v8831_v62, %v2095_v32  ;;  %v1895_v7 = vadd.f32 %v9401_v45, %v8739_v26 }
 0x178   : > { %2810 = vst [vmem:[%s8922_s29 + $0x10] sm:$0xff] %v2794_v11  ;;  %v2792_v57 = vmax.f32 %v2776_v30, 0.0  ;;  %v2779_v50 = vadd.f32 %v8900_v33, %v2757_v58  ;;  %v2755_v15 = vmul.f32 %v8891_v51, %v2733_v44  ;;  %v9402_v44 = vld [vmem:[#allocation6_spill] sm:$0xff] }
 0x179   : > { %v2479_v8 = vadd.f32 %v8835_v17, %v2093_v47  ;;  %v2098_v58 = vadd.f32 %v8845_v18, %v1895_v7  ;;  %v1893_v0 = vadd.f32 %v9402_v44, %v8757_v38 }
 0x17a   : > { %2808 = vst [vmem:[%s8922_s29] sm:$0xff] %v2792_v57  ;;  %v2795_v9 = vmax.f32 %v2779_v50, 0.0  ;;  %v8930_v10 = vpop.f32.mrf.mxu1  ;;  %v2777_v22 = vadd.f32 %v8900_v33, %v2755_v15  ;;  %v9403_v15 = vld [vmem:[#allocation7_spill] sm:$0xff] }
 0x17b   : > { %v1896_v48 = vadd.f32 %v9403_v15, %v8776_v24  ;;  %v2096_v17 = vadd.f32 %v8849_v42, %v1893_v0  ;;  %v2484_v42 = vadd.f32 %v8839_v43, %v2098_v58  ;;  %v9405_v43 = vld [vmem:[#allocation8_spill] sm:$0xff]  ;;  %v9409_v15 = vld [vmem:[#allocation11_spill] sm:$0xff] }
 0x17c   : > { %2811 = vst [vmem:[%s8922_s29 + $0x18] sm:$0xff] %v2795_v9  ;;  %v2793_v27 = vmax.f32 %v2777_v22, 0.0  ;;  %v8937_v52 = vpop.f32.mrf.mxu1  ;;  %v6432_v31 = vpop.f32.mrf.mxu0  ;;  %v9404_v9 = vld [vmem:[#allocation17_spill] sm:$0xff] }
 0x17d   : > { %v2738_v3 = vadd.f32 %v6432_v31, %v2480_v63  ;;  %v1894_v22 = vadd.f32 %v9404_v9, %v8785_v25  ;;  %v2099_v21 = vadd.f32 %v8853_v60, %v1896_v48  ;;  %v2482_v25 = vadd.f32 %v8843_v16, %v2096_v17  ;;  %v9410_v9 = vld [vmem:[#allocation19_spill] sm:$0xff] }
 0x17e   : > { %2809 = vst [vmem:[%s8922_s29 + $0x8] sm:$0xff] %v2793_v27  ;;  %v8942_v34 = vpop.f32.mrf.mxu1  ;;  %v2685_v56 = vpop.f32.mrf.mxu0 }
 0x17f   : > { %v2760_v20 = vmul.f32 %v8891_v51, %v2738_v3  ;;  %v2736_v61 = vadd.f32 %v2685_v56, %v2478_v5  ;;  %v2097_v31 = vadd.f32 %v8859_v29, %v1894_v22 }
 0x180   : > { %v6433_v55 = vpop.f32.mrf.mxu0  ;;  %v8954_v12 = vpop.f32.mrf.mxu1 }
 0x181   : > { %v2782_v11 = vadd.f32 %v8900_v33, %v2760_v20  ;;  %v2758_v40 = vmul.f32 %v8891_v51, %v2736_v61  ;;  %v2739_v30 = vadd.f32 %v6433_v55, %v2481_v53  ;;  %v2485_v61 = vadd.f32 %v8847_v35, %v2099_v21 }
 0x182   : > { %v2688_v62 = vpop.f32.mrf.mxu0  ;;  %v1899_v53 = vadd.f32 %v9405_v43, %v8792_v37  ;;  %v2483_v16 = vadd.f32 %v8851_v46, %v2097_v31 }
 0x183   : > { %v2798_v36 = vmax.f32 %v2782_v11, 0.0  ;;  %v2780_v26 = vadd.f32 %v8900_v33, %v2758_v40  ;;  %v2761_v57 = vmul.f32 %v8891_v51, %v2739_v30  ;;  %v2737_v50 = vadd.f32 %v2688_v62, %v2479_v8  ;;  %v9406_v62 = vld [vmem:[#allocation9_spill] sm:$0xff] }
 0x184   : > { %v2102_v11 = vadd.f32 %v8865_v59, %v1899_v53  ;;  %v1897_v40 = vadd.f32 %v8753_v19, %v8804_v49  ;;  %v1900_v46 = vadd.f32 %v9406_v62, %v8814_v14 }
 0x185   : > { %2814 = vst [vmem:[%s8922_s29 + $0x30] sm:$0xff] %v2798_v36  ;;  %v2796_v18 = vmax.f32 %v2780_v26, 0.0  ;;  %v2783_v38 = vadd.f32 %v8900_v33, %v2761_v57  ;;  %v2759_v28 = vmul.f32 %v8891_v51, %v2737_v50  ;;  %v9407_v26 = vld [vmem:[#allocation18_spill] sm:$0xff] }
 0x186   : > { %v8966_v32 = vpop.f32.mrf.mxu1  ;;  %v2100_v0 = vadd.f32 %v8872_v6, %v1897_v40  ;;  %v2103_v36 = vadd.f32 %v8879_v23, %v1900_v46  ;;  %v9408_v57 = vld [vmem:[#allocation10_spill] sm:$0xff]  ;;  %v2488_v48 = vadd.f32 %v9409_v15, %v2102_v11 }
 0x187   : > { %2812 = vst [vmem:[%s8922_s29 + $0x20] sm:$0xff] %v2796_v18  ;;  %v2799_v41 = vmax.f32 %v2783_v38, 0.0  ;;  %v2781_v24 = vadd.f32 %v8900_v33, %v2759_v28  ;;  %v1898_v50 = vadd.f32 %v9408_v57, %v9407_v26 }
 0x188   : > { %v8972_v63 = vpop.f32.mrf.mxu1  ;;  %v6436_v27 = vpop.f32.mrf.mxu0  ;;  %v2486_v22 = vadd.f32 %v9410_v9, %v2100_v0 }
 0x189   : > { %2815 = vst [vmem:[%s8922_s29 + $0x38] sm:$0xff] %v2799_v41  ;;  %v2797_v47 = vmax.f32 %v2781_v24, 0.0  ;;  %v2742_v3 = vadd.f32 %v6436_v27, %v2484_v42  ;;  %v2101_v38 = vadd.f32 %v8882_v4, %v1898_v50  ;;  %v9411_v27 = vld [vmem:[#allocation20_spill] sm:$0xff] }
 0x18a   : > { %v2701_v5 = vpop.f32.mrf.mxu0  ;;  %v8979_v56 = vpop.f32.mrf.mxu1  ;;  %v2489_v31 = vadd.f32 %v9411_v27, %v2103_v36 }
 0x18b   : > { %2813 = vst [vmem:[%s8922_s29 + $0x28] sm:$0xff] %v2797_v47  ;;  %v2764_v60 = vmul.f32 %v8891_v51, %v2742_v3  ;;  %v2740_v20 = vadd.f32 %v2701_v5, %v2482_v25 }
 0x18c   : > { %v6437_v45 = vpop.f32.mrf.mxu0  ;;  %v8991_v37 = vpop.f32.mrf.mxu1 }
 0x18d   : > { %v2786_v29 = vadd.f32 %v8900_v33, %v2764_v60  ;;  %v2762_v7 = vmul.f32 %v8891_v51, %v2740_v20  ;;  %v2743_v55 = vadd.f32 %v6437_v45, %v2485_v61  ;;  %v2487_v60 = vadd.f32 %v8877_v1, %v2101_v38 }
 0x18e   : > { %v2704_v30 = vpop.f32.mrf.mxu0 }
 0x18f   : > { %v2802_v35 = vmax.f32 %v2786_v29, 0.0  ;;  %v2784_v8 = vadd.f32 %v8900_v33, %v2762_v7  ;;  %v2765_v58 = vmul.f32 %v8891_v51, %v2743_v55  ;;  %v2741_v44 = vadd.f32 %v2704_v30, %v2483_v16 }
 0x191   : > { %2818 = vst [vmem:[%s8922_s29 + $0x50] sm:$0xff] %v2802_v35  ;;  %v2800_v59 = vmax.f32 %v2784_v8, 0.0  ;;  %v2787_v19 = vadd.f32 %v8900_v33, %v2765_v58  ;;  %v2763_v49 = vmul.f32 %v8891_v51, %v2741_v44 }
 0x193   : > { %2816 = vst [vmem:[%s8922_s29 + $0x40] sm:$0xff] %v2800_v59  ;;  %v2803_v6 = vmax.f32 %v2787_v19, 0.0  ;;  %v9005_v17 = vpop.f32.mrf.mxu1  ;;  %v2785_v14 = vadd.f32 %v8900_v33, %v2763_v49  ;;  %v6440_v18 = vpop.f32.mrf.mxu0 }
 0x194   : > { %v2746_v28 = vadd.f32 %v6440_v18, %v2488_v48 }
 0x195   : > { %2819 = vst [vmem:[%s8922_s29 + $0x58] sm:$0xff] %v2803_v6  ;;  %v2801_v23 = vmax.f32 %v2785_v14, 0.0  ;;  %v9011_v21 = vpop.f32.mrf.mxu1  ;;  %v2717_v41 = vpop.f32.mrf.mxu0 }
 0x196   : > { %v2768_v24 = vmul.f32 %v8891_v51, %v2746_v28  ;;  %v2744_v42 = vadd.f32 %v2717_v41, %v2486_v22 }
 0x197   : > { %2817 = vst [vmem:[%s8922_s29 + $0x48] sm:$0xff] %v2801_v23  ;;  %v9016_v47 = vpop.f32.mrf.mxu1  ;;  %v6441_v3 = vpop.f32.mrf.mxu0 }
 0x198   : > { %v2790_v4 = vadd.f32 %v8900_v33, %v2768_v24  ;;  %v2766_v25 = vmul.f32 %v8891_v51, %v2744_v42  ;;  %v2747_v5 = vadd.f32 %v6441_v3, %v2489_v31 }
 0x199   : > { %v9021_v20 = vpop.f32.mrf.mxu1  ;;  %v2720_v61 = vpop.f32.mrf.mxu0 }
 0x19a   : > { %v2806_v43 = vmax.f32 %v2790_v4, 0.0  ;;  %v2788_v53 = vadd.f32 %v8900_v33, %v2766_v25  ;;  %v2769_v45 = vmul.f32 %v8891_v51, %v2747_v5  ;;  %v2745_v29 = vadd.f32 %v2720_v61, %v2487_v60 }
 0x19b   : > { %v6482_v7 = vpop.f32.mrf.mxu1  ;;  %v6464_v55 = vpop.f32.mrf.mxu0 }
 0x19c   : > { %2822 = vst [vmem:[%s8922_s29 + $0x70] sm:$0xff] %v2806_v43  ;;  %v2804_v16 = vmax.f32 %v2788_v53, 0.0  ;;  %v2791_v11 = vadd.f32 %v8900_v33, %v2769_v45  ;;  %v2767_v40 = vmul.f32 %v8891_v51, %v2745_v29  ;;  %v3309_v1 = vadd.f32 %v6464_v55, %v8885_v2 }
 0x19d   : > { %v3533_v30 = vpop.f32.mrf.mxu1  ;;  %v3300_v35 = vpop.f32.mrf.mxu0 }
 0x19e   : > { %2820 = vst [vmem:[%s8922_s29 + $0x60] sm:$0xff] %v2804_v16  ;;  %v2807_v8 = vmax.f32 %v2791_v11, 0.0  ;;  %v2789_v58 = vadd.f32 %v8900_v33, %v2767_v40  ;;  %v3301_v44 = vadd.f32 %v3300_v35, %v8895_v39  ;;  %v9032_v0 = vadd.f32 %v6482_v7, %v3309_v1 }
 0x19f   : > { %v6483_v62 = vpop.f32.mrf.mxu1  ;;  %v6465_v46 = vpop.f32.mrf.mxu0 }
 0x1a0   : > { %2823 = vst [vmem:[%s8922_s29 + $0x78] sm:$0xff] %v2807_v8  ;;  %v2805_v59 = vmax.f32 %v2789_v58, 0.0  ;;  %v3312_v19 = vadd.f32 %v6465_v46, %v8907_v13  ;;  %v9036_v49 = vadd.f32 %v3533_v30, %v3301_v44 }
 0x1a1   : > { %v3536_v2 = vpop.f32.mrf.mxu1  ;;  %v3303_v36 = vpop.f32.mrf.mxu0 }
 0x1a2   : > { %2821 = vst [vmem:[%s8922_s29 + $0x68] sm:$0xff] %v2805_v59  ;;  %v3304_v26 = vadd.f32 %v3303_v36, %v8915_v54  ;;  %v9040_v57 = vadd.f32 %v6483_v62, %v3312_v19 }
 0x1a3   : > { %v6486_v50 = vpop.f32.mrf.mxu1  ;;  %v6468_v15 = vpop.f32.mrf.mxu0 }
 0x1a4   : > { %v3325_v39 = vadd.f32 %v6468_v15, %v8930_v10  ;;  %v9043_v48 = vadd.f32 %v3536_v2, %v3304_v26 }
 0x1a5   : > { %v3549_v6 = vpop.f32.mrf.mxu1  ;;  %v3316_v14 = vpop.f32.mrf.mxu0 }
 0x1a6   : > { %v3317_v18 = vadd.f32 %v3316_v14, %v8937_v52  ;;  %v9046_v13 = vadd.f32 %v6486_v50, %v3325_v39 }
 0x1a7   : > { %v6487_v38 = vpop.f32.mrf.mxu1  ;;  %v6469_v28 = vpop.f32.mrf.mxu0 }
 0x1a8   : > { %v3328_v9 = vadd.f32 %v6469_v28, %v8942_v34  ;;  %v9049_v22 = vadd.f32 %v3549_v6, %v3317_v18 }
 0x1a9   : > { %v3552_v54 = vpop.f32.mrf.mxu1  ;;  %v3319_v23 = vpop.f32.mrf.mxu0 }
 0x1aa   : > { %v3320_v41 = vadd.f32 %v3319_v23, %v8954_v12  ;;  %v9052_v24 = vadd.f32 %v6487_v38, %v3328_v9 }
 0x1ab   : > { %v6490_v10 = vpop.f32.mrf.mxu1  ;;  %v6472_v42 = vpop.f32.mrf.mxu0 }
 0x1ac   : > { %v3341_v27 = vadd.f32 %v6472_v42, %v8966_v32  ;;  %v9055_v31 = vadd.f32 %v3552_v54, %v3320_v41 }
 0x1ad   : > { %v3565_v52 = vpop.f32.mrf.mxu1  ;;  %v3332_v3 = vpop.f32.mrf.mxu0 }
 0x1ae   : > { %v3333_v4 = vadd.f32 %v3332_v3, %v8972_v63  ;;  %v9058_v25 = vadd.f32 %v6490_v10, %v3341_v27 }
 0x1af   : > { %v6491_v34 = vpop.f32.mrf.mxu1  ;;  %v6473_v5 = vpop.f32.mrf.mxu0 }
 0x1b0   : > { %v3344_v60 = vadd.f32 %v6473_v5, %v8979_v56  ;;  %v9061_v61 = vadd.f32 %v3565_v52, %v3333_v4 }
 0x1b1   : > { %v3568_v12 = vpop.f32.mrf.mxu1  ;;  %v3335_v43 = vpop.f32.mrf.mxu0 }
 0x1b2   : > { %v3336_v53 = vadd.f32 %v3335_v43, %v8991_v37  ;;  %v9064_v45 = vadd.f32 %v6491_v34, %v3344_v60 }
 0x1b3   : > { %v6494_v32 = vpop.f32.mrf.mxu1  ;;  %v6476_v29 = vpop.f32.mrf.mxu0 }
 0x1b4   : > { %v3357_v7 = vadd.f32 %v6476_v29, %v9005_v17  ;;  %v9067_v55 = vadd.f32 %v3568_v12, %v3336_v53 }
 0x1b5   : > { %v3581_v63 = vpop.f32.mrf.mxu1  ;;  %v3348_v16 = vpop.f32.mrf.mxu0 }
 0x1b6   : > { %v3349_v11 = vadd.f32 %v3348_v16, %v9011_v21  ;;  %v9070_v40 = vadd.f32 %v6494_v32, %v3357_v7 }
 0x1b7   : > { %v6495_v56 = vpop.f32.mrf.mxu1  ;;  %v6477_v1 = vpop.f32.mrf.mxu0 }
 0x1b8   : > { %v3360_v30 = vadd.f32 %v6477_v1, %v9016_v47  ;;  %v9073_v35 = vadd.f32 %v3581_v63, %v3349_v11 }
 0x1b9   : > { %v3584_v37 = vpop.f32.mrf.mxu1  ;;  %v3351_v8 = vpop.f32.mrf.mxu0 }
 0x1ba   : > { %9412 = vst [vmem:[#allocation13_spill] sm:$0xff] %v9073_v35  ;;  %v3352_v58 = vadd.f32 %v3351_v8, %v9021_v20  ;;  %v9076_v44 = vadd.f32 %v6495_v56, %v3360_v30 }
 0x1bb   : > { %v6518_v17 = vpop.f32.mrf.mxu1  ;;  %v6500_v62 = vpop.f32.mrf.mxu0 }
 0x1bc   : > { %9413 = vst [vmem:[#allocation12_spill] sm:$0xff] %v9076_v44  ;;  %v9078_v46 = vadd.f32 %v3584_v37, %v3352_v58 }
 0x1bd   : > { %v9080_v59 = vpop.f32.mrf.mxu1  ;;  %v3735_v21 = vpop.f32.mrf.mxu0 }
 0x1be   : > { %9414 = vst [vmem:[#allocation14_spill] sm:$0xff] %v9078_v46 }
 0x1bf   : > { %v9082_v19 = vpop.f32.mrf.mxu1  ;;  %v6501_v2 = vpop.f32.mrf.mxu0 }
 0x1c1   : > { %v9084_v36 = vpop.f32.mrf.mxu1  ;;  %v3738_v47 = vpop.f32.mrf.mxu0 }
 0x1c3   : > { %v9086_v26 = vpop.f32.mrf.mxu1  ;;  %v6504_v50 = vpop.f32.mrf.mxu0 }
 0x1c5   : > { %v9088_v15 = vpop.f32.mrf.mxu1  ;;  %v3751_v20 = vpop.f32.mrf.mxu0 }
 0x1c7   : > { %v9090_v39 = vpop.f32.mrf.mxu1  ;;  %v6505_v6 = vpop.f32.mrf.mxu0 }
 0x1c9   : > { %v9092_v14 = vpop.f32.mrf.mxu1  ;;  %v9094_v18 = vpop.f32.mrf.mxu0 }
 0x1cb   : > { %v9096_v38 = vpop.f32.mrf.mxu1  ;;  %v9098_v28 = vpop.f32.mrf.mxu0 }
 0x1cd   : > { %v9100_v9 = vpop.f32.mrf.mxu1  ;;  %v9102_v54 = vpop.f32.mrf.mxu0 }
 0x1cf   : > { %v9104_v23 = vpop.f32.mrf.mxu1  ;;  %v9106_v41 = vpop.f32.mrf.mxu0 }
 0x1d1   : > { %v9108_v10 = vpop.f32.mrf.mxu1  ;;  %v9110_v42 = vpop.f32.mrf.mxu0 }
 0x1d2   : > { %9415 = vst [vmem:[#allocation15_spill] sm:$0xff] %v9108_v10  ;;  %v3800_v10 = vadd.f32 %v6500_v62, %v9032_v0 }
 0x1d3   : > { %v9112_v27 = vpop.f32.mrf.mxu1  ;;  %v9114_v52 = vpop.f32.mrf.mxu0 }
 0x1d4   : > { %9416 = vst [vmem:[#allocation16_spill] sm:$0xff] %v9112_v27 }
 0x1d5   : > { %v9116_v3 = vpop.f32.mrf.mxu1  ;;  %v9118_v4 = vpop.f32.mrf.mxu0 }
 0x1d6   : > { %9417 = vst [vmem:[#allocation5_spill] sm:$0xff] %v9116_v3  ;;  %9418 = vst [vmem:[#allocation6_spill] sm:$0xff] %v9118_v4 }
 0x1d7   : > { %v9120_v34 = vpop.f32.mrf.mxu1  ;;  %v9122_v5 = vpop.f32.mrf.mxu0 }
 0x1d8   : > { %9419 = vst [vmem:[#allocation7_spill] sm:$0xff] %v9120_v34  ;;  %9420 = vst [vmem:[#allocation17_spill] sm:$0xff] %v9122_v5 }
 0x1d9   : > { %v9124_v60 = vpop.f32.mrf.mxu1  ;;  %v9126_v12 = vpop.f32.mrf.mxu0 }
 0x1da   : > { %9421 = vst [vmem:[#allocation8_spill] sm:$0xff] %v9124_v60  ;;  %9422 = vst [vmem:[#allocation9_spill] sm:$0xff] %v9126_v12 }
 0x1db   : > { %v6554_v43 = vpop.f32.mrf.mxu1  ;;  %v6536_v53 = vpop.f32.mrf.mxu0 }
 0x1dd   : > { %v4579_v32 = vpop.f32.mrf.mxu1  ;;  %v4377_v29 = vpop.f32.mrf.mxu0 }
 0x1df   : > { %v6555_v7 = vpop.f32.mrf.mxu1  ;;  %v6537_v63 = vpop.f32.mrf.mxu0 }
 0x1e1   : > { %v9128_v16 = vpop.f32.mrf.mxu1  ;;  %v4380_v11 = vpop.f32.mrf.mxu0 }
 0x1e3   : > { %v9130_v56 = vpop.f32.mrf.mxu1  ;;  %v6540_v1 = vpop.f32.mrf.mxu0 }
 0x1e5   : > { %v9132_v30 = vpop.f32.mrf.mxu1  ;;  %v4393_v37 = vpop.f32.mrf.mxu0 }
 0x1e7   : > { %v9134_v8 = vpop.f32.mrf.mxu1  ;;  %v6541_v58 = vpop.f32.mrf.mxu0 }
 0x1e8   : > { %9423 = vst [vmem:[#allocation18_spill] sm:$0xff] %v9134_v8 }
 0x1e9   : > { %v9136_v60 = vpop.f32.mrf.mxu1  ;;  %v9138_v34 = vpop.f32.mrf.mxu0 }
 0x1ea   : > { %9424 = vst [vmem:[#allocation10_spill] sm:$0xff] %v9136_v60  ;;  %v3798_v60 = vadd.f32 %v3735_v21, %v9036_v49 }
 0x1eb   : > { %v9140_v12 = vpop.f32.mrf.mxu1 }
 0x1ec   : > { %9425 = vst [vmem:[#allocation11_spill] sm:$0xff] %v9140_v12  ;;  %v9142_v46 = vpop.f32.mrf.mxu0  ;;  %v4183_v62 = vadd.f32 %v9080_v59, %v3798_v60 }
 0x1ed   : > { %9426 = vst [vmem:[#allocation19_spill] sm:$0xff] %v9142_v46  ;;  %v9144_v3 = vpop.f32.mrf.mxu1  ;;  %v4185_v46 = vadd.f32 %v6518_v17, %v3800_v10  ;;  %v3803_v10 = vadd.f32 %v9094_v18, %v9055_v31 }
 0x1ee   : > { %9427 = vst [vmem:[#allocation20_spill] sm:$0xff] %v9144_v3  ;;  %v9146_v27 = vpop.f32.mrf.mxu0  ;;  %v3801_v3 = vadd.f32 %v6501_v2, %v9040_v57  ;;  %v4440_v49 = vadd.f32 %v4377_v29, %v4183_v62  ;;  %v3802_v57 = vadd.f32 %v3751_v20, %v9049_v22  ;;  %v3808_v22 = vadd.f32 %v9098_v28, %v9058_v25 }
 0x1ef   : > { %9428 = vst [vmem:[#allocation21_spill] sm:$0xff] %v9146_v27  ;;  %v9148_v5 = vpop.f32.mrf.mxu1  ;;  %v4442_v0 = vadd.f32 %v6536_v53, %v4185_v46  ;;  %v4188_v25 = vadd.f32 %v9092_v14, %v3803_v10 }
 0x1f0   : > { %9429 = vst [vmem:[#allocation22_spill] sm:$0xff] %v9148_v5  ;;  %v9150_v44 = vpop.f32.mrf.mxu0  ;;  %v4186_v21 = vadd.f32 %v9082_v19, %v3801_v3  ;;  %v4187_v20 = vadd.f32 %v9088_v15, %v3802_v57 }
 0x1f1   : > { %9430 = vst [vmem:[#allocation23_spill] sm:$0xff] %v9150_v44  ;;  %v9153_v4 = vpop.f32.mrf.mxu1  ;;  %v3799_v44 = vadd.f32 %v3738_v47, %v9043_v48  ;;  %v3805_v48 = vadd.f32 %v6505_v6, %v9052_v24  ;;  %v4644_v47 = vadd.f32 %v6554_v43, %v4442_v0 }
 0x1f2   : > { %9431 = vst [vmem:[#allocation24_spill] sm:$0xff] %v9153_v4  ;;  %v9155_v35 = vpop.f32.mrf.mxu0  ;;  %v4443_v46 = vadd.f32 %v6537_v63, %v4186_v21  ;;  %v4444_v63 = vadd.f32 %v4393_v37, %v4187_v20 }
 0x1f3   : > { %9432 = vst [vmem:[#allocation25_spill] sm:$0xff] %v9155_v35  ;;  %v9158_v8 = vpop.f32.mrf.mxu1  ;;  %v4184_v59 = vadd.f32 %v9084_v36, %v3799_v44  ;;  %v4190_v6 = vadd.f32 %v9090_v39, %v3805_v48  ;;  %v3807_v39 = vadd.f32 %v9110_v42, %v9067_v55 }
 0x1f4   : > { %9433 = vst [vmem:[#allocation26_spill] sm:$0xff] %v9158_v8  ;;  %v9160_v12 = vpop.f32.mrf.mxu0  ;;  %v3804_v8 = vadd.f32 %v6504_v50, %v9046_v13  ;;  %v4642_v13 = vadd.f32 %v4579_v32, %v4440_v49  ;;  %v3806_v50 = vadd.f32 %v9102_v54, %v9061_v61  ;;  %v4645_v43 = vadd.f32 %v6555_v7, %v4443_v46 }
 0x1f5   : > { %v9163_v27 = vpop.f32.mrf.mxu1  ;;  %v4441_v19 = vadd.f32 %v4380_v11, %v4184_v59  ;;  %v3809_v32 = vadd.f32 %v9106_v41, %v9064_v45  ;;  %v4193_v7 = vadd.f32 %v9096_v38, %v3808_v22  ;;  %v4445_v49 = vadd.f32 %v9138_v34, %v4188_v25  ;;  %v9434_v59 = vld [vmem:[#allocation19_spill] sm:$0xff]  ;;  %v9437_v22 = vld [vmem:[#allocation6_spill] sm:$0xff] }
 0x1f6   : > { %v9165_v5 = vpop.f32.mrf.mxu0  ;;  %v4189_v24 = vadd.f32 %v9086_v26, %v3804_v8  ;;  %v4447_v8 = vadd.f32 %v6541_v58, %v4190_v6  ;;  %v4191_v45 = vadd.f32 %v9100_v9, %v3806_v50  ;;  %v4646_v38 = vadd.f32 %v9132_v30, %v4444_v63 }
 0x1f7   : > { %v9169_v4 = vpop.f32.mrf.mxu1  ;;  %v4643_v11 = vadd.f32 %v9128_v16, %v4441_v19  ;;  %v4194_v16 = vadd.f32 %v9104_v23, %v3809_v32  ;;  %v3812_v46 = vadd.f32 %v9114_v52, %v9070_v40  ;;  %v4450_v34 = vadd.f32 %v9434_v59, %v4193_v7 }
 0x1f8   : > { %v9171_v35 = vpop.f32.mrf.mxu0  ;;  %v4446_v29 = vadd.f32 %v6540_v1, %v4189_v24  ;;  %v9438_v24 = vld [vmem:[#allocation15_spill] sm:$0xff] }
 0x1f9   : > { %v9176_v17 = vpop.f32.mrf.mxu1  ;;  %v4192_v40 = vadd.f32 %v9438_v24, %v3807_v39  ;;  %v9441_v25 = vld [vmem:[#allocation23_spill] sm:$0xff] }
 0x1fa   : > { %v9178_v2 = vpop.f32.mrf.mxu0  ;;  %v4648_v55 = vadd.f32 %v9130_v56, %v4446_v29  ;;  %v9440_v29 = vld [vmem:[#allocation21_spill] sm:$0xff] }
 0x1fb   : > { %v6590_v60 = vpop.f32.mrf.mxu1  ;;  %v4448_v63 = vadd.f32 %v9440_v29, %v4191_v45 }
 0x1fc   : > { %v6572_v53 = vpop.f32.mrf.mxu0 }
 0x1fd   : > { %v5029_v3 = vadd.f32 %v6572_v53, %v4644_v47  ;;  %v5221_v44 = vpop.f32.mrf.mxu1 }
 0x1fe   : > { %v4964_v36 = vpop.f32.mrf.mxu0 }
 0x1ff   : > { %v5286_v31 = vadd.f32 %v6590_v60, %v5029_v3  ;;  %v5027_v18 = vadd.f32 %v4964_v36, %v4642_v13  ;;  %v6591_v28 = vpop.f32.mrf.mxu1  ;;  %v9435_v60 = vld [vmem:[#allocation18_spill] sm:$0xff]  ;;  %v9436_v13 = vld [vmem:[#allocation13_spill] sm:$0xff] }
 0x200   : > { %v6573_v61 = vpop.f32.mrf.mxu0  ;;  %v4649_v56 = vadd.f32 %v9435_v60, %v4447_v8  ;;  %v3810_v50 = vadd.f32 %v9437_v22, %v9436_v13  ;;  %v9439_v36 = vld [vmem:[#allocation10_spill] sm:$0xff]  ;;  %v9451_v13 = vld [vmem:[#allocation9_spill] sm:$0xff] }
 0x201   : > { %v5302_v26 = vmul.f32 %v8891_v51, %v5286_v31  ;;  %v5284_v54 = vadd.f32 %v5221_v44, %v5027_v18  ;;  %v5030_v15 = vadd.f32 %v6573_v61, %v4645_v43  ;;  %v5224_v41 = vpop.f32.mrf.mxu1  ;;  %v4647_v6 = vadd.f32 %v9439_v36, %v4445_v49 }
 0x202   : > { %v4967_v1 = vpop.f32.mrf.mxu0 }
 0x203   : > { %v5318_v14 = vadd.f32 %v8900_v33, %v5302_v26  ;;  %v5300_v37 = vmul.f32 %v8891_v51, %v5284_v54  ;;  %v5287_v0 = vadd.f32 %v6591_v28, %v5030_v15  ;;  %v5028_v62 = vadd.f32 %v4967_v1, %v4643_v11  ;;  %v9442_v15 = vld [vmem:[#allocation11_spill] sm:$0xff]  ;;  %v9443_v1 = vld [vmem:[#allocation12_spill] sm:$0xff] }
 0x204   : > { %v6594_v21 = vpop.f32.mrf.mxu1  ;;  %v6576_v42 = vpop.f32.mrf.mxu0  ;;  %v4451_v28 = vadd.f32 %v9441_v25, %v4194_v16  ;;  %v4652_v11 = vadd.f32 %v9442_v15, %v4450_v34 }
 0x205   : > { %v5334_v9 = vmax.f32 %v5318_v14, 0.0  ;;  %v5316_v58 = vadd.f32 %v8900_v33, %v5300_v37  ;;  %v5303_v57 = vmul.f32 %v8891_v51, %v5287_v0  ;;  %v5285_v48 = vadd.f32 %v5224_v41, %v5028_v62  ;;  %v9444_v14 = vld [vmem:[#allocation17_spill] sm:$0xff]  ;;  %v9446_v62 = vld [vmem:[#allocation16_spill] sm:$0xff] }
 0x206   : > { %v5237_v47 = vpop.f32.mrf.mxu1  ;;  %v5033_v23 = vadd.f32 %v6576_v42, %v4648_v55  ;;  %v4980_v10 = vpop.f32.mrf.mxu0  ;;  %v3813_v37 = vadd.f32 %v9444_v14, %v9443_v1  ;;  %v9445_v0 = vld [vmem:[#allocation25_spill] sm:$0xff]  ;;  %v4197_v49 = vadd.f32 %v9446_v62, %v3812_v46 }
 0x207   : > { %5350 = vst [vmem:[%s8922_s29 + $0x90] sm:$0xff] %v5334_v9  ;;  %v5332_v53 = vmax.f32 %v5316_v58, 0.0  ;;  %v5319_v30 = vadd.f32 %v8900_v33, %v5303_v57  ;;  %v5301_v19 = vmul.f32 %v8891_v51, %v5285_v48  ;;  %v5031_v3 = vadd.f32 %v4980_v10, %v4646_v38  ;;  %v9447_v57 = vld [vmem:[#allocation5_spill] sm:$0xff]  ;;  %v9449_v10 = vld [vmem:[#allocation22_spill] sm:$0xff] }
 0x208   : > { %v5290_v52 = vadd.f32 %v6594_v21, %v5033_v23  ;;  %v6595_v20 = vpop.f32.mrf.mxu1  ;;  %v6577_v44 = vpop.f32.mrf.mxu0  ;;  %v4449_v45 = vadd.f32 %v9445_v0, %v4192_v40  ;;  %v4195_v48 = vadd.f32 %v9447_v57, %v3810_v50  ;;  %v4653_v60 = vadd.f32 %v9449_v10, %v4451_v28 }
 0x209   : > { %5348 = vst [vmem:[%s8922_s29 + $0x80] sm:$0xff] %v5332_v53  ;;  %v5335_v31 = vmax.f32 %v5319_v30, 0.0  ;;  %v5317_v18 = vadd.f32 %v8900_v33, %v5301_v19  ;;  %v5288_v43 = vadd.f32 %v5237_v47, %v5031_v3  ;;  %v5034_v32 = vadd.f32 %v6577_v44, %v4649_v56  ;;  %v9448_v47 = vld [vmem:[#allocation20_spill] sm:$0xff]  ;;  %v9450_v3 = vld [vmem:[#allocation14_spill] sm:$0xff] }
 0x20a   : > { %v5306_v61 = vmul.f32 %v8891_v51, %v5290_v52  ;;  %v5240_v26 = vpop.f32.mrf.mxu1  ;;  %v4983_v54 = vpop.f32.mrf.mxu0  ;;  %v4650_v23 = vadd.f32 %v9448_v47, %v4448_v63  ;;  %v3811_v22 = vadd.f32 %v9451_v13, %v9450_v3  ;;  %v4454_v24 = vadd.f32 %v9160_v12, %v4197_v49 }
 0x20b   : > { %5351 = vst [vmem:[%s8922_s29 + $0x98] sm:$0xff] %v5335_v31  ;;  %v5333_v39 = vmax.f32 %v5317_v18, 0.0  ;;  %v5304_v8 = vmul.f32 %v8891_v51, %v5288_v43  ;;  %v5291_v7 = vadd.f32 %v6595_v20, %v5034_v32  ;;  %v5032_v41 = vadd.f32 %v4983_v54, %v4647_v6  ;;  %v9452_v20 = vld [vmem:[#allocation24_spill] sm:$0xff]  ;;  %v9453_v32 = vld [vmem:[#allocation7_spill] sm:$0xff] }
 0x20c   : > { %v5322_v16 = vadd.f32 %v8900_v33, %v5306_v61  ;;  %v6598_v21 = vpop.f32.mrf.mxu1  ;;  %v6580_v55 = vpop.f32.mrf.mxu0  ;;  %v4651_v44 = vadd.f32 %v9452_v20, %v4449_v45  ;;  %v4452_v43 = vadd.f32 %v9165_v5, %v4195_v48  ;;  %v4198_v29 = vadd.f32 %v9453_v32, %v3813_v37  ;;  %v9455_v5 = vld [vmem:[#allocation26_spill] sm:$0xff] }
 0x20d   : > { %5349 = vst [vmem:[%s8922_s29 + $0x88] sm:$0xff] %v5333_v39  ;;  %v5320_v42 = vadd.f32 %v8900_v33, %v5304_v8  ;;  %v5307_v38 = vmul.f32 %v8891_v51, %v5291_v7  ;;  %v5289_v9 = vadd.f32 %v5240_v26, %v5032_v41  ;;  %v5037_v58 = vadd.f32 %v6580_v55, %v4652_v11  ;;  %v9454_v11 = vld [vmem:[#allocation8_spill] sm:$0xff] }
 0x20e   : > { %v5338_v59 = vmax.f32 %v5322_v16, 0.0  ;;  %v5253_v34 = vpop.f32.mrf.mxu1  ;;  %v4996_v46 = vpop.f32.mrf.mxu0  ;;  %v4455_v15 = vadd.f32 %v9171_v35, %v4198_v29  ;;  %v4196_v39 = vadd.f32 %v9454_v11, %v3811_v22  ;;  %v4656_v41 = vadd.f32 %v9455_v5, %v4454_v24 }
 0x20f   : > { %v5336_v56 = vmax.f32 %v5320_v42, 0.0  ;;  %v5323_v53 = vadd.f32 %v8900_v33, %v5307_v38  ;;  %v5305_v30 = vmul.f32 %v8891_v51, %v5289_v9  ;;  %v5294_v19 = vadd.f32 %v6598_v21, %v5037_v58 }
 0x210   : > { %5354 = vst [vmem:[%s8922_s29 + $0xb0] sm:$0xff] %v5338_v59  ;;  %v6599_v50 = vpop.f32.mrf.mxu1  ;;  %v5035_v40 = vadd.f32 %v4996_v46, %v4650_v23  ;;  %v6581_v52 = vpop.f32.mrf.mxu0  ;;  %v4453_v45 = vadd.f32 %v9178_v2, %v4196_v39  ;;  %v4654_v16 = vadd.f32 %v9163_v27, %v4452_v43  ;;  %v4657_v57 = vadd.f32 %v9169_v4, %v4455_v15 }
 0x211   : > { %5352 = vst [vmem:[%s8922_s29 + $0xa0] sm:$0xff] %v5336_v56  ;;  %v5339_v36 = vmax.f32 %v5323_v53, 0.0  ;;  %v5321_v6 = vadd.f32 %v8900_v33, %v5305_v30  ;;  %v5310_v31 = vmul.f32 %v8891_v51, %v5294_v19  ;;  %v5038_v18 = vadd.f32 %v6581_v52, %v4653_v60 }
 0x212   : > { %v5292_v12 = vadd.f32 %v5253_v34, %v5035_v40  ;;  %v5256_v63 = vpop.f32.mrf.mxu1  ;;  %v4999_v25 = vpop.f32.mrf.mxu0  ;;  %v4655_v46 = vadd.f32 %v9176_v17, %v4453_v45 }
 0x213   : > { %5355 = vst [vmem:[%s8922_s29 + $0xb8] sm:$0xff] %v5339_v36  ;;  %v5337_v28 = vmax.f32 %v5321_v6, 0.0  ;;  %v5326_v61 = vadd.f32 %v8900_v33, %v5310_v31  ;;  %v5295_v26 = vadd.f32 %v6599_v50, %v5038_v18  ;;  %v5036_v54 = vadd.f32 %v4999_v25, %v4651_v44 }
 0x214   : > { %v5308_v8 = vmul.f32 %v8891_v51, %v5292_v12  ;;  %v6602_v7 = vpop.f32.mrf.mxu1  ;;  %v6584_v0 = vpop.f32.mrf.mxu0 }
 0x215   : > { %5353 = vst [vmem:[%s8922_s29 + $0xa8] sm:$0xff] %v5337_v28  ;;  %v5342_v1 = vmax.f32 %v5326_v61, 0.0  ;;  %v5311_v14 = vmul.f32 %v8891_v51, %v5295_v26  ;;  %v5293_v37 = vadd.f32 %v5256_v63, %v5036_v54  ;;  %v5041_v35 = vadd.f32 %v6584_v0, %v4656_v41 }
 0x216   : > { %v5324_v62 = vadd.f32 %v8900_v33, %v5308_v8  ;;  %v5269_v49 = vpop.f32.mrf.mxu1  ;;  %v5012_v42 = vpop.f32.mrf.mxu0 }
 0x217   : > { %5358 = vst [vmem:[%s8922_s29 + $0xd0] sm:$0xff] %v5342_v1  ;;  %v5327_v21 = vadd.f32 %v8900_v33, %v5311_v14  ;;  %v5309_v55 = vmul.f32 %v8891_v51, %v5293_v37  ;;  %v5298_v9 = vadd.f32 %v6602_v7, %v5041_v35  ;;  %v5039_v58 = vadd.f32 %v5012_v42, %v4654_v16 }
 0x218   : > { %v5340_v38 = vmax.f32 %v5324_v62, 0.0  ;;  %v6603_v59 = vpop.f32.mrf.mxu1  ;;  %v6585_v34 = vpop.f32.mrf.mxu0 }
 0x219   : > { %v5343_v2 = vmax.f32 %v5327_v21, 0.0  ;;  %v5325_v48 = vadd.f32 %v8900_v33, %v5309_v55  ;;  %v5314_v27 = vmul.f32 %v8891_v51, %v5298_v9  ;;  %v5296_v47 = vadd.f32 %v5269_v49, %v5039_v58 }
 0x21a   : > { %5356 = vst [vmem:[%s8922_s29 + $0xc0] sm:$0xff] %v5340_v38  ;;  %v5042_v23 = vadd.f32 %v6585_v34, %v4657_v57  ;;  %v5015_v60 = vpop.f32.mrf.mxu0  ;;  %v5272_v19 = vpop.f32.mrf.mxu1 }
 0x21b   : > { %5359 = vst [vmem:[%s8922_s29 + $0xd8] sm:$0xff] %v5343_v2  ;;  %v5341_v10 = vmax.f32 %v5325_v48, 0.0  ;;  %v5330_v4 = vadd.f32 %v8900_v33, %v5314_v27  ;;  %v5312_v56 = vmul.f32 %v8891_v51, %v5296_v47  ;;  %v5040_v30 = vadd.f32 %v5015_v60, %v4655_v46 }
 0x21c   : > { %v5299_v53 = vadd.f32 %v6603_v59, %v5042_v23 }
 0x21d   : > { %5357 = vst [vmem:[%s8922_s29 + $0xc8] sm:$0xff] %v5341_v10  ;;  %v5346_v3 = vmax.f32 %v5330_v4, 0.0  ;;  %v5328_v13 = vadd.f32 %v8900_v33, %v5312_v56  ;;  %v5297_v22 = vadd.f32 %v5272_v19, %v5040_v30 }
 0x21e   : > { %v5315_v17 = vmul.f32 %v8891_v51, %v5299_v53 }
 0x21f   : > { %5362 = vst [vmem:[%s8922_s29 + $0xf0] sm:$0xff] %v5346_v3  ;;  %v5344_v24 = vmax.f32 %v5328_v13, 0.0  ;;  %v5313_v40 = vmul.f32 %v8891_v51, %v5297_v22 }
 0x220   : > { %v5331_v50 = vadd.f32 %v8900_v33, %v5315_v17 }
 0x221   : > { %5360 = vst [vmem:[%s8922_s29 + $0xe0] sm:$0xff] %v5344_v24  ;;  %v5329_v20 = vadd.f32 %v8900_v33, %v5313_v40 }
 0x222   : > { %v5347_v52 = vmax.f32 %v5331_v50, 0.0 }
 0x223   : > { %v5345_v44 = vmax.f32 %v5329_v20, 0.0 }
 0x224   : > { %5363 = vst [vmem:[%s8922_s29 + $0xf8] sm:$0xff] %v5347_v52 }
 0x225   : > { %5361 = vst [vmem:[%s8922_s29 + $0xe8] sm:$0xff] %v5345_v44 }
 0x226   : > { %6741 = shalt.err (!%p6738_p5)
}
 0x227   : > { %s6742_s21 = scalar_lea.hbm %s9285_s8, 4096  ;;  %s6746_s22 = scalar_lea.hbm %s9342_s4, 8192 }
 0x228   : > { %p6743_p6 = scmp.ne.s32.totalorder %s9285_s8, %s6742_s21  ;;  %p6747_p10 = scmp.lt.s32.totalorder %s9285_s8, %s9342_s4 }
 0x229   : > { %p6748_p11 = scmp.lt.s32.totalorder %s6746_s22, %s6742_s21 }
 0x22a   : > { %p6744_p7 = pnand %p6743_p6, %p6874_p4 }
 0x22b   : > { %p6749_p12 = por %p6748_p11, %p6747_p10 }
 0x22c   : > { %p6745_p9 = pneg %p6744_p7 }
 0x22e   : > { %p6750_p13 = pnand %p6749_p12, %p6745_p9 }
 0x230   : > { %6753 = shalt.err (!%p6750_p13)
}
 0x231   : > { %s6807_s29 = smov 128   ;;  %s6808_s30 = smov 8  }
 0x232   : > { %6605 = dma.vmem_to_hbm [thread:$0]  (%p6874_p4), %s9287_s5, 4096, %s9285_s8, %s9293_s18, %s6807_s29, %s6807_s29, %s6808_s30  }
 0x233 PF: > { %p6611_p0 = scmp.ge.s32.totalorder %s6804_s20, 2  ;;  %s5394_s6 = sand.u32 1, %s6784_s15  }
 0x234   : > { %s5395_s7 = scalar_lea.sflag [#allocation3], %s5394_s6 }
 0x235   : > { %p6608_p1 = pnand %p6611_p0, %p6881_p8 }
 0x237   : > { %p6609_p2 = pneg %p6608_p1 }
 0x239   : > { %6779 = dma.done.wait (%p6609_p2), %s5395_s7, 4096  }
 0x23a   : > { %6781 = vsyncadd (%p6609_p2), %s5395_s7, 4294963200  ;;  %s17_s20 = sadd.s32 1, %s6804_s20   ;;  %s9456_s15 = smov %s6788_s16 }
 0x23b   : > { %p14_p3 = scmp.ge.s32.totalorder %s17_s20, 4   ;;  %s9457_s16 = smov %s6792_s17 }
 0x23c   : > { %s9458_s17 = smov %s6887_s28  ;;  %s9459_s18 = smov %s6800_s19 }
 0x23d   : > { %s9460_s19 = smov %s9462_s23  ;;  %16 = sbr.rel (!%p14_p3) target bundleno = 4 (0x4), region = 93 }
 0x242   :  { %5400 = vsyncpa [#allocation3], 1 }
 0x243   :  { %5402 = vsyncpa [#allocation3 + $0x1], 1 }

</bundles_post_ra>
